<compile_context>
chip_gen: v7x
topology: tpu7x:2x2x1
jax: 0.10.0
libtpu: 0.0.40
codegen_flags: <defaults>
</compile_context>

<pallas_src>
import numpy as np
import jax
import jax.numpy as jnp
from jax.experimental import pallas as pl
from jax.experimental.pallas import tpu as pltpu


# ----------------------------------------------------------------------------
# Kernel 1: fused TripletAttention (both AttentionGates) + gated spatial mean
#   per gate:  ZPool (max/mean) -> 7x7 conv (2->1 ch) -> BN(eval) -> sigmoid
#              -> gated mean over (reduce axis, plane axis)  ==>  out[b, g, c]
# ----------------------------------------------------------------------------
def _triplet_gate_kernel(bnt_ref, band_ref, x_ref, out_ref, zp_ref):
    # bnt_ref : SMEM [2]             folded BatchNorm2d shift per gate (cw, hc)
    # band_ref: VMEM [7, 2P, 4P]     block-diagonal banded (dy x ZPool-channel)
    #                                conv weights for BOTH gates, BN2d scale
    #                                folded in; leading dim = C-axis lane tap dx
    # x_ref   : VMEM [1, H, W, C]    NHWC part features for one batch element
    # out_ref : VMEM [1, 2, C]       per-gate gated spatial mean
    # zp_ref  : VMEM [4P, C+6]       scratch: lane-padded ZPool planes
    #                                rows [max_cw; mean_cw; max_hc; mean_hc]
    _, H, W, C = x_ref.shape
    P = W                                          # H == W (checked in wrapper)

    # zero the 3-lane borders (centre is fully overwritten below); ~25 vregs
    zp_ref[...] = jnp.zeros(zp_ref.shape, zp_ref.dtype)

    xb = x_ref[0]                                  # [H, W, C]
    # ZPool planes for both gates
    zmax_cw = jnp.max(xb, axis=0)                  # [W, C]  (cw gate: reduce H)
    zmean_cw = jnp.mean(xb, axis=0)                # [W, C]
    zmax_hc = jnp.max(xb, axis=1)                  # [H, C]  (hc gate: reduce W)
    zmean_hc = jnp.mean(xb, axis=1)                # [H, C]

    # stage all four planes (lane-padded by 3 on each side)
    zp_ref[0 * P:1 * P, 3:3 + C] = zmax_cw
    zp_ref[1 * P:2 * P, 3:3 + C] = zmean_cw
    zp_ref[2 * P:3 * P, 3:3 + C] = zmax_hc
    zp_ref[3 * P:4 * P, 3:3 + C] = zmean_hc

    # Both gates' 7x7 convs at once: 7 lane-tap reads x [2P,4P]@[4P,C] MXU dots
    acc = jnp.zeros((2 * P, C), jnp.float32)
    for dx in range(7):
        acc = acc + jnp.dot(band_ref[dx], zp_ref[:, dx:dx + C],
                            preferred_element_type=jnp.float32)

    # BN2d shift (scale already folded into band) + sigmoid attention map,
    # then mean_{K,P}(x * scale) == mean_P(scale * mean_K(x))
    scale_cw = jax.nn.sigmoid(acc[0:P] + bnt_ref[0])        # [W, C]
    scale_hc = jax.nn.sigmoid(acc[P:2 * P] + bnt_ref[1])    # [H, C]
    g_cw = jnp.mean(scale_cw * zmean_cw, axis=0, keepdims=True)   # [1, C]
    g_hc = jnp.mean(scale_hc * zmean_hc, axis=0, keepdims=True)   # [1, C]
    out_ref[0] = jnp.concatenate([g_cw, g_hc], axis=0)            # [2, C]


def triplet_gate_means(x_nhwc, band, bn_shift):
    B, H, W, C = x_nhwc.shape
    assert H == W, "band stacking assumes square part-feature maps"
    P = W
    return pl.pallas_call(
        _triplet_gate_kernel,
        out_shape=jax.ShapeDtypeStruct((B, 2, C), jnp.float32),
        grid=(B,),
        in_specs=[
            pl.BlockSpec(memory_space=pltpu.MemorySpace.SMEM),     # BN shifts
            pl.BlockSpec(band.shape, lambda b: (0, 0, 0)),         # band weights
            pl.BlockSpec((1, H, W, C), lambda b: (b, 0, 0, 0)),    # NHWC features
        ],
        out_specs=pl.BlockSpec((1, 2, C), lambda b: (b, 0, 0)),
        scratch_shapes=[pltpu.VMEM((4 * P, C + 6), jnp.float32)],
        compiler_params=pltpu.CompilerParams(dimension_semantics=("parallel",)),
    )(bn_shift, band, x_nhwc)


# ----------------------------------------------------------------------------
# Kernel 2: batched ClassBlock (eval): x @ W' + b'  (bias + BN1d folded into
# W'/b' on the host, W' and x in bf16, f32 accumulate).  Grid over the heads.
# ----------------------------------------------------------------------------
def _classblock_kernel(x_ref, w_ref, b_ref, o_ref):
    y = jnp.dot(x_ref[0], w_ref[0], preferred_element_type=jnp.float32)
    o_ref[0] = y + b_ref[0]


def classblock_batched(xs, ws, bs):
    G, B, Din = xs.shape
    Db = ws.shape[-1]
    return pl.pallas_call(
        _classblock_kernel,
        out_shape=jax.ShapeDtypeStruct((G, B, Db), jnp.float32),
        grid=(G,),
        in_specs=[
            pl.BlockSpec((1, B, Din), lambda g: (g, 0, 0)),
            pl.BlockSpec((1, Din, Db), lambda g: (g, 0, 0)),
            pl.BlockSpec((1, 1, Db), lambda g: (g, 0, 0)),
        ],
        out_specs=pl.BlockSpec((1, B, Db), lambda g: (g, 0, 0)),
        compiler_params=pltpu.CompilerParams(dimension_semantics=("parallel",)),
    )(xs, ws, bs)


# ----------------------------------------------------------------------------
# Parameters (deterministic, shapes taken from the module __init__)
# ----------------------------------------------------------------------------
def init_params(key, in_planes, num_bottleneck, num_classes, block=2):
    keys = jax.random.split(key, 2 + block + 1)
    p = {}
    conv_std = (2.0 / (2 * 7 * 7)) ** 0.5
    # TripletAttention: two AttentionGates, each BasicConv(2,1,7,bias=False)+BN2d(1)
    p['w_cw'] = conv_std * jax.random.normal(keys[0], (1, 2, 7, 7), jnp.float32)
    p['w_hc'] = conv_std * jax.random.normal(keys[1], (1, 2, 7, 7), jnp.float32)
    for name in ('bn_cw', 'bn_hc'):
        p[name] = dict(gamma=jnp.ones((1,), jnp.float32), beta=jnp.zeros((1,), jnp.float32),
                       mean=jnp.zeros((1,), jnp.float32), var=jnp.ones((1,), jnp.float32))
    lin_std = (2.0 / num_bottleneck) ** 0.5            # kaiming_normal_, mode='fan_out'
    names = ['classifier_mcb%d' % (i + 1) for i in range(block)] + ['classifier1']
    for i, name in enumerate(names):
        kw, kc = jax.random.split(keys[2 + i])
        p[name] = dict(
            lin_w=lin_std * jax.random.normal(kw, (num_bottleneck, in_planes), jnp.float32),
            lin_b=jnp.zeros((num_bottleneck,), jnp.float32),
            bn_gamma=jnp.ones((num_bottleneck,), jnp.float32),
            bn_beta=jnp.zeros((num_bottleneck,), jnp.float32),
            bn_mean=jnp.zeros((num_bottleneck,), jnp.float32),
            bn_var=jnp.ones((num_bottleneck,), jnp.float32),
            # classifier Linear (std=0.001) — unused in eval forward, kept for fidelity
            cls_w=0.001 * jax.random.normal(kc, (num_classes, num_bottleneck), jnp.float32),
            cls_b=jnp.zeros((num_classes,), jnp.float32),
        )
    return p


# ----------------------------------------------------------------------------
# One-time host-side parameter preparation (hoisted out of the forward pass)
# ----------------------------------------------------------------------------
def prepare_params(params, H, W, block=2, eps=1e-5):
    assert H == W, "convnext part features are square; band stacking assumes it"
    P = W

    def fold_bn2(bn):
        g = float(bn['gamma'][0]); b = float(bn['beta'][0])
        m = float(bn['mean'][0]); v = float(bn['var'][0])
        s = g / float(np.sqrt(v + eps))
        return s, b - m * s

    s_cw, t_cw = fold_bn2(params['bn_cw'])
    s_hc, t_hc = fold_bn2(params['bn_hc'])

    # Effective 7x7 kernels in the kernel's (plane-P offset a, lane-tap dx=C)
    # orientation, with the BN2d scale folded in.  cw gate's conv plane is
    # (C, W) in the original orientation but (W, C) in-kernel -> spatially
    # transpose that kernel.
    wk_cw = np.transpose(np.asarray(params['w_cw'][0]), (0, 2, 1)) * s_cw  # [2,7,7]
    wk_hc = np.asarray(params['w_hc'][0]) * s_hc                           # [2,7,7]

    def make_band(wk):
        # band[dx, p, q] = wk[0, q-p+3, dx]; band[dx, p, P+q] = wk[1, q-p+3, dx]
        # for |q-p| <= 3 (zero-padded conv along the plane axis), else 0.
        p = np.arange(P)[:, None]
        q = np.arange(P)[None, :]
        a = q - p + 3
        valid = (a >= 0) & (a <= 6)
        a_c = np.clip(a, 0, 6)
        band = np.zeros((7, P, 2 * P), np.float32)
        for dx in range(7):
            band[dx, :, :P] = np.where(valid, wk[0][a_c, dx], 0.0)   # ZPool max ch
            band[dx, :, P:] = np.where(valid, wk[1][a_c, dx], 0.0)   # ZPool mean ch
        return band

    # block-diagonal across gates: rows 0:P -> cw gate, rows P:2P -> hc gate
    band = np.zeros((7, 2 * P, 4 * P), np.float32)
    band[:, :P, :2 * P] = make_band(wk_cw)
    band[:, P:, 2 * P:] = make_band(wk_hc)
    band = jnp.asarray(band)
    bn_shift = jnp.asarray(np.array([t_cw, t_hc], np.float32))

    # ClassBlock heads: fold Linear bias + BatchNorm1d (eval) into (W', b')
    names = ['classifier_mcb%d' % (i + 1) for i in range(block)] + ['classifier1']
    ws, bs = [], []
    for n in names:
        pb = params[n]
        s = np.asarray(pb['bn_gamma']) / np.sqrt(np.asarray(pb['bn_var']) + eps)
        t = np.asarray(pb['bn_beta']) - np.asarray(pb['bn_mean']) * s
        ws.append(np.asarray(pb['lin_w']).T * s[None, :])          # [Din, Db]
        bs.append(np.asarray(pb['lin_b']) * s + t)                 # [Db]
    cls_w = jnp.asarray(np.stack(ws, axis=0)).astype(jnp.bfloat16)             # [G, Din, Db]
    cls_b = jnp.asarray(np.stack(bs, axis=0)).astype(jnp.float32)[:, None, :]  # [G, 1, Db]

    return dict(band=band, bn_shift=bn_shift, cls_w=cls_w, cls_b=cls_b)


# ----------------------------------------------------------------------------
# build_convnext.forward (eval), driven by the two Pallas kernels
# ----------------------------------------------------------------------------
def build_convnext_forward(gap_feature, part_features, prep):
    # single NCHW -> NHWC relayout so the preserved channel axis sits on lanes
    x_nhwc = jnp.transpose(part_features, (0, 2, 3, 1))                 # [B, H, W, C]

    # TripletAttention (both gates fused) + per-branch gated spatial mean
    tri = triplet_gate_means(x_nhwc, prep['band'], prep['bn_shift'])    # [B, 2, C]

    # ClassBlock heads (eval): [mcb1(cw), mcb2(hc), classifier1(gap)]
    xs = jnp.concatenate([jnp.transpose(tri, (1, 0, 2)),
                          gap_feature[None]], axis=0).astype(jnp.bfloat16)   # [G, B, C]
    cls_out = classblock_batched(xs, prep['cls_w'], prep['cls_b'])      # [G, B, Db]

    # eval assembly: y = cat([stack(part_preds, dim=2), gap_pred[:, :, None]], dim=2)
    return jnp.transpose(cls_out, (1, 2, 0))                            # [B, Db, block+1]


# ----------------------------------------------------------------------------
# Pure-JAX reference (mirrors the PyTorch eval forward) for validation
# ----------------------------------------------------------------------------
def reference_forward(gap_feature, part_features, params, block=2, eps=1e-5):
    def gate(xp, w, bn):
        zmax = jnp.max(xp, axis=1, keepdims=True)
        zmean = jnp.mean(xp, axis=1, keepdims=True)
        z = jnp.concatenate([zmax, zmean], axis=1)
        y = jax.lax.conv_general_dilated(
            z, w, window_strides=(1, 1), padding=((3, 3), (3, 3)),
            dimension_numbers=('NCHW', 'OIHW', 'NCHW'))
        s = bn['gamma'][0] / jnp.sqrt(bn['var'][0] + eps)
        t = bn['beta'][0] - bn['mean'][0] * s
        return xp * jax.nn.sigmoid(y * s + t)

    x = part_features
    x_out11 = jnp.transpose(
        gate(jnp.transpose(x, (0, 2, 1, 3)), params['w_cw'], params['bn_cw']), (0, 2, 1, 3))
    x_out21 = jnp.transpose(
        gate(jnp.transpose(x, (0, 3, 2, 1)), params['w_hc'], params['bn_hc']), (0, 3, 2, 1))
    tri = [x_out11.mean(axis=(-2, -1)), x_out21.mean(axis=(-2, -1))]

    def classblock(xv, pb):
        y = xv @ pb['lin_w'].T + pb['lin_b']
        s = pb['bn_gamma'] / jnp.sqrt(pb['bn_var'] + eps)
        t = pb['bn_beta'] - pb['bn_mean'] * s
        return y * s + t

    preds = [classblock(tri[i], params['classifier_mcb%d' % (i + 1)]) for i in range(block)]
    conv_feat = classblock(gap_feature, params['classifier1'])
    y = jnp.stack(preds, axis=2)
    return jnp.concatenate([y, conv_feat[:, :, None]], axis=2)


if __name__ == "__main__":
    key = jax.random.PRNGKey(0)
    k_gap, k_part, k_params = jax.random.split(key, 3)

    # small shapes consistent with convnext_tiny head: in_planes=768, bottleneck=512
    B, C, H, W = 2, 768, 8, 8
    num_bottleneck, num_classes, block = 512, 16, 2

    gap_feature = jax.random.normal(k_gap, (B, C), jnp.float32)
    part_features = jax.random.normal(k_part, (B, C, H, W), jnp.float32)
    params = init_params(k_params, C, num_bottleneck, num_classes, block=block)
    prep = prepare_params(params, H, W, block=block)       # one-time host prep

    fwd = jax.jit(build_convnext_forward)
    out = fwd(gap_feature, part_features, prep)
    out = jax.block_until_ready(out)

    ref = reference_forward(gap_feature, part_features, params, block=block)
    np.testing.assert_allclose(np.asarray(out), np.asarray(ref), rtol=3e-2, atol=3e-2)
    assert out.shape == (B, num_bottleneck, block + 1)

    print("KERNEL_OK")
</pallas_src>

<mosaic_0001>
module attributes {stable_mosaic.version = 11 : i64} {
  func.func @_triplet_gate_kernel(%arg0: i32, %arg1: memref<2xf32, #tpu.memory_space<smem>>, %arg2: memref<7x16x32xf32, #tpu.memory_space<vmem>>, %arg3: memref<1x8x8x768xf32, #tpu.memory_space<vmem>>, %arg4: memref<1x2x768xf32, #tpu.memory_space<vmem>>, %arg5: memref<32x774xf32, #tpu.memory_space<vmem>>) attributes {dimension_semantics = [#tpu.dimension_semantics<parallel>], iteration_bounds = array<i64: 2>, scalar_prefetch = 0 : i64, scratch_operands = 1 : i64, tpu.core_type = #tpu.core_type<tc>, window_params = [{transform_indices = @transform_0, window_bounds = array<i64: 2>}, {pipeline_mode = #tpu.pipeline_mode<synchronous>, transform_indices = @transform_1, window_bounds = array<i64: 7, 16, 32>}, {transform_indices = @transform_2, window_bounds = array<i64: 1, 8, 8, 768>}, {transform_indices = @transform_3, window_bounds = array<i64: 1, 2, 768>}]} {
    %cst = arith.constant 0.000000e+00 : f32
    %0 = vector.broadcast %cst : f32 to vector<32x774xf32>
    %c0 = arith.constant 0 : index
    %c0_0 = arith.constant 0 : index
    %1 = vector.load %arg5[%c0, %c0_0] : memref<32x774xf32, #tpu.memory_space<vmem>>, vector<32x774xf32>
    tpu.vector_store %arg5[%c0, %c0_0], %0 {strides = array<i32>} : memref<32x774xf32, #tpu.memory_space<vmem>>, vector<32x774xf32>,
    %c0_1 = arith.constant 0 : index
    %c0_2 = arith.constant 0 : index
    %c0_3 = arith.constant 0 : index
    %c0_4 = arith.constant 0 : index
    %2 = vector.load %arg3[%c0_1, %c0_2, %c0_3, %c0_4] : memref<1x8x8x768xf32, #tpu.memory_space<vmem>>, vector<1x8x8x768xf32>
    %3 = vector.shape_cast %2 : vector<1x8x8x768xf32> to vector<8x8x768xf32>
    %cst_5 = arith.constant dense<0xFF800000> : vector<8x768xf32>
    %4 = vector.multi_reduction <maximumf>, %3, %cst_5 [0] : vector<8x8x768xf32> to vector<8x768xf32>
    %cst_6 = arith.constant dense<0.000000e+00> : vector<8x768xf32>
    %5 = vector.multi_reduction <add>, %3, %cst_6 [0] : vector<8x8x768xf32> to vector<8x768xf32>
    %cst_7 = arith.constant 8.000000e+00 : f32
    %6 = vector.broadcast %cst_7 : f32 to vector<8x768xf32>
    %7 = arith.divf %5, %6 : vector<8x768xf32>
    %cst_8 = arith.constant dense<0xFF800000> : vector<8x768xf32>
    %8 = vector.multi_reduction <maximumf>, %3, %cst_8 [1] : vector<8x8x768xf32> to vector<8x768xf32>
    %cst_9 = arith.constant dense<0.000000e+00> : vector<8x768xf32>
    %9 = vector.multi_reduction <add>, %3, %cst_9 [1] : vector<8x8x768xf32> to vector<8x768xf32>
    %cst_10 = arith.constant 8.000000e+00 : f32
    %10 = vector.broadcast %cst_10 : f32 to vector<8x768xf32>
    %11 = arith.divf %9, %10 : vector<8x768xf32>
    %c0_11 = arith.constant 0 : index
    %c3 = arith.constant 3 : index
    %12 = vector.load %arg5[%c0_11, %c3] : memref<32x774xf32, #tpu.memory_space<vmem>>, vector<8x768xf32>
    tpu.vector_store %arg5[%c0_11, %c3], %4 {strides = array<i32>} : memref<32x774xf32, #tpu.memory_space<vmem>>, vector<8x768xf32>,
    %c8 = arith.constant 8 : index
    %c3_12 = arith.constant 3 : index
    %13 = vector.load %arg5[%c8, %c3_12] : memref<32x774xf32, #tpu.memory_space<vmem>>, vector<8x768xf32>
    tpu.vector_store %arg5[%c8, %c3_12], %7 {strides = array<i32>} : memref<32x774xf32, #tpu.memory_space<vmem>>, vector<8x768xf32>,
    %c16 = arith.constant 16 : index
    %c3_13 = arith.constant 3 : index
    %14 = vector.load %arg5[%c16, %c3_13] : memref<32x774xf32, #tpu.memory_space<vmem>>, vector<8x768xf32>
    tpu.vector_store %arg5[%c16, %c3_13], %8 {strides = array<i32>} : memref<32x774xf32, #tpu.memory_space<vmem>>, vector<8x768xf32>,
    %c24 = arith.constant 24 : index
    %c3_14 = arith.constant 3 : index
    %15 = vector.load %arg5[%c24, %c3_14] : memref<32x774xf32, #tpu.memory_space<vmem>>, vector<8x768xf32>
    tpu.vector_store %arg5[%c24, %c3_14], %11 {strides = array<i32>} : memref<32x774xf32, #tpu.memory_space<vmem>>, vector<8x768xf32>,
    %cst_15 = arith.constant 0.000000e+00 : f32
    %16 = vector.broadcast %cst_15 : f32 to vector<16x768xf32>
    %c0_16 = arith.constant 0 : index
    %c0_17 = arith.constant 0 : index
    %c0_18 = arith.constant 0 : index
    %17 = vector.load %arg2[%c0_16, %c0_17, %c0_18] : memref<7x16x32xf32, #tpu.memory_space<vmem>>, vector<1x16x32xf32>
    %18 = vector.shape_cast %17 : vector<1x16x32xf32> to vector<16x32xf32>
    %c0_19 = arith.constant 0 : index
    %c0_20 = arith.constant 0 : index
    %19 = vector.load %arg5[%c0_19, %c0_20] : memref<32x774xf32, #tpu.memory_space<vmem>>, vector<32x768xf32>
    %cst_21 = arith.constant dense<0.000000e+00> : vector<16x768xf32>
    %20 = tpu.matmul %18, %19, %cst_21 {dimension_numbers = #tpu.dot_dimension_numbers<[1], [0], [0], [1], [0, 0, 1, 1], [], []>} : vector<16x32xf32>, vector<32x768xf32>, vector<16x768xf32> -> vector<16x768xf32>
    %21 = arith.addf %16, %20 : vector<16x768xf32>
    %c1 = arith.constant 1 : index
    %c0_22 = arith.constant 0 : index
    %c0_23 = arith.constant 0 : index
    %22 = vector.load %arg2[%c1, %c0_22, %c0_23] : memref<7x16x32xf32, #tpu.memory_space<vmem>>, vector<1x16x32xf32>
    %23 = vector.shape_cast %22 : vector<1x16x32xf32> to vector<16x32xf32>
    %c0_24 = arith.constant 0 : index
    %c1_25 = arith.constant 1 : index
    %24 = vector.load %arg5[%c0_24, %c1_25] : memref<32x774xf32, #tpu.memory_space<vmem>>, vector<32x768xf32>
    %cst_26 = arith.constant dense<0.000000e+00> : vector<16x768xf32>
    %25 = tpu.matmul %23, %24, %cst_26 {dimension_numbers = #tpu.dot_dimension_numbers<[1], [0], [0], [1], [0, 0, 1, 1], [], []>} : vector<16x32xf32>, vector<32x768xf32>, vector<16x768xf32> -> vector<16x768xf32>
    %26 = arith.addf %21, %25 : vector<16x768xf32>
    %c2 = arith.constant 2 : index
    %c0_27 = arith.constant 0 : index
    %c0_28 = arith.constant 0 : index
    %27 = vector.load %arg2[%c2, %c0_27, %c0_28] : memref<7x16x32xf32, #tpu.memory_space<vmem>>, vector<1x16x32xf32>
    %28 = vector.shape_cast %27 : vector<1x16x32xf32> to vector<16x32xf32>
    %c0_29 = arith.constant 0 : index
    %c2_30 = arith.constant 2 : index
    %29 = vector.load %arg5[%c0_29, %c2_30] : memref<32x774xf32, #tpu.memory_space<vmem>>, vector<32x768xf32>
    %cst_31 = arith.constant dense<0.000000e+00> : vector<16x768xf32>
    %30 = tpu.matmul %28, %29, %cst_31 {dimension_numbers = #tpu.dot_dimension_numbers<[1], [0], [0], [1], [0, 0, 1, 1], [], []>} : vector<16x32xf32>, vector<32x768xf32>, vector<16x768xf32> -> vector<16x768xf32>
    %31 = arith.addf %26, %30 : vector<16x768xf32>
    %c3_32 = arith.constant 3 : index
    %c0_33 = arith.constant 0 : index
    %c0_34 = arith.constant 0 : index
    %32 = vector.load %arg2[%c3_32, %c0_33, %c0_34] : memref<7x16x32xf32, #tpu.memory_space<vmem>>, vector<1x16x32xf32>
    %33 = vector.shape_cast %32 : vector<1x16x32xf32> to vector<16x32xf32>
    %c0_35 = arith.constant 0 : index
    %c3_36 = arith.constant 3 : index
    %34 = vector.load %arg5[%c0_35, %c3_36] : memref<32x774xf32, #tpu.memory_space<vmem>>, vector<32x768xf32>
    %cst_37 = arith.constant dense<0.000000e+00> : vector<16x768xf32>
    %35 = tpu.matmul %33, %34, %cst_37 {dimension_numbers = #tpu.dot_dimension_numbers<[1], [0], [0], [1], [0, 0, 1, 1], [], []>} : vector<16x32xf32>, vector<32x768xf32>, vector<16x768xf32> -> vector<16x768xf32>
    %36 = arith.addf %31, %35 : vector<16x768xf32>
    %c4 = arith.constant 4 : index
    %c0_38 = arith.constant 0 : index
    %c0_39 = arith.constant 0 : index
    %37 = vector.load %arg2[%c4, %c0_38, %c0_39] : memref<7x16x32xf32, #tpu.memory_space<vmem>>, vector<1x16x32xf32>
    %38 = vector.shape_cast %37 : vector<1x16x32xf32> to vector<16x32xf32>
    %c0_40 = arith.constant 0 : index
    %c4_41 = arith.constant 4 : index
    %39 = vector.load %arg5[%c0_40, %c4_41] : memref<32x774xf32, #tpu.memory_space<vmem>>, vector<32x768xf32>
    %cst_42 = arith.constant dense<0.000000e+00> : vector<16x768xf32>
    %40 = tpu.matmul %38, %39, %cst_42 {dimension_numbers = #tpu.dot_dimension_numbers<[1], [0], [0], [1], [0, 0, 1, 1], [], []>} : vector<16x32xf32>, vector<32x768xf32>, vector<16x768xf32> -> vector<16x768xf32>
    %41 = arith.addf %36, %40 : vector<16x768xf32>
    %c5 = arith.constant 5 : index
    %c0_43 = arith.constant 0 : index
    %c0_44 = arith.constant 0 : index
    %42 = vector.load %arg2[%c5, %c0_43, %c0_44] : memref<7x16x32xf32, #tpu.memory_space<vmem>>, vector<1x16x32xf32>
    %43 = vector.shape_cast %42 : vector<1x16x32xf32> to vector<16x32xf32>
    %c0_45 = arith.constant 0 : index
    %c5_46 = arith.constant 5 : index
    %44 = vector.load %arg5[%c0_45, %c5_46] : memref<32x774xf32, #tpu.memory_space<vmem>>, vector<32x768xf32>
    %cst_47 = arith.constant dense<0.000000e+00> : vector<16x768xf32>
    %45 = tpu.matmul %43, %44, %cst_47 {dimension_numbers = #tpu.dot_dimension_numbers<[1], [0], [0], [1], [0, 0, 1, 1], [], []>} : vector<16x32xf32>, vector<32x768xf32>, vector<16x768xf32> -> vector<16x768xf32>
    %46 = arith.addf %41, %45 : vector<16x768xf32>
    %c6 = arith.constant 6 : index
    %c0_48 = arith.constant 0 : index
    %c0_49 = arith.constant 0 : index
    %47 = vector.load %arg2[%c6, %c0_48, %c0_49] : memref<7x16x32xf32, #tpu.memory_space<vmem>>, vector<1x16x32xf32>
    %48 = vector.shape_cast %47 : vector<1x16x32xf32> to vector<16x32xf32>
    %c0_50 = arith.constant 0 : index
    %c6_51 = arith.constant 6 : index
    %49 = vector.load %arg5[%c0_50, %c6_51] : memref<32x774xf32, #tpu.memory_space<vmem>>, vector<32x768xf32>
    %cst_52 = arith.constant dense<0.000000e+00> : vector<16x768xf32>
    %50 = tpu.matmul %48, %49, %cst_52 {dimension_numbers = #tpu.dot_dimension_numbers<[1], [0], [0], [1], [0, 0, 1, 1], [], []>} : vector<16x32xf32>, vector<32x768xf32>, vector<16x768xf32> -> vector<16x768xf32>
    %51 = arith.addf %46, %50 : vector<16x768xf32>
    %52 = vector.extract_strided_slice %51 {offsets = [0, 0], sizes = [8, 768], strides = [1, 1]} : vector<16x768xf32> to vector<8x768xf32>
    %c0_53 = arith.constant 0 : index
    %53 = memref.load %arg1[%c0_53] : memref<2xf32, #tpu.memory_space<smem>>
    %54 = vector.broadcast %53 : f32 to vector<8x768xf32>
    %55 = arith.addf %52, %54 : vector<8x768xf32>
    %56 = arith.negf %55 : vector<8x768xf32>
    %57 = math.exp %56 : vector<8x768xf32>
    %cst_54 = arith.constant 1.000000e+00 : f32
    %58 = vector.broadcast %cst_54 : f32 to vector<8x768xf32>
    %59 = arith.addf %58, %57 : vector<8x768xf32>
    %60 = arith.divf %58, %59 : vector<8x768xf32>
    %61 = vector.extract_strided_slice %51 {offsets = [8, 0], sizes = [8, 768], strides = [1, 1]} : vector<16x768xf32> to vector<8x768xf32>
    %c1_55 = arith.constant 1 : index
    %62 = memref.load %arg1[%c1_55] : memref<2xf32, #tpu.memory_space<smem>>
    %63 = vector.broadcast %62 : f32 to vector<8x768xf32>
    %64 = arith.addf %61, %63 : vector<8x768xf32>
    %65 = arith.negf %64 : vector<8x768xf32>
    %66 = math.exp %65 : vector<8x768xf32>
    %cst_56 = arith.constant 1.000000e+00 : f32
    %67 = vector.broadcast %cst_56 : f32 to vector<8x768xf32>
    %68 = arith.addf %67, %66 : vector<8x768xf32>
    %69 = arith.divf %67, %68 : vector<8x768xf32>
    %70 = arith.mulf %60, %7 : vector<8x768xf32>
    %cst_57 = arith.constant dense<0.000000e+00> : vector<768xf32>
    %71 = vector.multi_reduction <add>, %70, %cst_57 [0] : vector<8x768xf32> to vector<768xf32>
    %72 = vector.shape_cast %71 : vector<768xf32> to vector<1x768xf32>
    %cst_58 = arith.constant 8.000000e+00 : f32
    %73 = vector.broadcast %cst_58 : f32 to vector<1x768xf32>
    %74 = arith.divf %72, %73 : vector<1x768xf32>
    %75 = arith.mulf %69, %11 : vector<8x768xf32>
    %cst_59 = arith.constant dense<0.000000e+00> : vector<768xf32>
    %76 = vector.multi_reduction <add>, %75, %cst_59 [0] : vector<8x768xf32> to vector<768xf32>
    %77 = vector.shape_cast %76 : vector<768xf32> to vector<1x768xf32>
    %cst_60 = arith.constant 8.000000e+00 : f32
    %78 = vector.broadcast %cst_60 : f32 to vector<1x768xf32>
    %79 = arith.divf %77, %78 : vector<1x768xf32>
    %80 = tpu.concatenate %74, %79 in 0 : vector<1x768xf32>, vector<1x768xf32> -> vector<2x768xf32>
    %c0_61 = arith.constant 0 : index
    %c0_62 = arith.constant 0 : index
    %c0_63 = arith.constant 0 : index
    %81 = vector.load %arg4[%c0_61, %c0_62, %c0_63] : memref<1x2x768xf32, #tpu.memory_space<vmem>>, vector<1x2x768xf32>
    %82 = vector.shape_cast %81 : vector<1x2x768xf32> to vector<2x768xf32>
    %83 = vector.shape_cast %80 : vector<2x768xf32> to vector<1x2x768xf32>
    tpu.vector_store %arg4[%c0_61, %c0_62, %c0_63], %83 {strides = array<i32>} : memref<1x2x768xf32, #tpu.memory_space<vmem>>, vector<1x2x768xf32>,
    return
  }
  func.func @transform_0(%arg0: i32) -> i32 {
    %c0_i32 = arith.constant 0 : i32
    %c0_i32_0 = arith.constant 0 : i32
    return %c0_i32 : i32
  }
  func.func @transform_1(%arg0: i32) -> (i32, i32, i32) {
    %c0_i32 = arith.constant 0 : i32
    %c0_i32_0 = arith.constant 0 : i32
    %c0_i32_1 = arith.constant 0 : i32
    %c0_i32_2 = arith.constant 0 : i32
    return %c0_i32, %c0_i32_0, %c0_i32_1 : i32, i32, i32
  }
  func.func @transform_2(%arg0: i32) -> (i32, i32, i32, i32) {
    %c0_i32 = arith.constant 0 : i32
    %c0_i32_0 = arith.constant 0 : i32
    %c0_i32_1 = arith.constant 0 : i32
    %c0_i32_2 = arith.constant 0 : i32
    return %arg0, %c0_i32, %c0_i32_0, %c0_i32_1 : i32, i32, i32, i32
  }
  func.func @transform_3(%arg0: i32) -> (i32, i32, i32) {
    %c0_i32 = arith.constant 0 : i32
    %c0_i32_0 = arith.constant 0 : i32
    %c0_i32_1 = arith.constant 0 : i32
    return %arg0, %c0_i32, %c0_i32_0 : i32, i32, i32
  }
}

module attributes {stable_mosaic.version = 11 : i64} {
  func.func @_classblock_kernel(%arg0: i32, %arg1: memref<1x2x768xbf16, #tpu.memory_space<vmem>>, %arg2: memref<1x768x512xbf16, #tpu.memory_space<vmem>>, %arg3: memref<1x1x512xf32, #tpu.memory_space<vmem>>, %arg4: memref<1x2x512xf32, #tpu.memory_space<vmem>>) attributes {dimension_semantics = [#tpu.dimension_semantics<parallel>], iteration_bounds = array<i64: 3>, scalar_prefetch = 0 : i64, scratch_operands = 0 : i64, tpu.core_type = #tpu.core_type<tc>, window_params = [{transform_indices = @transform_0, window_bounds = array<i64: 1, 2, 768>}, {transform_indices = @transform_1, window_bounds = array<i64: 1, 768, 512>}, {transform_indices = @transform_2, window_bounds = array<i64: 1, 1, 512>}, {transform_indices = @transform_3, window_bounds = array<i64: 1, 2, 512>}]} {
    %c0 = arith.constant 0 : index
    %c0_0 = arith.constant 0 : index
    %c0_1 = arith.constant 0 : index
    %0 = vector.load %arg1[%c0, %c0_0, %c0_1] : memref<1x2x768xbf16, #tpu.memory_space<vmem>>, vector<1x2x768xbf16>
    %1 = vector.shape_cast %0 : vector<1x2x768xbf16> to vector<2x768xbf16>
    %c0_2 = arith.constant 0 : index
    %c0_3 = arith.constant 0 : index
    %c0_4 = arith.constant 0 : index
    %2 = vector.load %arg2[%c0_2, %c0_3, %c0_4] : memref<1x768x512xbf16, #tpu.memory_space<vmem>>, vector<1x768x512xbf16>
    %3 = vector.shape_cast %2 : vector<1x768x512xbf16> to vector<768x512xbf16>
    %cst = arith.constant dense<0.000000e+00> : vector<2x512xf32>
    %4 = tpu.matmul %1, %3, %cst {dimension_numbers = #tpu.dot_dimension_numbers<[1], [0], [0], [1], [0, 0, 1, 1], [], []>} : vector<2x768xbf16>, vector<768x512xbf16>, vector<2x512xf32> -> vector<2x512xf32>
    %c0_5 = arith.constant 0 : index
    %c0_6 = arith.constant 0 : index
    %c0_7 = arith.constant 0 : index
    %5 = vector.load %arg3[%c0_5, %c0_6, %c0_7] : memref<1x1x512xf32, #tpu.memory_space<vmem>>, vector<1x1x512xf32>
    %6 = vector.shape_cast %5 : vector<1x1x512xf32> to vector<1x512xf32>
    %7 = vector.broadcast %6 : vector<1x512xf32> to vector<2x512xf32>
    %8 = arith.addf %4, %7 : vector<2x512xf32>
    %c0_8 = arith.constant 0 : index
    %c0_9 = arith.constant 0 : index
    %c0_10 = arith.constant 0 : index
    %9 = vector.load %arg4[%c0_8, %c0_9, %c0_10] : memref<1x2x512xf32, #tpu.memory_space<vmem>>, vector<1x2x512xf32>
    %10 = vector.shape_cast %9 : vector<1x2x512xf32> to vector<2x512xf32>
    %11 = vector.shape_cast %8 : vector<2x512xf32> to vector<1x2x512xf32>
    tpu.vector_store %arg4[%c0_8, %c0_9, %c0_10], %11 {strides = array<i32>} : memref<1x2x512xf32, #tpu.memory_space<vmem>>, vector<1x2x512xf32>,
    return
  }
  func.func @transform_0(%arg0: i32) -> (i32, i32, i32) {
    %c0_i32 = arith.constant 0 : i32
    %c0_i32_0 = arith.constant 0 : i32
    %c0_i32_1 = arith.constant 0 : i32
    return %arg0, %c0_i32, %c0_i32_0 : i32, i32, i32
  }
  func.func @transform_1(%arg0: i32) -> (i32, i32, i32) {
    %c0_i32 = arith.constant 0 : i32
    %c0_i32_0 = arith.constant 0 : i32
    %c0_i32_1 = arith.constant 0 : i32
    return %arg0, %c0_i32, %c0_i32_0 : i32, i32, i32
  }
  func.func @transform_2(%arg0: i32) -> (i32, i32, i32) {
    %c0_i32 = arith.constant 0 : i32
    %c0_i32_0 = arith.constant 0 : i32
    %c0_i32_1 = arith.constant 0 : i32
    return %arg0, %c0_i32, %c0_i32_0 : i32, i32, i32
  }
  func.func @transform_3(%arg0: i32) -> (i32, i32, i32) {
    %c0_i32 = arith.constant 0 : i32
    %c0_i32_0 = arith.constant 0 : i32
    %c0_i32_1 = arith.constant 0 : i32
    return %arg0, %c0_i32, %c0_i32_0 : i32, i32, i32
  }
}

</mosaic_0001>

<bundles_post_ra>
// kernel: build_convnext_forward.3
= control target key start
LH: loop header
LB: loop body
LE: loop exit
PB: predicated region body
PF: predicated region fallthrough
CT: control target
= control target key end

     0   :  { %8 = vsyncpa [#allocation3], 0  ;;  %s3017_s0 = inlined_call_operand.vmem [shape: bf16[3,2,768], index: 0, kind: input, shape index: {}]   ;;  %s3018_s1 = inlined_call_operand.hbm [shape: bf16[3,768,512], index: 1, kind: input, shape index: {}]   ;;  %s3019_s2 = inlined_call_operand.hbm [shape: f32[3,1,512], index: 2, kind: input, shape index: {}]   ;;  %s3020_s3 = inlined_call_operand.hbm [shape: f32[3,2,512], index: 3, kind: output, shape index: {}]  }
   0x1   :  { %10 = vsyncpa [#allocation3 + $0x1], 0 }
   0x2   :  { %11 = vsyncpa [#allocation6], 0 }
   0x3   :  { %13 = vsyncpa [#allocation6 + $0x1], 0 }
   0x4   :  { %14 = vsyncpa [#allocation4], 0 }
   0x5   :  { %16 = vsyncpa [#allocation4 + $0x1], 0  ;;  %s2598_s12 = smov 0   ;;  %s2600_s13 = smov 0  }
   0x6   :  { %s2602_s14 = smov 0   ;;  %s2604_s15 = smov 0  }
   0x7 LB: > { %s2619_s16 = sadd.s32 4294967295, %s2569_s15   ;;  %s1862_s17 = sadd.s32 4294967294, %s2569_s15   ;;  %s2569_s15 = sphi %s2604_s15, %s3035_s15   ;;  %s2565_s14 = sphi %s2602_s14, %s3034_s14   ;;  %s2561_s13 = sphi %s2600_s13, %s3033_s13   ;;  %s2557_s12 = sphi %s2598_s12, %s3032_s12  }
   0x8   : > { %s2623_s18 = sadd.s32 1, %s2569_s15   ;;  %s55_s19 = sadd.s32 1, %s2565_s14 }
   0x9   : > { %s52_s20 = ssub.s32 %s2569_s15, %s2623_s18  ;;  %p62_p0 = scmp.ne.s32.totalorder %s2565_s14, %s2561_s13 }
   0xa   : > { %p53_p1 = scmp.eq.s32.totalorder %s52_s20, 0  ;;  %p63_p2 = scmp.eq.s32.totalorder %s2569_s15, 0 }
   0xb   : > { %p68_p3 = scmp.ne.s32.totalorder %s2561_s13, %s2557_s12  ;;  %p69_p4 = scmp.eq.s32.totalorder %s2619_s16, 0 }
   0xc   : > { %s2635_s21 = scalar_select %p53_p1, %s2565_s14, %s55_s19  }
   0xd   : > { %p64_p5 = por %p63_p2, %p62_p0  ;;  %p2637_p6 = por %p69_p4, %p68_p3 }
   0xe   : > { %p118_p7 = scmp.eq.s32.totalorder %s2619_s16, 2  ;;  %p124_p8 = scmp.eq.s32.totalorder %s1862_s17, 2 }
   0xf   : > { %s3023_s22 = scalar_select %p2637_p6, 1, 0 }
  0x10   : > { %p2112_p9 = scmp.lt.s32.totalorder %s2569_s15, 3  ;;  %p2643_p10 = por %p118_p7, %p62_p0 }
  0x11   : > { %p2647_p11 = por %p124_p8, %p68_p3  ;;  %s2652_s25 = sand.u32 1, %s2565_s14  }
  0x12   : > { %s3024_s23 = scalar_select %p2643_p10, 1, 0 }
  0x13   : > { %s3025_s24 = scalar_select %p2647_p11, 1, 0 }
  0x14   : > { %s2092_s26 = smul.u32 24576, %s2569_s15  ;;  %p2661_p12 = pnand %p2112_p9, %p64_p5 }
  0x15   : > { %s2091_s27 = smul.u32 1536, %s2652_s25  ;;  %s152_s7 = scalar_lea.sflag [#allocation3], %s2652_s25 }
  0x16   : > { %s2659_s30 = scalar_lea.hbm %s3018_s1, %s2092_s26  ;;  %p2441_p0 = pneg %p2661_p12 }
  0x17   : > { %s155_s5 = scalar_lea.vmem [#allocation2], %s2091_s27  ;;  %s2439_s8 = scalar_lea.hbm %s2659_s30, 24576 }
  0x18   : > { %s162_s6 = sshll.u32 %s155_s5, 4  ;;  %p2440_p13 = scmp.ne.s32.totalorder %s2659_s30, %s2439_s8  ;;  %s2665_s6 = int_to_ptr.vmem [resolvable:$true] %s162_s6 }
  0x19   : > { %s2444_s11 = scalar_lea.hbm %s3018_s1, 73728  ;;  %p2445_p3 = scmp.lt.u32.totalorder %s2659_s30, %s3018_s1 }
  0x1a   : > { %p2442_p1 = pnand %p2441_p0, %p2440_p13  ;;  %p2446_p4 = scmp.lt.u32.totalorder %s2444_s11, %s2439_s8 }
  0x1b   : > { %p2448_p7 = scmp.lt.u32.totalorder %s2439_s8, %s2659_s30 }
  0x1c   : > { %p2443_p2 = pneg %p2442_p1  ;;  %p2447_p5 = por %p2446_p4, %p2445_p3 }
  0x1e   : > { %p2449_p8 = por %p2448_p7, %p2447_p5 }
  0x20   : > { %p2450_p9 = pnand %p2449_p8, %p2443_p2 }
  0x22   : > { %2453 = shalt.err (!%p2450_p9)
}
  0x23   : > { %s2454_s20 = scalar_lea.vmem %s2665_s6, 24576  ;;  %s2571_s26 = smov [#allocation2]  }
  0x24   : > { %p2455_p13 = scmp.ne.s32.totalorder %s2665_s6, %s2454_s20  ;;  %s2459_s27 = sshll.u32 %s2571_s26, 4  ;;  %s2460_s27 = int_to_ptr.vmem [resolvable:$false] %s2459_s27 }
  0x25   : > { %s2461_s28 = scalar_lea.vmem %s2460_s27, 49152  ;;  %p2462_p10 = scmp.lt.s32.totalorder %s2665_s6, %s2460_s27 }
  0x26   : > { %p2457_p1 = pnand %p2455_p13, %p2441_p0  ;;  %p2463_p3 = scmp.lt.s32.totalorder %s2461_s28, %s2454_s20 }
  0x28   : > { %p2458_p11 = pneg %p2457_p1  ;;  %p2464_p4 = por %p2463_p3, %p2462_p10 }
  0x2a   : > { %p2465_p5 = pnand %p2464_p4, %p2458_p11 }
  0x2c   : > { %2468 = shalt.err (!%p2465_p5)
}
  0x2d   : > { %s2572_s29 = smov 256   ;;  %s2573_s5 = smov 16  }
  0x2e   : > { %2104 = dma.hbm_to_vmem [thread:$0]  (!%p2661_p12), %s2659_s30, 24576, %s2665_s6, %s152_s7, %s2572_s29, %s2572_s29, %s2573_s5  }
  0x2f   : > { %p1869_p2 = scmp.ge.s32.totalorder %s2569_s15, 1  ;;  %p189_p7 = scmp.lt.s32.totalorder %s2569_s15, 4 }
  0x30   : > { %s1866_s8 = sshll.u32 %s2652_s25, 2  ;;  %s2069_s10 = sshll.u32 %s2569_s15, 6 }
  0x31   : > { %p2698_p10 = pnand %p1869_p2, %p189_p7  ;;  %s176_s11 = scalar_lea.vmem [#allocation5], %s1866_s8 }
  0x32   : > { %s184_s17 = sshll.u32 %s176_s11, 4  ;;  %s2706_s26 = scalar_lea.hbm %s3019_s2, %s2069_s10  ;;  %s185_s17 = int_to_ptr.vmem [resolvable:$true] %s184_s17 }
  0x33   : > { %s3027_s9 = scalar_select %p2698_p10, 1, 0 }
  0x34   : > { %s173_s30 = scalar_lea.sflag [#allocation6], %s2652_s25  ;;  %s2469_s6 = scalar_lea.hbm %s2706_s26, 64 }
  0x35   : > { %p2470_p11 = scmp.ne.s32.totalorder %s2706_s26, %s2469_s6  ;;  %s2474_s28 = scalar_lea.hbm %s3019_s2, 192 }
  0x36   : > { %p2475_p13 = scmp.lt.u32.totalorder %s2706_s26, %s3019_s2  ;;  %p2476_p1 = scmp.lt.u32.totalorder %s2474_s28, %s2469_s6 }
  0x37   : > { %p2472_p8 = pnand %p2470_p11, %p2441_p0  ;;  %p2478_p4 = scmp.lt.u32.totalorder %s2469_s6, %s2706_s26 }
  0x38   : > { %p2477_p3 = por %p2476_p1, %p2475_p13 }
  0x39   : > { %p2473_p9 = pneg %p2472_p8 }
  0x3a   : > { %p2479_p5 = por %p2478_p4, %p2477_p3 }
  0x3c   : > { %p2480_p2 = pnand %p2479_p5, %p2473_p9 }
  0x3e   : > { %2483 = shalt.err (!%p2480_p2)
}
  0x3f   : > { %s2484_s25 = scalar_lea.vmem %s185_s17, 64  ;;  %s2574_s8 = smov [#allocation5]  }
  0x40   : > { %p2485_p7 = scmp.ne.s32.totalorder %s185_s17, %s2484_s25  ;;  %s2489_s10 = sshll.u32 %s2574_s8, 4  ;;  %s2490_s10 = int_to_ptr.vmem [resolvable:$false] %s2489_s10 }
  0x41   : > { %s2491_s11 = scalar_lea.vmem %s2490_s10, 128  ;;  %p2492_p6 = scmp.lt.s32.totalorder %s185_s17, %s2490_s10 }
  0x42   : > { %p2487_p11 = pnand %p2485_p7, %p2441_p0  ;;  %p2493_p10 = scmp.lt.s32.totalorder %s2491_s11, %s2484_s25 }
  0x44   : > { %p2488_p8 = pneg %p2487_p11  ;;  %p2494_p1 = por %p2493_p10, %p2492_p6 }
  0x46   : > { %p2495_p13 = pnand %p2494_p1, %p2488_p8 }
  0x48   : > { %2498 = shalt.err (!%p2495_p13)
}
  0x49   : > { %2107 = dma.hbm_to_vmem [thread:$0]  (!%p2661_p12), %s2706_s26, 64, %s185_s17, %s173_s30  }
  0x4a   : > { %p3028_p9 = scmp.ne.s32.totalorder %s3027_s9, 0 }
  0x4b   : > { %s2731_s19 = sand.u32 (!%p3028_p9), 1, %s2561_s13   ;;  %p3029_p6 = scmp.ne.s32.totalorder (!%p3028_p9), %s3023_s22, 0 }
  0x4c   : > { %193 = sbr.rel (%p3028_p9) target bundleno = 515 (0x203), region = 32  ;;  %s196_s6 = scalar_lea.sflag (!%p3028_p9), [#allocation3], %s2731_s19 }
  0x4d   : > { %s2093_s20 = smul.u32 (!%p3028_p9), 1536, %s2731_s19 }
  0x4f   : > { %s2735_s7 = scalar_lea.vmem (!%p3028_p9), [#allocation2], %s2093_s20 }
  0x53   : > { %2544 = dma.done.wait (%p3029_p6), %s196_s6, 24576  }
  0x54   : > { %2546 = vsyncadd (%p3029_p6), %s196_s6, 4294942720  ;;  %s1870_s4 = sshll.u32 %s2731_s19, 2  ;;  %s205_s9 = scalar_lea.sflag [#allocation6], %s2731_s19 }
  0x55   : > { %s2743_s17 = scalar_lea.vmem [#allocation5], %s1870_s4 }
  0x56   : > { %2548 = dma.done.wait (%p3029_p6), %s205_s9, 64  }
  0x57   : > { %2550 = vsyncadd (%p3029_p6), %s205_s9, 4294967232  ;;  %v2150_v0 = vld [vmem:[%s2735_s7 + $0x4] ss:$16 sps:$4 sm:$0xff]   ;;  %v2152_v1 = vld [vmem:[%s2735_s7 + $0xc] ss:$16 sps:$4 sm:$0xff]   ;;  %p240_p12 = scmp.lt.s32.totalorder %s2619_s16, 2  ;;  %v439_v36 = vlaneseq }
  0x58   : > { %1473 = vmatprep.subr.bf16.mxu0 %v2150_v0  ;;  %v2154_v2 = vld [vmem:[%s2735_s7] ss:$16 sps:$4 sm:$0xff]   ;;  %v2155_v3 = vld [vmem:[%s2735_s7 + $0x8] ss:$16 sps:$4 sm:$0xff]   ;;  %1596 = vmatprep.subr.bf16.mxu1 %v2152_v1  ;;  %v2156_v4 = vld [vmem:[%s2735_s7 + $0x24] ss:$16 sps:$4 sm:$0xff]  }
  0x59   : > { %1474 = vmatpush1.bf16.msra.mxu0 %v2154_v2  ;;  %1597 = vmatpush1.bf16.msra.mxu1 %v2155_v3  ;;  %v2158_v5 = vld [vmem:[%s2735_s7 + $0x2c] ss:$16 sps:$4 sm:$0xff]   ;;  %v2160_v6 = vld [vmem:[%s2735_s7 + $0x20] ss:$16 sps:$4 sm:$0xff]   ;;  %v2161_v7 = vld [vmem:[%s2735_s7 + $0x28] ss:$16 sps:$4 sm:$0xff]  }
  0x5a   : > { %1475 = vmatprep.subr.bf16.mxu0 %v2156_v4  ;;  %1598 = vmatprep.subr.bf16.mxu1 %v2158_v5  ;;  %v2162_v8 = vld [vmem:[%s2735_s7 + $0x44] ss:$16 sps:$4 sm:$0xff]   ;;  %v2164_v9 = vld [vmem:[%s2735_s7 + $0x4c] ss:$16 sps:$4 sm:$0xff]   ;;  %v2166_v10 = vld [vmem:[%s2735_s7 + $0x40] ss:$16 sps:$4 sm:$0xff]  }
  0x5b   : > { %v2167_v11 = vld [vmem:[%s2735_s7 + $0x48] ss:$16 sps:$4 sm:$0xff]   ;;  %v2168_v12 = vld [vmem:[%s2735_s7 + $0x64] ss:$16 sps:$4 sm:$0xff]   ;;  %v2170_v13 = vld [vmem:[%s2735_s7 + $0x6c] ss:$16 sps:$4 sm:$0xff]  }
  0x5c   : > { %v2172_v14 = vld [vmem:[%s2735_s7 + $0x60] ss:$16 sps:$4 sm:$0xff]   ;;  %v2173_v15 = vld [vmem:[%s2735_s7 + $0x68] ss:$16 sps:$4 sm:$0xff]   ;;  %v2174_v16 = vld [vmem:[%s2735_s7 + $0x84] ss:$16 sps:$4 sm:$0xff]  }
  0x5d   : > { %1476 = vmatpush1.bf16.msra.mxu0 %v2160_v6  ;;  %1599 = vmatpush1.bf16.msra.mxu1 %v2161_v7  ;;  %v2176_v17 = vld [vmem:[%s2735_s7 + $0x8c] ss:$16 sps:$4 sm:$0xff]   ;;  %v2178_v18 = vld [vmem:[%s2735_s7 + $0x80] ss:$16 sps:$4 sm:$0xff]   ;;  %v2179_v19 = vld [vmem:[%s2735_s7 + $0x88] ss:$16 sps:$4 sm:$0xff]  }
  0x5e   : > { %1477 = vmatprep.subr.bf16.mxu0 %v2162_v8  ;;  %1600 = vmatprep.subr.bf16.mxu1 %v2164_v9  ;;  %v2180_v20 = vld [vmem:[%s2735_s7 + $0xa4] ss:$16 sps:$4 sm:$0xff]   ;;  %v2182_v21 = vld [vmem:[%s2735_s7 + $0xac] ss:$16 sps:$4 sm:$0xff]   ;;  %v2184_v22 = vld [vmem:[%s2735_s7 + $0xa0] ss:$16 sps:$4 sm:$0xff]  }
  0x5f   : > { %v2185_v23 = vld [vmem:[%s2735_s7 + $0xa8] ss:$16 sps:$4 sm:$0xff]   ;;  %v2186_v24 = vld [vmem:[%s2735_s7 + $0xc4] ss:$16 sps:$4 sm:$0xff]   ;;  %v2188_v25 = vld [vmem:[%s2735_s7 + $0xcc] ss:$16 sps:$4 sm:$0xff]  }
  0x60   : > { %v2190_v26 = vld [vmem:[%s2735_s7 + $0xc0] ss:$16 sps:$4 sm:$0xff]   ;;  %v2191_v27 = vld [vmem:[%s2735_s7 + $0xc8] ss:$16 sps:$4 sm:$0xff]   ;;  %v2192_v28 = vld [vmem:[%s2735_s7 + $0xe4] ss:$16 sps:$4 sm:$0xff]  }
  0x61   : > { %1478 = vmatpush1.bf16.msra.mxu0 %v2166_v10  ;;  %1601 = vmatpush1.bf16.msra.mxu1 %v2167_v11  ;;  %v2194_v29 = vld [vmem:[%s2735_s7 + $0xec] ss:$16 sps:$4 sm:$0xff]   ;;  %v2196_v30 = vld [vmem:[%s2735_s7 + $0xe0] ss:$16 sps:$4 sm:$0xff]   ;;  %v2197_v31 = vld [vmem:[%s2735_s7 + $0xe8] ss:$16 sps:$4 sm:$0xff]  }
  0x62   : > { %1479 = vmatprep.subr.bf16.mxu0 %v2168_v12  ;;  %1602 = vmatprep.subr.bf16.mxu1 %v2170_v13  ;;  %v2198_v32 = vld [vmem:[%s2735_s7 + $0x104] ss:$16 sps:$4 sm:$0xff]   ;;  %v2200_v33 = vld [vmem:[%s2735_s7 + $0x10c] ss:$16 sps:$4 sm:$0xff]   ;;  %v2202_v34 = vld [vmem:[%s2735_s7 + $0x100] ss:$16 sps:$4 sm:$0xff]  }
  0x63   : > { %v2203_v35 = vld [vmem:[%s2735_s7 + $0x108] ss:$16 sps:$4 sm:$0xff]   ;;  %s241_s22 = scalar_select %p240_p12, %s2619_s16, 2  ;;  %v2575_v37 = vmov 1966171168   ;;  %v2790_v42 = vshrl.u32 %v439_v36, 7 }
  0x64   : > { %v462_v38 = vunpack.c.l.s4 %v2575_v37  ;;  %v2204_v39 = vld [vmem:[%s2735_s7 + $0x124] ss:$16 sps:$4 sm:$0xff]   ;;  %v2206_v40 = vld [vmem:[%s2735_s7 + $0x12c] ss:$16 sps:$4 sm:$0xff]   ;;  %v2208_v41 = vld [vmem:[%s2735_s7 + $0x120] ss:$16 sps:$4 sm:$0xff]  }
  0x65   : > { %1480 = vmatpush1.bf16.msra.mxu0 %v2172_v14  ;;  %1603 = vmatpush1.bf16.msra.mxu1 %v2173_v15  ;;  %s2094_s26 = smul.u32 6, %s241_s22  ;;  %v2209_v44 = vld [vmem:[%s2735_s7 + $0x128] ss:$16 sps:$4 sm:$0xff]   ;;  %v2210_v45 = vld [vmem:[%s2735_s7 + $0x144] ss:$16 sps:$4 sm:$0xff]   ;;  %s1871_s29 = sshll.u32 %s2731_s19, 3 }
  0x66   : > { %1481 = vmatprep.subr.bf16.mxu0 %v2174_v16  ;;  %1604 = vmatprep.subr.bf16.mxu1 %v2176_v17  ;;  %v463_v43 = vunpack.c.0.s8 %v462_v38  ;;  %v2212_v46 = vld [vmem:[%s2735_s7 + $0x14c] ss:$16 sps:$4 sm:$0xff]   ;;  %v2214_v47 = vld [vmem:[%s2735_s7 + $0x140] ss:$16 sps:$4 sm:$0xff]   ;;  %v2215_v48 = vld [vmem:[%s2735_s7 + $0x148] ss:$16 sps:$4 sm:$0xff]  }
  0x67   : > { %s243_s28 = scalar_lea.vmem %s3017_s0, %s2094_s26  ;;  %v2216_v50 = vld [vmem:[%s2735_s7 + $0x164] ss:$16 sps:$4 sm:$0xff]   ;;  %v2218_v51 = vld [vmem:[%s2735_s7 + $0x16c] ss:$16 sps:$4 sm:$0xff]   ;;  %v2220_v53 = vld [vmem:[%s2735_s7 + $0x160] ss:$16 sps:$4 sm:$0xff]  }
  0x68   : > { %v466_v49 = vsub.s32 %v463_v43, %v2790_v42  ;;  %v244_v52 = vld [vmem:[%s243_s28] sm:$0x3f]  ;;  %v2221_v55 = vld [vmem:[%s2735_s7 + $0x168] ss:$16 sps:$4 sm:$0xff]   ;;  %v2224_v57 = vld [vmem:[%s2735_s7 + $0x18c] ss:$16 sps:$4 sm:$0xff]  }
  0x69   : > { %1482 = vmatpush1.bf16.msra.mxu0 %v2178_v18  ;;  %1605 = vmatpush1.bf16.msra.mxu1 %v2179_v19  ;;  %v2222_v56 = vld [vmem:[%s2735_s7 + $0x184] ss:$16 sps:$4 sm:$0xff]   ;;  %v2226_v59 = vld [vmem:[%s2735_s7 + $0x180] ss:$16 sps:$4 sm:$0xff]   ;;  %v2227_v61 = vld [vmem:[%s2735_s7 + $0x188] ss:$16 sps:$4 sm:$0xff]   ;;  %v460_v8 = vcombine.high %v244_v52, %v244_v52 }
  0x6a   : > { %1483 = vmatprep.subr.bf16.mxu0 %v2180_v20  ;;  %1606 = vmatprep.subr.bf16.mxu1 %v2182_v21  ;;  %v467_v54 = vrot.slane %v244_v52, %v466_v49  ;;  %v2228_v62 = vld [vmem:[%s2735_s7 + $0x1a4] ss:$16 sps:$4 sm:$0xff]   ;;  %v2230_v63 = vld [vmem:[%s2735_s7 + $0x1ac] ss:$16 sps:$4 sm:$0xff]   ;;  %v2232_v0 = vld [vmem:[%s2735_s7 + $0x1a0] ss:$16 sps:$4 sm:$0xff]  }
  0x6b   : > { %v2233_v1 = vld [vmem:[%s2735_s7 + $0x1a8] ss:$16 sps:$4 sm:$0xff]   ;;  %v2234_v2 = vld [vmem:[%s2735_s7 + $0x1c4] ss:$16 sps:$4 sm:$0xff]   ;;  %v2236_v3 = vld [vmem:[%s2735_s7 + $0x1cc] ss:$16 sps:$4 sm:$0xff]   ;;  %v474_v11 = vrot.slane %v460_v8, %v466_v49 }
  0x6c   : > { %v475_v58 = vcombine.high %v467_v54, %v467_v54  ;;  %v2238_v4 = vld [vmem:[%s2735_s7 + $0x1c0] ss:$16 sps:$4 sm:$0xff]   ;;  %v2239_v5 = vld [vmem:[%s2735_s7 + $0x1c8] ss:$16 sps:$4 sm:$0xff]   ;;  %v2240_v6 = vld [vmem:[%s2735_s7 + $0x1e4] ss:$16 sps:$4 sm:$0xff]   ;;  %v2824_v16 = vrot.slane %v467_v54, %v466_v49 }
  0x6d   : > { %1484 = vmatpush1.bf16.msra.mxu0 %v2184_v22  ;;  %1607 = vmatpush1.bf16.msra.mxu1 %v2185_v23  ;;  %v2242_v7 = vld [vmem:[%s2735_s7 + $0x1ec] ss:$16 sps:$4 sm:$0xff]   ;;  %v2244_v9 = vld [vmem:[%s2735_s7 + $0x1e0] ss:$16 sps:$4 sm:$0xff]   ;;  %v2245_v10 = vld [vmem:[%s2735_s7 + $0x1e8] ss:$16 sps:$4 sm:$0xff]   ;;  %v476_v14 = vcombine.high %v474_v11, %v474_v11  ;;  %v2829_v19 = vrot.slane %v474_v11, %v466_v49 }
  0x6e   : > { %1485 = vmatprep.subr.bf16.mxu0 %v2186_v24  ;;  %1608 = vmatprep.subr.bf16.mxu1 %v2188_v25  ;;  %v497_v60 = vrot.slane %v475_v58, %v466_v49  ;;  %v2248_v12 = vld [vmem:[%s2735_s7 + $0x204] ss:$16 sps:$4 sm:$0xff]   ;;  %v2251_v13 = vld [vmem:[%s2735_s7 + $0x20c] ss:$16 sps:$4 sm:$0xff]   ;;  %v2246_v15 = vld [vmem:[%s2735_s7 + $0x200] ss:$16 sps:$4 sm:$0xff]  }
  0x6f   : > { %v2249_v17 = vld [vmem:[%s2735_s7 + $0x208] ss:$16 sps:$4 sm:$0xff]   ;;  %v2827_v18 = vrot.slane %v476_v14, %v466_v49  ;;  %v2254_v20 = vld [vmem:[%s2735_s7 + $0x224] ss:$16 sps:$4 sm:$0xff]   ;;  %v2257_v21 = vld [vmem:[%s2735_s7 + $0x22c] ss:$16 sps:$4 sm:$0xff]  }
  0x70   : > { %1505 = vmatprep.mubr.bf16.mxu0 %v497_v60  ;;  %1628 = vmatprep.mubr.bf16.mxu1 %v497_v60  ;;  %v506_v22 = vcombine.high %v497_v60, %v497_v60  ;;  %v2252_v23 = vld [vmem:[%s2735_s7 + $0x220] ss:$16 sps:$4 sm:$0xff]   ;;  %v2255_v24 = vld [vmem:[%s2735_s7 + $0x228] ss:$16 sps:$4 sm:$0xff]   ;;  %v2260_v25 = vld [vmem:[%s2735_s7 + $0x244] ss:$16 sps:$4 sm:$0xff]  }
  0x71   : > { %1486 = vmatpush1.bf16.msra.mxu0 %v2190_v26  ;;  %1609 = vmatpush1.bf16.msra.mxu1 %v2191_v27  ;;  %v2263_v26 = vld [vmem:[%s2735_s7 + $0x24c] ss:$16 sps:$4 sm:$0xff]   ;;  %v2258_v27 = vld [vmem:[%s2735_s7 + $0x240] ss:$16 sps:$4 sm:$0xff]   ;;  %v2273_v36 = vld [vmem:[%s2735_s7 + $0x288] ss:$16 sps:$4 sm:$0xff]  }
  0x72   : > { %1487 = vmatprep.subr.bf16.mxu0 %v2192_v28  ;;  %1610 = vmatprep.subr.bf16.mxu1 %v2194_v29  ;;  %v2261_v28 = vld [vmem:[%s2735_s7 + $0x248] ss:$16 sps:$4 sm:$0xff]   ;;  %v2266_v29 = vld [vmem:[%s2735_s7 + $0x264] ss:$16 sps:$4 sm:$0xff]   ;;  %v2281_v38 = vld [vmem:[%s2735_s7 + $0x2ac] ss:$16 sps:$4 sm:$0xff]  }
  0x73   : > { %v2278_v37 = vld [vmem:[%s2735_s7 + $0x2a4] ss:$16 sps:$4 sm:$0xff]   ;;  %v2287_v43 = vld [vmem:[%s2735_s7 + $0x2cc] ss:$16 sps:$4 sm:$0xff]   ;;  %v2291_v49 = vld [vmem:[%s2735_s7 + $0x2e8] ss:$16 sps:$4 sm:$0xff]  }
  0x74   : > { %v2294_v52 = vld [vmem:[%s2735_s7 + $0x300] ss:$16 sps:$4 sm:$0xff]   ;;  %v2302_v54 = vld [vmem:[%s2735_s7 + $0x324] ss:$16 sps:$4 sm:$0xff]   ;;  %v2335_v11 = vld [vmem:[%s2735_s7 + $0x3cc] ss:$16 sps:$4 sm:$0xff]  }
  0x75   : > { %1488 = vmatpush1.bf16.msra.mxu0 %v2196_v30  ;;  %1611 = vmatpush1.bf16.msra.mxu1 %v2197_v31  ;;  %v2269_v30 = vld [vmem:[%s2735_s7 + $0x26c] ss:$16 sps:$4 sm:$0xff]   ;;  %v2264_v31 = vld [vmem:[%s2735_s7 + $0x260] ss:$16 sps:$4 sm:$0xff]   ;;  %v2308_v58 = vld [vmem:[%s2735_s7 + $0x344] ss:$16 sps:$4 sm:$0xff]  }
  0x76   : > { %1489 = vmatprep.subr.bf16.mxu0 %v2198_v32  ;;  %1612 = vmatprep.subr.bf16.mxu1 %v2200_v33  ;;  %v2267_v32 = vld [vmem:[%s2735_s7 + $0x268] ss:$16 sps:$4 sm:$0xff]   ;;  %v2272_v33 = vld [vmem:[%s2735_s7 + $0x284] ss:$16 sps:$4 sm:$0xff]   ;;  %v2306_v60 = vld [vmem:[%s2735_s7 + $0x340] ss:$16 sps:$4 sm:$0xff]  }
  0x77   : > { %v2324_v8 = vld [vmem:[%s2735_s7 + $0x3a0] ss:$16 sps:$4 sm:$0xff]   ;;  %v2338_v14 = vld [vmem:[%s2735_s7 + $0x3e4] ss:$16 sps:$4 sm:$0xff]   ;;  %s2070_s5 = sshll.u32 %s2619_s16, 7  ;;  %s239_s25 = scalar_lea.vmem [#allocation7], %s1871_s29 }
  0x78   : > { %s1757_s8 = sshll.u32 %s239_s25, 4  ;;  %s2974_s20 = scalar_lea.hbm %s3020_s3, %s2070_s5  ;;  %s2976_s8 = int_to_ptr.vmem [resolvable:$true] %s1757_s8 }
  0x79   : > { %1490 = vmatpush1.bf16.msra.mxu0 %v2202_v34  ;;  %1613 = vmatpush1.bf16.msra.mxu1 %v2203_v35  ;;  %v2275_v34 = vld [vmem:[%s2735_s7 + $0x28c] ss:$16 sps:$4 sm:$0xff]   ;;  %v2270_v35 = vld [vmem:[%s2735_s7 + $0x280] ss:$16 sps:$4 sm:$0xff]   ;;  %s1743_s6 = scalar_lea.sflag [#allocation4], %s2731_s19  ;;  %p3030_p10 = scmp.ne.s32.totalorder %s3024_s23, 0 }
  0x7a   : > { %1491 = vmatprep.subr.bf16.mxu0 %v2204_v39  ;;  %1614 = vmatprep.subr.bf16.mxu1 %v2206_v40  ;;  %v2276_v39 = vld [vmem:[%s2735_s7 + $0x2a0] ss:$16 sps:$4 sm:$0xff]   ;;  %v2279_v40 = vld [vmem:[%s2735_s7 + $0x2a8] ss:$16 sps:$4 sm:$0xff]   ;;  %s2577_s16 = smov [#allocation7]  }
  0x7b   : > { %s2503_s4 = sshll.u32 %s2577_s16, 4  ;;  %s2504_s4 = int_to_ptr.vmem [resolvable:$false] %s2503_s4 }
  0x7c   : > { %s2505_s9 = scalar_lea.vmem %s2504_s4, 256  ;;  %p2506_p5 = scmp.lt.s32.totalorder %s2976_s8, %s2504_s4 }
  0x7d   : > { %1492 = vmatpush1.bf16.msra.mxu0 %v2208_v41  ;;  %1615 = vmatpush1.bf16.msra.mxu1 %v2209_v44  ;;  %v2284_v41 = vld [vmem:[%s2735_s7 + $0x2c4] ss:$16 sps:$4 sm:$0xff]   ;;  %v2282_v44 = vld [vmem:[%s2735_s7 + $0x2c0] ss:$16 sps:$4 sm:$0xff]  }
  0x7e   : > { %1493 = vmatprep.subr.bf16.mxu0 %v2210_v45  ;;  %1616 = vmatprep.subr.bf16.mxu1 %v2212_v46  ;;  %v2285_v45 = vld [vmem:[%s2735_s7 + $0x2c8] ss:$16 sps:$4 sm:$0xff]   ;;  %v2290_v46 = vld [vmem:[%s2735_s7 + $0x2e4] ss:$16 sps:$4 sm:$0xff]  }
  0x81   : > { %1494 = vmatpush1.bf16.msra.mxu0 %v2214_v47  ;;  %1617 = vmatpush1.bf16.msra.mxu1 %v2215_v48  ;;  %v2293_v47 = vld [vmem:[%s2735_s7 + $0x2ec] ss:$16 sps:$4 sm:$0xff]   ;;  %v2288_v48 = vld [vmem:[%s2735_s7 + $0x2e0] ss:$16 sps:$4 sm:$0xff]  }
  0x82   : > { %1495 = vmatprep.subr.bf16.mxu0 %v2216_v50  ;;  %1618 = vmatprep.subr.bf16.mxu1 %v2218_v51  ;;  %v2296_v50 = vld [vmem:[%s2735_s7 + $0x304] ss:$16 sps:$4 sm:$0xff]   ;;  %v2299_v51 = vld [vmem:[%s2735_s7 + $0x30c] ss:$16 sps:$4 sm:$0xff]  }
  0x85   : > { %1496 = vmatpush1.bf16.msra.mxu0 %v2220_v53  ;;  %1619 = vmatpush1.bf16.msra.mxu1 %v2221_v55  ;;  %v2297_v53 = vld [vmem:[%s2735_s7 + $0x308] ss:$16 sps:$4 sm:$0xff]   ;;  %v2305_v55 = vld [vmem:[%s2735_s7 + $0x32c] ss:$16 sps:$4 sm:$0xff]  }
  0x86   : > { %1497 = vmatprep.subr.bf16.mxu0 %v2222_v56  ;;  %1620 = vmatprep.subr.bf16.mxu1 %v2224_v57  ;;  %v2300_v56 = vld [vmem:[%s2735_s7 + $0x320] ss:$16 sps:$4 sm:$0xff]   ;;  %v2303_v57 = vld [vmem:[%s2735_s7 + $0x328] ss:$16 sps:$4 sm:$0xff]  }
  0x89   : > { %1498 = vmatpush1.bf16.msra.mxu0 %v2226_v59  ;;  %1621 = vmatpush1.bf16.msra.mxu1 %v2227_v61  ;;  %v2311_v59 = vld [vmem:[%s2735_s7 + $0x34c] ss:$16 sps:$4 sm:$0xff]   ;;  %v2309_v61 = vld [vmem:[%s2735_s7 + $0x348] ss:$16 sps:$4 sm:$0xff]  }
  0x8a   : > { %1499 = vmatprep.subr.bf16.mxu0 %v2228_v62  ;;  %1622 = vmatprep.subr.bf16.mxu1 %v2230_v63  ;;  %v2314_v62 = vld [vmem:[%s2735_s7 + $0x364] ss:$16 sps:$4 sm:$0xff]   ;;  %v2317_v63 = vld [vmem:[%s2735_s7 + $0x36c] ss:$16 sps:$4 sm:$0xff]  }
  0x8d   : > { %1500 = vmatpush1.bf16.msra.mxu0 %v2232_v0  ;;  %1623 = vmatpush1.bf16.msra.mxu1 %v2233_v1  ;;  %v2312_v0 = vld [vmem:[%s2735_s7 + $0x360] ss:$16 sps:$4 sm:$0xff]   ;;  %v2315_v1 = vld [vmem:[%s2735_s7 + $0x368] ss:$16 sps:$4 sm:$0xff]  }
  0x8e   : > { %1501 = vmatprep.subr.bf16.mxu0 %v2234_v2  ;;  %1624 = vmatprep.subr.bf16.mxu1 %v2236_v3  ;;  %v2320_v2 = vld [vmem:[%s2735_s7 + $0x384] ss:$16 sps:$4 sm:$0xff]   ;;  %v2323_v3 = vld [vmem:[%s2735_s7 + $0x38c] ss:$16 sps:$4 sm:$0xff]  }
  0x91   : > { %1502 = vmatpush1.bf16.msra.mxu0 %v2238_v4  ;;  %1625 = vmatpush1.bf16.msra.mxu1 %v2239_v5  ;;  %v2318_v4 = vld [vmem:[%s2735_s7 + $0x380] ss:$16 sps:$4 sm:$0xff]   ;;  %v2321_v5 = vld [vmem:[%s2735_s7 + $0x388] ss:$16 sps:$4 sm:$0xff]  }
  0x92   : > { %1503 = vmatprep.subr.bf16.mxu0 %v2240_v6  ;;  %1626 = vmatprep.subr.bf16.mxu1 %v2242_v7  ;;  %v2326_v6 = vld [vmem:[%s2735_s7 + $0x3a4] ss:$16 sps:$4 sm:$0xff]   ;;  %v2329_v7 = vld [vmem:[%s2735_s7 + $0x3ac] ss:$16 sps:$4 sm:$0xff]  }
  0x95   : > { %1504 = vmatpush1.bf16.msra.mxu0 %v2244_v9  ;;  %1627 = vmatpush1.bf16.msra.mxu1 %v2245_v10  ;;  %v2327_v9 = vld [vmem:[%s2735_s7 + $0x3a8] ss:$16 sps:$4 sm:$0xff]   ;;  %v2332_v10 = vld [vmem:[%s2735_s7 + $0x3c4] ss:$16 sps:$4 sm:$0xff]  }
  0x96   : > { %1514 = vmatprep.subr.bf16.mxu0 %v2248_v12  ;;  %1637 = vmatprep.subr.bf16.mxu1 %v2251_v13  ;;  %v2330_v12 = vld [vmem:[%s2735_s7 + $0x3c0] ss:$16 sps:$4 sm:$0xff]   ;;  %v2333_v13 = vld [vmem:[%s2735_s7 + $0x3c8] ss:$16 sps:$4 sm:$0xff]  }
  0x98   : > { %1506 = vmatmul.mubr.bf16.vlgmr.msra.gmra.mrb[0].mxu0 %v2824_v16  ;;  %1629 = vmatmul.mubr.bf16.vlgmr.msra.gmra.mrb[0].mxu1 %v2824_v16 }
  0x99   : > { %1515 = vmatpush1.bf16.msra.mxu0 %v2246_v15  ;;  %1638 = vmatpush1.bf16.msra.mxu1 %v2249_v17  ;;  %v2341_v15 = vld [vmem:[%s2735_s7 + $0x3ec] ss:$16 sps:$4 sm:$0xff]   ;;  %v2336_v17 = vld [vmem:[%s2735_s7 + $0x3e0] ss:$16 sps:$4 sm:$0xff]  }
  0x9a   : > { %1516 = vmatprep.subr.bf16.mxu0 %v2254_v20  ;;  %1639 = vmatprep.subr.bf16.mxu1 %v2257_v21  ;;  %v2339_v20 = vld [vmem:[%s2735_s7 + $0x3e8] ss:$16 sps:$4 sm:$0xff]   ;;  %v2344_v21 = vld [vmem:[%s2735_s7 + $0x404] ss:$16 sps:$4 sm:$0xff]  }
  0x9b   : > { %1546 = vmatprep.mubr.bf16.mxu0 %v506_v22  ;;  %1669 = vmatprep.mubr.bf16.mxu1 %v506_v22  ;;  %v2347_v22 = vld [vmem:[%s2735_s7 + $0x40c] ss:$16 sps:$4 sm:$0xff]  }
  0x9d   : > { %1517 = vmatpush1.bf16.msra.mxu0 %v2252_v23  ;;  %1640 = vmatpush1.bf16.msra.mxu1 %v2255_v24  ;;  %v505_v23 = vcombine.high %v2824_v16, %v2824_v16  ;;  %v2342_v24 = vld [vmem:[%s2735_s7 + $0x400] ss:$16 sps:$4 sm:$0xff]   ;;  %v2351_v16 = vld [vmem:[%s2735_s7 + $0x428] ss:$16 sps:$4 sm:$0xff]  }
  0x9e   : > { %1518 = vmatprep.subr.bf16.mxu0 %v2260_v25  ;;  %1641 = vmatprep.subr.bf16.mxu1 %v2263_v26  ;;  %v2345_v25 = vld [vmem:[%s2735_s7 + $0x408] ss:$16 sps:$4 sm:$0xff]   ;;  %v2350_v26 = vld [vmem:[%s2735_s7 + $0x424] ss:$16 sps:$4 sm:$0xff]  }
  0xa1   : > { %1519 = vmatpush1.bf16.msra.mxu0 %v2258_v27  ;;  %1642 = vmatpush1.bf16.msra.mxu1 %v2261_v28  ;;  %v2353_v27 = vld [vmem:[%s2735_s7 + $0x42c] ss:$16 sps:$4 sm:$0xff]   ;;  %v2348_v28 = vld [vmem:[%s2735_s7 + $0x420] ss:$16 sps:$4 sm:$0xff]  }
  0xa2   : > { %1520 = vmatprep.subr.bf16.mxu0 %v2266_v29  ;;  %1643 = vmatprep.subr.bf16.mxu1 %v2269_v30  ;;  %v2356_v29 = vld [vmem:[%s2735_s7 + $0x444] ss:$16 sps:$4 sm:$0xff]   ;;  %v2359_v30 = vld [vmem:[%s2735_s7 + $0x44c] ss:$16 sps:$4 sm:$0xff]  }
  0xa5   : > { %1521 = vmatpush1.bf16.msra.mxu0 %v2264_v31  ;;  %1644 = vmatpush1.bf16.msra.mxu1 %v2267_v32  ;;  %v2354_v31 = vld [vmem:[%s2735_s7 + $0x440] ss:$16 sps:$4 sm:$0xff]   ;;  %v2357_v32 = vld [vmem:[%s2735_s7 + $0x448] ss:$16 sps:$4 sm:$0xff]  }
  0xa6   : > { %1522 = vmatprep.subr.bf16.mxu0 %v2272_v33  ;;  %1645 = vmatprep.subr.bf16.mxu1 %v2275_v34  ;;  %v2362_v33 = vld [vmem:[%s2735_s7 + $0x464] ss:$16 sps:$4 sm:$0xff]   ;;  %v2365_v34 = vld [vmem:[%s2735_s7 + $0x46c] ss:$16 sps:$4 sm:$0xff]  }
  0xa9   : > { %1523 = vmatpush1.bf16.msra.mxu0 %v2270_v35  ;;  %1646 = vmatpush1.bf16.msra.mxu1 %v2273_v36  ;;  %v2360_v35 = vld [vmem:[%s2735_s7 + $0x460] ss:$16 sps:$4 sm:$0xff]   ;;  %v2363_v36 = vld [vmem:[%s2735_s7 + $0x468] ss:$16 sps:$4 sm:$0xff]  }
  0xaa   : > { %1524 = vmatprep.subr.bf16.mxu0 %v2278_v37  ;;  %1647 = vmatprep.subr.bf16.mxu1 %v2281_v38  ;;  %v2371_v37 = vld [vmem:[%s2735_s7 + $0x48c] ss:$16 sps:$4 sm:$0xff]   ;;  %v2366_v38 = vld [vmem:[%s2735_s7 + $0x480] ss:$16 sps:$4 sm:$0xff]  }
  0xad   : > { %1525 = vmatpush1.bf16.msra.mxu0 %v2276_v39  ;;  %1648 = vmatpush1.bf16.msra.mxu1 %v2279_v40  ;;  %v2369_v39 = vld [vmem:[%s2735_s7 + $0x488] ss:$16 sps:$4 sm:$0xff]   ;;  %v2374_v40 = vld [vmem:[%s2735_s7 + $0x4a4] ss:$16 sps:$4 sm:$0xff]  }
  0xae   : > { %1526 = vmatprep.subr.bf16.mxu0 %v2284_v41  ;;  %1649 = vmatprep.subr.bf16.mxu1 %v2287_v43  ;;  %v2377_v41 = vld [vmem:[%s2735_s7 + $0x4ac] ss:$16 sps:$4 sm:$0xff]   ;;  %v2372_v43 = vld [vmem:[%s2735_s7 + $0x4a0] ss:$16 sps:$4 sm:$0xff]  }
  0xb1   : > { %1527 = vmatpush1.bf16.msra.mxu0 %v2282_v44  ;;  %1650 = vmatpush1.bf16.msra.mxu1 %v2285_v45  ;;  %v2375_v44 = vld [vmem:[%s2735_s7 + $0x4a8] ss:$16 sps:$4 sm:$0xff]   ;;  %v2380_v45 = vld [vmem:[%s2735_s7 + $0x4c4] ss:$16 sps:$4 sm:$0xff]  }
  0xb2   : > { %1528 = vmatprep.subr.bf16.mxu0 %v2290_v46  ;;  %1651 = vmatprep.subr.bf16.mxu1 %v2293_v47  ;;  %v2383_v46 = vld [vmem:[%s2735_s7 + $0x4cc] ss:$16 sps:$4 sm:$0xff]   ;;  %v2378_v47 = vld [vmem:[%s2735_s7 + $0x4c0] ss:$16 sps:$4 sm:$0xff]  }
  0xb5   : > { %1529 = vmatpush1.bf16.msra.mxu0 %v2288_v48  ;;  %1652 = vmatpush1.bf16.msra.mxu1 %v2291_v49  ;;  %v2381_v48 = vld [vmem:[%s2735_s7 + $0x4c8] ss:$16 sps:$4 sm:$0xff]   ;;  %v2386_v49 = vld [vmem:[%s2735_s7 + $0x4e4] ss:$16 sps:$4 sm:$0xff]  }
  0xb6   : > { %1530 = vmatprep.subr.bf16.mxu0 %v2296_v50  ;;  %1653 = vmatprep.subr.bf16.mxu1 %v2299_v51  ;;  %v2389_v50 = vld [vmem:[%s2735_s7 + $0x4ec] ss:$16 sps:$4 sm:$0xff]   ;;  %v2384_v51 = vld [vmem:[%s2735_s7 + $0x4e0] ss:$16 sps:$4 sm:$0xff]  }
  0xb9   : > { %1531 = vmatpush1.bf16.msra.mxu0 %v2294_v52  ;;  %1654 = vmatpush1.bf16.msra.mxu1 %v2297_v53  ;;  %v2387_v52 = vld [vmem:[%s2735_s7 + $0x4e8] ss:$16 sps:$4 sm:$0xff]   ;;  %v2392_v53 = vld [vmem:[%s2735_s7 + $0x504] ss:$16 sps:$4 sm:$0xff]  }
  0xba   : > { %1532 = vmatprep.subr.bf16.mxu0 %v2302_v54  ;;  %1655 = vmatprep.subr.bf16.mxu1 %v2305_v55  ;;  %v2395_v54 = vld [vmem:[%s2735_s7 + $0x50c] ss:$16 sps:$4 sm:$0xff]   ;;  %v2390_v55 = vld [vmem:[%s2735_s7 + $0x500] ss:$16 sps:$4 sm:$0xff]  }
  0xbd   : > { %1533 = vmatpush1.bf16.msra.mxu0 %v2300_v56  ;;  %1656 = vmatpush1.bf16.msra.mxu1 %v2303_v57  ;;  %v2393_v56 = vld [vmem:[%s2735_s7 + $0x508] ss:$16 sps:$4 sm:$0xff]   ;;  %v2398_v57 = vld [vmem:[%s2735_s7 + $0x524] ss:$16 sps:$4 sm:$0xff]  }
  0xbe   : > { %1534 = vmatprep.subr.bf16.mxu0 %v2308_v58  ;;  %1657 = vmatprep.subr.bf16.mxu1 %v2311_v59  ;;  %v2401_v58 = vld [vmem:[%s2735_s7 + $0x52c] ss:$16 sps:$4 sm:$0xff]   ;;  %v2396_v59 = vld [vmem:[%s2735_s7 + $0x520] ss:$16 sps:$4 sm:$0xff]  }
  0xc1   : > { %1535 = vmatpush1.bf16.msra.mxu0 %v2306_v60  ;;  %1658 = vmatpush1.bf16.msra.mxu1 %v2309_v61  ;;  %v2399_v60 = vld [vmem:[%s2735_s7 + $0x528] ss:$16 sps:$4 sm:$0xff]   ;;  %v2404_v61 = vld [vmem:[%s2735_s7 + $0x544] ss:$16 sps:$4 sm:$0xff]  }
  0xc2   : > { %1536 = vmatprep.subr.bf16.mxu0 %v2314_v62  ;;  %1659 = vmatprep.subr.bf16.mxu1 %v2317_v63  ;;  %v2407_v62 = vld [vmem:[%s2735_s7 + $0x54c] ss:$16 sps:$4 sm:$0xff]   ;;  %v2402_v63 = vld [vmem:[%s2735_s7 + $0x540] ss:$16 sps:$4 sm:$0xff]  }
  0xc5   : > { %1537 = vmatpush1.bf16.msra.mxu0 %v2312_v0  ;;  %1660 = vmatpush1.bf16.msra.mxu1 %v2315_v1  ;;  %v2405_v0 = vld [vmem:[%s2735_s7 + $0x548] ss:$16 sps:$4 sm:$0xff]   ;;  %v2410_v1 = vld [vmem:[%s2735_s7 + $0x564] ss:$16 sps:$4 sm:$0xff]  }
  0xc6   : > { %1538 = vmatprep.subr.bf16.mxu0 %v2320_v2  ;;  %1661 = vmatprep.subr.bf16.mxu1 %v2323_v3  ;;  %v2413_v2 = vld [vmem:[%s2735_s7 + $0x56c] ss:$16 sps:$4 sm:$0xff]   ;;  %v2408_v3 = vld [vmem:[%s2735_s7 + $0x560] ss:$16 sps:$4 sm:$0xff]  }
  0xc9   : > { %1539 = vmatpush1.bf16.msra.mxu0 %v2318_v4  ;;  %1662 = vmatpush1.bf16.msra.mxu1 %v2321_v5  ;;  %v2411_v4 = vld [vmem:[%s2735_s7 + $0x568] ss:$16 sps:$4 sm:$0xff]   ;;  %v2416_v5 = vld [vmem:[%s2735_s7 + $0x584] ss:$16 sps:$4 sm:$0xff]  }
  0xca   : > { %1540 = vmatprep.subr.bf16.mxu0 %v2326_v6  ;;  %1663 = vmatprep.subr.bf16.mxu1 %v2329_v7  ;;  %v2419_v6 = vld [vmem:[%s2735_s7 + $0x58c] ss:$16 sps:$4 sm:$0xff]   ;;  %v2414_v7 = vld [vmem:[%s2735_s7 + $0x580] ss:$16 sps:$4 sm:$0xff]  }
  0xcd   : > { %1541 = vmatpush1.bf16.msra.mxu0 %v2324_v8  ;;  %1664 = vmatpush1.bf16.msra.mxu1 %v2327_v9  ;;  %v2417_v8 = vld [vmem:[%s2735_s7 + $0x588] ss:$16 sps:$4 sm:$0xff]   ;;  %v2422_v9 = vld [vmem:[%s2735_s7 + $0x5a4] ss:$16 sps:$4 sm:$0xff]  }
  0xce   : > { %1542 = vmatprep.subr.bf16.mxu0 %v2332_v10  ;;  %1665 = vmatprep.subr.bf16.mxu1 %v2335_v11  ;;  %v2425_v10 = vld [vmem:[%s2735_s7 + $0x5ac] ss:$16 sps:$4 sm:$0xff]   ;;  %v2420_v11 = vld [vmem:[%s2735_s7 + $0x5a0] ss:$16 sps:$4 sm:$0xff]  }
  0xd1   : > { %1543 = vmatpush1.bf16.msra.mxu0 %v2330_v12  ;;  %1666 = vmatpush1.bf16.msra.mxu1 %v2333_v13  ;;  %v2423_v12 = vld [vmem:[%s2735_s7 + $0x5a8] ss:$16 sps:$4 sm:$0xff]   ;;  %v2428_v13 = vld [vmem:[%s2735_s7 + $0x5c4] ss:$16 sps:$4 sm:$0xff]  }
  0xd2   : > { %1544 = vmatprep.subr.bf16.mxu0 %v2338_v14  ;;  %1667 = vmatprep.subr.bf16.mxu1 %v2341_v15  ;;  %v2431_v14 = vld [vmem:[%s2735_s7 + $0x5cc] ss:$16 sps:$4 sm:$0xff]   ;;  %v2426_v15 = vld [vmem:[%s2735_s7 + $0x5c0] ss:$16 sps:$4 sm:$0xff]  }
  0xd5   : > { %1545 = vmatpush1.bf16.msra.mxu0 %v2336_v17  ;;  %1668 = vmatpush1.bf16.msra.mxu1 %v2339_v20  ;;  %v2429_v17 = vld [vmem:[%s2735_s7 + $0x5c8] ss:$16 sps:$4 sm:$0xff]   ;;  %v2434_v20 = vld [vmem:[%s2735_s7 + $0x5e4] ss:$16 sps:$4 sm:$0xff]  }
  0xd6   : > { %1555 = vmatprep.subr.bf16.mxu0 %v2344_v21  ;;  %1678 = vmatprep.subr.bf16.mxu1 %v2347_v22  ;;  %v2437_v21 = vld [vmem:[%s2735_s7 + $0x5ec] ss:$16 sps:$4 sm:$0xff]   ;;  %v2432_v22 = vld [vmem:[%s2735_s7 + $0x5e0] ss:$16 sps:$4 sm:$0xff]  }
  0xd8   : > { %1547 = vmatmul.mubr.bf16.vlgmr.msra.gmra.mrb[0].mxu0 %v505_v23  ;;  %1670 = vmatmul.mubr.bf16.vlgmr.msra.gmra.mrb[0].mxu1 %v505_v23  ;;  %v2435_v23 = vld [vmem:[%s2735_s7 + $0x5e8] ss:$16 sps:$4 sm:$0xff]  }
  0xd9   : > { %1556 = vmatpush1.bf16.msra.mxu0 %v2342_v24  ;;  %1679 = vmatpush1.bf16.msra.mxu1 %v2345_v25  ;;  %v441_v24 = vsub.s32 0, %v2790_v42  ;;  %v449_v25 = vsub.s32 2, %v2790_v42 }
  0xda   : > { %1557 = vmatprep.subr.bf16.mxu0 %v2350_v26  ;;  %1680 = vmatprep.subr.bf16.mxu1 %v2353_v27  ;;  %v437_v26 = vld [vmem:[%s2743_s17] sm:$0xf]  ;;  %v445_v27 = vsub.s32 1, %v2790_v42 }
  0xdb   : > { %1587 = vmatprep.mubr.bf16.mxu0 %v2827_v18  ;;  %1710 = vmatprep.mubr.bf16.mxu1 %v2827_v18  ;;  %v2368_v18 = vld [vmem:[%s2735_s7 + $0x484] ss:$16 sps:$4 sm:$0xff]   ;;  %s2499_s7 = scalar_lea.vmem %s2976_s8, 128 }
  0xdc   : > { %p2500_p0 = scmp.ne.s32.totalorder %s2976_s8, %s2499_s7  ;;  %p2507_p2 = scmp.lt.s32.totalorder %s2505_s9, %s2499_s7 }
  0xdd   : > { %1558 = vmatpush1.bf16.msra.mxu0 %v2348_v28  ;;  %1681 = vmatpush1.bf16.msra.mxu1 %v2351_v16  ;;  %v2576_v28 = vmov 1983009808  }
  0xde   : > { %1559 = vmatprep.subr.bf16.mxu0 %v2356_v29  ;;  %1682 = vmatprep.subr.bf16.mxu1 %v2359_v30  ;;  %v1726_v16 = vunpack.c.l.s4 %v2576_v28  ;;  %v453_v29 = vsub.s32 3, %v2790_v42  ;;  %v442_v30 = vrot.slane %v437_v26, %v441_v24  ;;  %p2501_p3 = pnand %p2500_p0, %p3030_p10  ;;  %p2508_p7 = por %p2507_p2, %p2506_p5 }
  0xe0   : > { %p2502_p4 = pneg %p2501_p3 }
  0xe1   : > { %1560 = vmatpush1.bf16.msra.mxu0 %v2354_v31  ;;  %1683 = vmatpush1.bf16.msra.mxu1 %v2357_v32  ;;  %v450_v31 = vrot.slane %v437_v26, %v449_v25  ;;  %v446_v32 = vrot.slane %v437_v26, %v445_v27 }
  0xe2   : > { %1561 = vmatprep.subr.bf16.mxu0 %v2362_v33  ;;  %1684 = vmatprep.subr.bf16.mxu1 %v2365_v34  ;;  %v1727_v33 = vunpack.c.0.s8 %v1726_v16  ;;  %v454_v34 = vrot.slane %v437_v26, %v453_v29  ;;  %p2509_p11 = pnand %p2508_p7, %p2502_p4 }
  0xe5   : > { %1562 = vmatpush1.bf16.msra.mxu0 %v2360_v35  ;;  %1685 = vmatpush1.bf16.msra.mxu1 %v2363_v36 }
  0xe6   : > { %1563 = vmatprep.subr.bf16.mxu0 %v2368_v18  ;;  %1686 = vmatprep.subr.bf16.mxu1 %v2371_v37 }
  0xe9   : > { %1564 = vmatpush1.bf16.msra.mxu0 %v2366_v38  ;;  %1687 = vmatpush1.bf16.msra.mxu1 %v2369_v39 }
  0xea   : > { %1565 = vmatprep.subr.bf16.mxu0 %v2374_v40  ;;  %1688 = vmatprep.subr.bf16.mxu1 %v2377_v41  ;;  %v1730_v40 = vsub.s32 %v1727_v33, %v2790_v42 }
  0xed   : > { %1566 = vmatpush1.bf16.msra.mxu0 %v2372_v43  ;;  %1689 = vmatpush1.bf16.msra.mxu1 %v2375_v44 }
  0xee   : > { %1567 = vmatprep.subr.bf16.mxu0 %v2380_v45  ;;  %1690 = vmatprep.subr.bf16.mxu1 %v2383_v46 }
  0xf1   : > { %1568 = vmatpush1.bf16.msra.mxu0 %v2378_v47  ;;  %1691 = vmatpush1.bf16.msra.mxu1 %v2381_v48 }
  0xf2   : > { %1569 = vmatprep.subr.bf16.mxu0 %v2386_v49  ;;  %1692 = vmatprep.subr.bf16.mxu1 %v2389_v50 }
  0xf5   : > { %1570 = vmatpush1.bf16.msra.mxu0 %v2384_v51  ;;  %1693 = vmatpush1.bf16.msra.mxu1 %v2387_v52 }
  0xf6   : > { %1571 = vmatprep.subr.bf16.mxu0 %v2392_v53  ;;  %1694 = vmatprep.subr.bf16.mxu1 %v2395_v54 }
  0xf9   : > { %1572 = vmatpush1.bf16.msra.mxu0 %v2390_v55  ;;  %1695 = vmatpush1.bf16.msra.mxu1 %v2393_v56 }
  0xfa   : > { %1573 = vmatprep.subr.bf16.mxu0 %v2398_v57  ;;  %1696 = vmatprep.subr.bf16.mxu1 %v2401_v58 }
  0xfd   : > { %1574 = vmatpush1.bf16.msra.mxu0 %v2396_v59  ;;  %1697 = vmatpush1.bf16.msra.mxu1 %v2399_v60 }
  0xfe   : > { %1575 = vmatprep.subr.bf16.mxu0 %v2404_v61  ;;  %1698 = vmatprep.subr.bf16.mxu1 %v2407_v62 }
 0x101   : > { %1576 = vmatpush1.bf16.msra.mxu0 %v2402_v63  ;;  %1699 = vmatpush1.bf16.msra.mxu1 %v2405_v0 }
 0x102   : > { %1577 = vmatprep.subr.bf16.mxu0 %v2410_v1  ;;  %1700 = vmatprep.subr.bf16.mxu1 %v2413_v2 }
 0x105   : > { %1578 = vmatpush1.bf16.msra.mxu0 %v2408_v3  ;;  %1701 = vmatpush1.bf16.msra.mxu1 %v2411_v4 }
 0x106   : > { %1579 = vmatprep.subr.bf16.mxu0 %v2416_v5  ;;  %1702 = vmatprep.subr.bf16.mxu1 %v2419_v6 }
 0x109   : > { %1580 = vmatpush1.bf16.msra.mxu0 %v2414_v7  ;;  %1703 = vmatpush1.bf16.msra.mxu1 %v2417_v8 }
 0x10a   : > { %1581 = vmatprep.subr.bf16.mxu0 %v2422_v9  ;;  %1704 = vmatprep.subr.bf16.mxu1 %v2425_v10 }
 0x10d   : > { %1582 = vmatpush1.bf16.msra.mxu0 %v2420_v11  ;;  %1705 = vmatpush1.bf16.msra.mxu1 %v2423_v12 }
 0x10e   : > { %1583 = vmatprep.subr.bf16.mxu0 %v2428_v13  ;;  %1706 = vmatprep.subr.bf16.mxu1 %v2431_v14 }
 0x111   : > { %1584 = vmatpush1.bf16.msra.mxu0 %v2426_v15  ;;  %1707 = vmatpush1.bf16.msra.mxu1 %v2429_v17 }
 0x112   : > { %1585 = vmatprep.subr.bf16.mxu0 %v2434_v20  ;;  %1708 = vmatprep.subr.bf16.mxu1 %v2437_v21 }
 0x115   : > { %1586 = vmatpush1.bf16.msra.mxu0 %v2432_v22  ;;  %1709 = vmatpush1.bf16.msra.mxu1 %v2435_v23 }
 0x118   : > { %1588 = vmatmul.mubr.bf16.vlgmr.msra.gmra.mrb[0].mxu0 %v2829_v19  ;;  %1711 = vmatmul.mubr.bf16.vlgmr.msra.gmra.mrb[0].mxu1 %v2829_v19 }
 0x1eb   : > { %v1589_v35 = vpop.f32.mrb[0].mxu0  ;;  %v1712_v19 = vpop.f32.mrb[0].mxu1 }
 0x1ec   : > { %v2071_v36 = vadd.f32 %v1589_v35, %v442_v30  ;;  %v2073_v18 = vadd.f32 %v1712_v19, %v450_v31  ;;  %v1591_v37 = vpop.f32.mrb[1].mxu0  ;;  %v1714_v38 = vpop.f32.mrb[1].mxu1 }
 0x1ed   : > { %v2072_v39 = vadd.f32 %v1591_v37, %v446_v32  ;;  %v2074_v41 = vadd.f32 %v1714_v38, %v454_v34  ;;  %v1593_v43 = vpop.f32.mrb[2].mxu0  ;;  %v1716_v44 = vpop.f32.mrb[2].mxu1 }
 0x1ee   : > { %v1594_v45 = vpop.f32.mrb[3].mxu0  ;;  %v1717_v46 = vpop.f32.mrb[3].mxu1 }
 0x1ef   : > { %v1723_v47 = vcombine.low %v2071_v36, %v2072_v39  ;;  %v1724_v48 = vcombine.low %v2073_v18, %v2074_v41 }
 0x1f1   : > { %v1731_v49 = vrot.slane %v1723_v47, %v1730_v40  ;;  %v1738_v50 = vrot.slane %v1724_v48, %v1730_v40 }
 0x1f3   : > { %v1739_v51 = vcombine.low %v1731_v49, %v1738_v50 }
 0x1f5   : > { %1741 = vst [vmem:[%s239_s25] sm:$0xff] %v1739_v51 }
 0x1f6   : > { %2512 = shalt.err (!%p2509_p11)
}
 0x1f7   : > { %s2513_s19 = scalar_lea.hbm %s2974_s20, 128  ;;  %s2517_s26 = scalar_lea.hbm %s3020_s3, 384 }
 0x1f8   : > { %p2514_p8 = scmp.ne.s32.totalorder %s2974_s20, %s2513_s19  ;;  %p2518_p9 = scmp.lt.u32.totalorder %s2974_s20, %s3020_s3 }
 0x1f9   : > { %p2519_p6 = scmp.lt.u32.totalorder %s2517_s26, %s2513_s19  ;;  %p2521_p0 = scmp.lt.u32.totalorder %s2513_s19, %s2974_s20 }
 0x1fa   : > { %p2515_p1 = pnand %p2514_p8, %p3030_p10 }
 0x1fb   : > { %p2520_p12 = por %p2519_p6, %p2518_p9 }
 0x1fc   : > { %p2516_p13 = pneg %p2515_p1 }
 0x1fd   : > { %p2522_p3 = por %p2521_p0, %p2520_p12 }
 0x1ff   : > { %p2523_p4 = pnand %p2522_p3, %p2516_p13 }
 0x201   : > { %2526 = shalt.err (!%p2523_p4)
}
 0x202   : > { %2099 = dma.vmem_to_hbm [thread:$0]  (%p3030_p10), %s2976_s8, 128, %s2974_s20, %s1743_s6  }
 0x203 PF: > { %p2113_p5 = scmp.ge.s32.totalorder %s2569_s15, 2  ;;  %s1769_s28 = sand.u32 1, %s2557_s12  }
 0x204   : > { %p3031_p2 = scmp.ne.s32.totalorder %s3025_s24, 0  ;;  %s1770_s29 = scalar_lea.sflag [#allocation4], %s1769_s28 }
 0x206   : > { %p2109_p7 = pnand %p2113_p5, %p3031_p2 }
 0x208   : > { %2552 = dma.done.wait (!%p2109_p7), %s1770_s29, 128  }
 0x209   : > { %2554 = vsyncadd (!%p2109_p7), %s1770_s29, 4294967168  ;;  %p19_p11 = scmp.ge.s32.totalorder %s2623_s18, 5   ;;  %s3032_s12 = smov %s2561_s13 }
 0x20a   : > { %s3033_s13 = smov %s2565_s14  ;;  %s3034_s14 = smov %s2635_s21 }
 0x20b   : > { %s3035_s15 = smov %s2623_s18  ;;  %21 = sbr.rel (!%p19_p11) target bundleno = 7 (0x7), region = 93 }
 0x212   :  { %1775 = vsyncpa [#allocation3], 1 }
 0x213   :  { %1777 = vsyncpa [#allocation3 + $0x1], 1 }
 0x214   :  { %1778 = vsyncpa [#allocation6], 1 }
 0x215   :  { %1780 = vsyncpa [#allocation6 + $0x1], 1 }
 0x216   :  { %1781 = vsyncpa [#allocation4], 1 }
 0x217   :  { %1783 = vsyncpa [#allocation4 + $0x1], 1 }

// kernel: build_convnext_forward.2
= control target key start
LH: loop header
LB: loop body
LE: loop exit
PB: predicated region body
PF: predicated region fallthrough
CT: control target
= control target key end

     0   :  { %8 = vsyncpa [#allocation5], 0  ;;  %s7223_s0 = inlined_call_operand.hbm [shape: f32[2], index: 0, kind: input, shape index: {}]   ;;  %s7224_s1 = inlined_call_operand.hbm [shape: f32[7,16,32], index: 1, kind: input, shape index: {}]   ;;  %s7225_s2 = inlined_call_operand.hbm [shape: f32[2,8,8,768], index: 2, kind: input, shape index: {}]   ;;  %s7226_s3 = inlined_call_operand.vmem [shape: f32[2,2,768], index: 3, kind: output, shape index: {}]  }
   0x1   :  { %9 = vsyncpa [#allocation4], 0 }
   0x2   :  { %10 = vsyncpa [#allocation8], 0 }
   0x3   :  { %12 = vsyncpa [#allocation8 + $0x1], 0  ;;  %s5092_s12 = smov 0   ;;  %s5094_s13 = smov 0  }
   0x4   :  { %s5096_s14 = smov 0   ;;  %s5098_s15 = smov 0  }
   0x5 LB: > { %s5111_s16 = sadd.s32 4294967295, %s5054_s15   ;;  %s5114_s17 = sadd.s32 1, %s5054_s15   ;;  %s5054_s15 = sphi %s5098_s15, %s7451_s15   ;;  %s5050_s14 = sphi %s5096_s14, %s7450_s14   ;;  %s5046_s13 = sphi %s5094_s13, %s7449_s13   ;;  %s5042_s12 = sphi %s5092_s12, %s7448_s12  }
   0x6   : > { %s64_s18 = ssub.s32 %s5054_s15, %s5114_s17  ;;  %s67_s19 = sadd.s32 1, %s5050_s14 }
   0x7   : > { %p65_p0 = scmp.eq.s32.totalorder %s64_s18, 0  ;;  %p74_p1 = scmp.ne.s32.totalorder %s5050_s14, %s5046_s13 }
   0x8   : > { %p75_p2 = scmp.eq.s32.totalorder %s5054_s15, 0  ;;  %p80_p3 = scmp.ne.s32.totalorder %s5046_s13, %s5042_s12 }
   0x9   : > { %s5124_s20 = scalar_select %p65_p0, %s5050_s14, %s67_s19  }
   0xa   : > { %p76_p4 = por %p75_p2, %p74_p1  ;;  %p7227_p5 = scmp.eq.s32.totalorder %s5111_s16, 0 }
   0xb   : > { %p4085_p6 = scmp.ge.s32.totalorder %s5054_s15, 1  ;;  %p117_p7 = scmp.lt.s32.totalorder %s5054_s15, 3 }
   0xc   : > { %p5131_p8 = por %p7227_p5, %p80_p3  ;;  %p4423_p10 = scmp.lt.s32.totalorder %s5054_s15, 2 }
   0xd   : > { %p5135_p9 = pnand %p4085_p6, %p117_p7  ;;  %s5056_s24 = smov [#allocation6]  }
   0xe   : > { %s7300_s21 = scalar_select %p5131_p8, 1, 0 }
   0xf   : > { %p4410_p11 = pneg %p5135_p9  ;;  %p5142_p12 = pnand %p4423_p10, %p76_p4 }
  0x10   : > { %s138_s25 = sshll.u32 %s5056_s24, 4  ;;  %s4941_s29 = scalar_lea.hbm %s7223_s0, 16  ;;  %s5152_s25 = int_to_ptr.vmem [resolvable:$true] %s138_s25 }
  0x11   : > { %p5148_p13 = pnand %p4410_p11, %p7227_p5  ;;  %p4942_p0 = scmp.ne.s32.totalorder %s7223_s0, %s4941_s29 }
  0x12   : > { %p4948_p4 = scmp.lt.u32.totalorder %s4941_s29, %s7223_s0 }
  0x13   : > { %p4943_p1 = pneg %p5148_p13 }
  0x15   : > { %p4944_p2 = pnand %p4943_p1, %p4942_p0 }
  0x17   : > { %p4945_p3 = pneg %p4944_p2 }
  0x19   : > { %p4950_p6 = pnand %p4948_p4, %p4945_p3 }
  0x1b   : > { %4953 = shalt.err (!%p4950_p6)
}
  0x1c   : > { %s5057_s7 = smov [#allocation3]   ;;  %s4954_s12 = scalar_lea.hbm %s7224_s1, 1792 }
  0x1d   : > { %4413 = dma.hbm_to_smem (!%p5148_p13), %s7223_s0, 16, %s5057_s7, [#allocation5]  }
  0x1e   : > { %p4955_p7 = scmp.ne.s32.totalorder %s7224_s1, %s4954_s12  ;;  %p4961_p0 = scmp.lt.u32.totalorder %s4954_s12, %s7224_s1 }
  0x20   : > { %p4957_p10 = pnand %p4955_p7, %p4943_p1 }
  0x22   : > { %p4958_p11 = pneg %p4957_p10 }
  0x24   : > { %p4963_p2 = pnand %p4961_p0, %p4958_p11 }
  0x26   : > { %4966 = shalt.err (!%p4963_p2)
}
  0x27   : > { %s4967_s28 = scalar_lea.vmem %s5152_s25, 1792  ;;  %p4975_p5 = scmp.lt.s32.totalorder %s5152_s25, %s5152_s25 }
  0x28   : > { %p4968_p3 = scmp.ne.s32.totalorder %s5152_s25, %s4967_s28  ;;  %p4976_p7 = scmp.lt.s32.totalorder %s4967_s28, %s4967_s28 }
  0x2a   : > { %p4970_p4 = pnand %p4968_p3, %p4943_p1  ;;  %p4977_p10 = por %p4976_p7, %p4975_p5 }
  0x2c   : > { %p4971_p6 = pneg %p4970_p4 }
  0x2e   : > { %p4978_p8 = pnand %p4977_p10, %p4971_p6 }
  0x30   : > { %4981 = shalt.err (!%p4978_p8)
}
  0x31   : > { %s5058_s29 = smov 128   ;;  %s5059_s30 = smov 8  }
  0x32   : > { %4416 = dma.hbm_to_vmem [thread:$0]  (!%p5148_p13), %s7224_s1, 1792, %s5152_s25, [#allocation4], %s5058_s29, %s5058_s29, %s5059_s30  }
  0x33   : > { %s152_s6 = sand.u32 1, %s5050_s14   ;;  %s4397_s7 = smul.u32 6144, %s5054_s15 }
  0x34   : > { %s4396_s8 = smul.u32 384, %s152_s6  ;;  %s5207_s26 = scalar_lea.sflag [#allocation8], %s152_s6 }
  0x35   : > { %s5203_s11 = scalar_lea.hbm %s7225_s2, %s4397_s7  ;;  %p4984_p8 = pneg %p5142_p12 }
  0x36   : > { %s156_s12 = scalar_lea.vmem [#allocation7], %s4396_s8  ;;  %s4982_s19 = scalar_lea.hbm %s5203_s11, 6144 }
  0x37   : > { %s163_s18 = sshll.u32 %s156_s12, 4  ;;  %p4983_p5 = scmp.ne.s32.totalorder %s5203_s11, %s4982_s19  ;;  %s5205_s18 = int_to_ptr.vmem [resolvable:$true] %s163_s18 }
  0x38   : > { %s4987_s24 = scalar_lea.hbm %s7225_s2, 12288  ;;  %p4988_p11 = scmp.lt.u32.totalorder %s5203_s11, %s7225_s2 }
  0x39   : > { %p4985_p13 = pnand %p4984_p8, %p4983_p5  ;;  %p4989_p0 = scmp.lt.u32.totalorder %s4987_s24, %s4982_s19 }
  0x3a   : > { %p4991_p3 = scmp.lt.u32.totalorder %s4982_s19, %s5203_s11 }
  0x3b   : > { %p4986_p1 = pneg %p4985_p13  ;;  %p4990_p2 = por %p4989_p0, %p4988_p11 }
  0x3d   : > { %p4992_p4 = por %p4991_p3, %p4990_p2 }
  0x3f   : > { %p4993_p6 = pnand %p4992_p4, %p4986_p1 }
  0x41   : > { %4996 = shalt.err (!%p4993_p6)
}
  0x42   : > { %s4997_s29 = scalar_lea.vmem %s5205_s18, 6144  ;;  %s5060_s30 = smov [#allocation7]  }
  0x43   : > { %p4998_p7 = scmp.ne.s32.totalorder %s5205_s18, %s4997_s29  ;;  %s5002_s4 = sshll.u32 %s5060_s30, 4  ;;  %s5003_s4 = int_to_ptr.vmem [resolvable:$false] %s5002_s4 }
  0x44   : > { %s5004_s5 = scalar_lea.vmem %s5003_s4, 12288  ;;  %p5005_p13 = scmp.lt.s32.totalorder %s5205_s18, %s5003_s4 }
  0x45   : > { %p5000_p10 = pnand %p4998_p7, %p4984_p8  ;;  %p5006_p11 = scmp.lt.s32.totalorder %s5004_s5, %s4997_s29 }
  0x47   : > { %p5001_p5 = pneg %p5000_p10  ;;  %p5007_p0 = por %p5006_p11, %p5005_p13 }
  0x49   : > { %p5008_p2 = pnand %p5007_p0, %p5001_p5 }
  0x4b   : > { %5011 = shalt.err (!%p5008_p2)
}
  0x4c   : > { %s5061_s6 = smov 768   ;;  %s5062_s7 = smov 48  }
  0x4d   : > { %4420 = dma.hbm_to_vmem [thread:$0]  (!%p5142_p12), %s5203_s11, 6144, %s5205_s18, %s5207_s26, %s5061_s6, %s5061_s6, %s5062_s7  }
  0x4e   : > { %175 = sbr.rel (%p5135_p9) target bundleno = 959 (0x3bf), region = 32 }
  0x55   : > { %p7304_p8 = scmp.eq.s32.totalorder %s5111_s16, 0 }
  0x57   : > { %5029 = dma.done.wait (%p7304_p8), [#allocation5], 16   ;;  %p7305_p1 = pmov %p7304_p8 }
  0x59   : > { %5031 = vsyncadd (%p7305_p1), [#allocation5], 4294967280  ;;  %p7306_p3 = pmov %p7305_p1 }
  0x5a   : > { %p7307_p4 = pmov %p7305_p1 }
  0x5b   : > { %5033 = dma.done.wait (%p7306_p3), [#allocation4], 1792  }
  0x5c   : > { %5035 = vsyncadd (%p7307_p4), [#allocation4], 4294965504  ;;  %s185_s8 = sand.u32 1, %s5046_s13   ;;  %p7308_p9 = scmp.ne.s32.totalorder %s7300_s21, 0 }
  0x5d   : > { %s4398_s23 = smul.u32 384, %s185_s8  ;;  %s186_s9 = scalar_lea.sflag [#allocation8], %s185_s8 }
  0x5f   : > { %s5246_s10 = scalar_lea.vmem [#allocation7], %s4398_s23 }
  0x60   : > { %5037 = dma.done.wait (%p7308_p9), %s186_s9, 6144  }
  0x61   : > { %5039 = vsyncadd (%p7308_p9), %s186_s9, 4294961152 }
  0x62   : > { %194 = sfence }
  0x63   : > { %v5253_v0 = vld [vmem:[%s5246_s10 + $0x10] sm:$0xff]  ;;  %v5256_v1 = vld [vmem:[%s5246_s10 + $0x40] sm:$0xff]  ;;  %v5295_v20 = vld [vmem:[%s5246_s10 + $0x8] sm:$0xff]  ;;  %vm1134_vm0 = vcmask 1041409   ;;  %s5063_s21 = smov 3   ;;  %vm1136_vm1 = vcmask 1042434  }
  0x64   : > { %v5259_v2 = vld [vmem:[%s5246_s10 + $0x70] sm:$0xff]  ;;  %v309_v3 = vmax.f32 %v5253_v0, %v5256_v1  ;;  %v351_v4 = vadd.f32 %v5256_v1, %v5253_v0  ;;  %v5266_v5 = vld [vmem:[%s5246_s10 + $0xa0] sm:$0xff]  ;;  %v5298_v21 = vld [vmem:[%s5246_s10 + $0x38] sm:$0xff]  ;;  %v7236_v35 = vrot.slane %v5295_v20, 4  ;;  %vm1138_vm2 = vcmask 1043459   ;;  %s5065_s22 = smov 124  }
  0x65   : > { %v5269_v6 = vld [vmem:[%s5246_s10] sm:$0xff]  ;;  %v5273_v8 = vld [vmem:[%s5246_s10 + $0x30] sm:$0xff]  ;;  %v5313_v28 = vld [vmem:[%s5246_s10 + $0x68] sm:$0xff]  ;;  %v302_v29 = vmax.f32 %v5295_v20, %v5298_v21  ;;  %v344_v30 = vadd.f32 %v5298_v21, %v5295_v20  ;;  %v7235_v36 = vrot.slane %v5298_v21, 4  ;;  %vm1140_vm3 = vcmask 1044484   ;;  %s5066_s11 = smov 127  }
  0x66   : > { %v310_v7 = vmax.f32 %v309_v3, %v5259_v2  ;;  %v5276_v9 = vld [vmem:[%s5246_s10 + $0x60] sm:$0xff]  ;;  %v352_v10 = vadd.f32 %v351_v4, %v5259_v2  ;;  %v386_v11 = vrot.slane %v5269_v6, 4  ;;  %v5282_v13 = vld [vmem:[%s5246_s10 + $0xd0] sm:$0xff]  ;;  %v295_v15 = vmax.f32 %v5269_v6, %v5273_v8  ;;  %v5324_v33 = vld [vmem:[%s5246_s10 + $0x98] sm:$0xff]  ;;  %s5067_s12 = smov 126   ;;  %s5068_s18 = smov 125  }
  0x67   : > { %v5285_v14 = vld [vmem:[%s5246_s10 + $0x90] sm:$0xff]  ;;  %v337_v16 = vadd.f32 %v5273_v8, %v5269_v6  ;;  %v422_v17 = vrot.slane %v5273_v8, 4  ;;  %v458_v18 = vrot.slane %v5276_v9, 4  ;;  %v5308_v25 = vld [vmem:[%s5246_s10 + $0x100] sm:$0xff]  ;;  %v303_v40 = vmax.f32 %v302_v29, %v5313_v28  ;;  %v5341_v44 = vld [vmem:[%s5246_s10 + $0xc8] sm:$0xff]  ;;  %s5069_s26 = smov 123  }
  0x68   : > { %v311_v19 = vmax.f32 %v310_v7, %v5266_v5  ;;  %v353_v22 = vadd.f32 %v352_v10, %v5266_v5  ;;  %v5304_v23 = vmax.f32 %v5269_v6, %v386_v11  ;;  %v7237_v24 = vrot.slane %v5285_v14, 4  ;;  %v5321_v32 = vld [vmem:[%s5246_s10 + $0xc0] sm:$0xff]  ;;  %v5330_v37 = vld [vmem:[%s5246_s10 + $0x130] sm:$0xff]  ;;  %v5362_v55 = vld [vmem:[%s5246_s10 + $0xf8] sm:$0xff]  ;;  %s5070_s19 = smov 122   ;;  %s3761_s15 = sld [smem:[#allocation3]] }
  0x69   : > { %v296_v26 = vmax.f32 %v295_v15, %v5276_v9  ;;  %v338_v27 = vadd.f32 %v337_v16, %v5276_v9  ;;  %v345_v41 = vadd.f32 %v344_v30, %v5313_v28  ;;  %v5338_v43 = vld [vmem:[%s5246_s10 + $0xf0] sm:$0xff]  ;;  %v393_v46 = vmax.f32 %v5295_v20, %v7236_v35  ;;  %v5351_v48 = vld [vmem:[%s5246_s10 + $0x160] sm:$0xff]  ;;  %s4142_s25 = sld [smem:[#allocation3 + $0x1]]  ;;  %p213_p12 = scmp.lt.s32.totalorder %s5111_s16, 1 }
  0x6a   : > { %v312_v31 = vmax.f32 %v311_v19, %v5282_v13  ;;  %v354_v34 = vadd.f32 %v353_v22, %v5282_v13  ;;  %v429_v47 = vmax.f32 %v5298_v21, %v7235_v36  ;;  %v304_v51 = vmax.f32 %v303_v40, %v5324_v33  ;;  %v5359_v54 = vld [vmem:[%s5246_s10 + $0x120] sm:$0xff]  ;;  %v5371_v3 = vld [vmem:[%s5246_s10 + $0x150] sm:$0xff] }
  0x6b   : > { %v297_v38 = vmax.f32 %v296_v26, %v5285_v14  ;;  %v339_v39 = vadd.f32 %v338_v27, %v5285_v14  ;;  %v346_v52 = vadd.f32 %v345_v41, %v5324_v33  ;;  %v394_v57 = vrot.slane %v393_v46, 2  ;;  %v5380_v26 = vld [vmem:[%s5246_s10 + $0x128] sm:$0xff]  ;;  %v5390_v41 = vld [vmem:[%s5246_s10 + $0x158] sm:$0xff]  ;;  %s7453_s16 = smov (!%p213_p12, %s5111_s16), 1 }
  0x6c   : > { %v313_v42 = vmax.f32 %v312_v31, %v5308_v25  ;;  %v355_v45 = vadd.f32 %v354_v34, %v5308_v25  ;;  %v430_v58 = vrot.slane %v429_v47, 2  ;;  %v305_v61 = vmax.f32 %v304_v51, %v5341_v44  ;;  %s4399_s24 = smul.u32 12, %s7453_s16 }
  0x6d   : > { %v298_v49 = vmax.f32 %v297_v38, %v5321_v32  ;;  %v340_v50 = vadd.f32 %v339_v39, %v5321_v32  ;;  %v347_v62 = vadd.f32 %v346_v52, %v5341_v44  ;;  %v395_v7 = vmax.f32 %v393_v46, %v394_v57 }
  0x6e   : > { %v314_v53 = vmax.f32 %v313_v42, %v5330_v37  ;;  %v356_v56 = vadd.f32 %v355_v45, %v5330_v37  ;;  %v431_v10 = vmax.f32 %v429_v47, %v430_v58  ;;  %v306_v19 = vmax.f32 %v305_v61, %v5362_v55  ;;  %s217_s29 = scalar_lea.vmem %s7226_s3, %s4399_s24 }
  0x6f   : > { %v299_v59 = vmax.f32 %v298_v49, %v5338_v43  ;;  %v341_v60 = vadd.f32 %v340_v50, %v5338_v43  ;;  %v348_v22 = vadd.f32 %v347_v62, %v5362_v55  ;;  %v396_v29 = vrot.slane %v395_v7, 1 }
  0x70   : > { %v315_v63 = vmax.f32 %v314_v53, %v5351_v48  ;;  %v357_v4 = vadd.f32 %v356_v56, %v5351_v48  ;;  %v432_v30 = vrot.slane %v431_v10, 1  ;;  %v7234_v31 = vrot.slane %v5313_v28, 4 }
  0x71   : > { %v300_v15 = vmax.f32 %v299_v59, %v5359_v54  ;;  %v342_v16 = vadd.f32 %v341_v60, %v5359_v54  ;;  %v307_v39 = vmax.f32 %v306_v19, %v5380_v26  ;;  %v349_v40 = vadd.f32 %v348_v22, %v5380_v26 }
  0x72   : > { %1020 = vrot.lane.b32.xlu1 %v315_v63, %s5063_s21  ;;  %v5382_v27 = vmul.f32 0.125, %v357_v4  ;;  %v397_v42 = vmax.f32 %v395_v7, %v396_v29  ;;  %v433_v45 = vmax.f32 %v431_v10, %v432_v30  ;;  %v465_v46 = vmax.f32 %v5313_v28, %v7234_v31 }
  0x73   : > { %v301_v34 = vmax.f32 %v300_v15, %v5371_v3  ;;  %v343_v38 = vadd.f32 %v342_v16, %v5371_v3  ;;  %v7233_v47 = vrot.slane %v5324_v33, 4  ;;  %v308_v50 = vmax.f32 %v307_v39, %v5390_v41 }
  0x74   : > { %7309 = vst [vmem:[#allocation12_spill] sm:$0xff] %v5382_v27  ;;  %v350_v51 = vadd.f32 %v349_v40, %v5390_v41  ;;  %v7232_v52 = vrot.slane %v5341_v44, 4  ;;  %v466_v53 = vrot.slane %v465_v46, 2  ;;  %v7231_v57 = vrot.slane %v5362_v55, 4 }
  0x75   : > { %1016 = vrot.lane.b32.xlu0 %v301_v34, %s5063_s21  ;;  %v5397_v49 = vmul.f32 0.125, %v343_v38  ;;  %v501_v56 = vmax.f32 %v5324_v33, %v7233_v47  ;;  %v7230_v58 = vrot.slane %v5380_v26, 4  ;;  %v7229_v61 = vrot.slane %v5390_v41, 4 }
  0x76   : > { %v5409_v59 = vmul.f32 0.125, %v350_v51  ;;  %v537_v60 = vmax.f32 %v5341_v44, %v7232_v52  ;;  %vm1142_vm4 = vcmask 1045509   ;;  %v1148_v62 = vsel %vm1134_vm0, %v433_v45, %v397_v42 }
  0x77   : > { %7310 = vst [vmem:[#allocation13_spill] sm:$0xff] %v5397_v49  ;;  %1055 = vrot.lane.b32.xlu1 %v5397_v49, %s5063_s21  ;;  %v467_v63 = vmax.f32 %v465_v46, %v466_v53  ;;  %v502_v4 = vrot.slane %v501_v56, 2  ;;  %v573_v7 = vmax.f32 %v5362_v55, %v7231_v57  ;;  %v609_v10 = vmax.f32 %v5380_v26, %v7230_v58 }
  0x78   : > { %7311 = vst [vmem:[#allocation14_spill] sm:$0xff] %v5409_v59  ;;  %vm1144_vm5 = vcmask 1046534   ;;  %v538_v15 = vrot.slane %v537_v60, 2  ;;  %v645_v16 = vmax.f32 %v5390_v41, %v7229_v61  ;;  %vm1146_vm6 = vcmask 1047559  }
  0x79   : > { %1018 = vrot.lane.b32.xlu0 %v308_v50, %s5063_s21  ;;  %v388_v19 = vrot.slane %v5304_v23, 2  ;;  %v423_v22 = vmax.f32 %v5273_v8, %v422_v17  ;;  %v468_v29 = vrot.slane %v467_v63, 1  ;;  %v503_v30 = vmax.f32 %v501_v56, %v502_v4 }
  0x7a   : > { %v574_v34 = vrot.slane %v573_v7, 2  ;;  %v610_v38 = vrot.slane %v609_v10, 2  ;;  %v539_v39 = vmax.f32 %v537_v60, %v538_v15  ;;  %v646_v40 = vrot.slane %v645_v16, 2 }
  0x7b   : > { %1059 = vrot.lane.b32.xlu1 %v5382_v27, %s5063_s21  ;;  %v389_v42 = vmax.f32 %v5304_v23, %v388_v19  ;;  %v424_v45 = vrot.slane %v423_v22, 2  ;;  %v469_v46 = vmax.f32 %v467_v63, %v468_v29  ;;  %v504_v50 = vrot.slane %v503_v30, 1 }
  0x7c   : > { %v575_v51 = vmax.f32 %v573_v7, %v574_v34  ;;  %v611_v53 = vmax.f32 %v609_v10, %v610_v38  ;;  %v540_v61 = vrot.slane %v539_v39, 1  ;;  %v647_v58 = vmax.f32 %v645_v16, %v646_v40 }
  0x7d   : > { %1057 = vrot.lane.b32.xlu0 %v5409_v59, %s5063_s21  ;;  %v390_v56 = vrot.slane %v389_v42, 1  ;;  %v425_v4 = vmax.f32 %v423_v22, %v424_v45  ;;  %v505_v57 = vmax.f32 %v503_v30, %v504_v50  ;;  %v1149_v60 = vsel %vm1136_vm1, %v469_v46, %v1148_v62 }
  0x7e   : > { %v576_v52 = vrot.slane %v575_v51, 1  ;;  %v612_v47 = vrot.slane %v611_v53, 1  ;;  %v541_v15 = vmax.f32 %v539_v39, %v540_v61  ;;  %v648_v31 = vrot.slane %v647_v58, 1 }
  0x7f   : > { %v391_v23 = vmax.f32 %v389_v42, %v390_v56  ;;  %v426_v19 = vrot.slane %v425_v4, 1  ;;  %v1150_v7 = vsel %vm1138_vm2, %v505_v57, %v1149_v60  ;;  %v459_v10 = vmax.f32 %v5276_v9, %v458_v18 }
  0x80   : > { %v577_v63 = vmax.f32 %v575_v51, %v576_v52  ;;  %v613_v29 = vmax.f32 %v611_v53, %v612_v47  ;;  %v649_v16 = vmax.f32 %v647_v58, %v648_v31  ;;  %v1151_v22 = vsel %vm1140_vm3, %v541_v15, %v1150_v7 }
  0x81   : > { %v427_v30 = vmax.f32 %v425_v4, %v426_v19  ;;  %v495_v62 = vmax.f32 %v5285_v14, %v7237_v24  ;;  %v460_v34 = vrot.slane %v459_v10, 2  ;;  %v530_v52 = vrot.slane %v5321_v32, 4 }
  0x82   : > { %v1152_v61 = vsel %vm1142_vm4, %v577_v63, %v1151_v22  ;;  %v566_v47 = vrot.slane %v5338_v43, 4  ;;  %v602_v39 = vrot.slane %v5359_v54, 4  ;;  %v638_v31 = vrot.slane %v5371_v3, 4 }
  0x83   : > { %v1153_v57 = vsel %vm1144_vm5, %v613_v29, %v1152_v61  ;;  %v496_v38 = vrot.slane %v495_v62, 2  ;;  %v461_v40 = vmax.f32 %v459_v10, %v460_v34  ;;  %v531_v42 = vmax.f32 %v5321_v32, %v530_v52 }
  0x84   : > { %v1154_v58 = vsel %vm1146_vm6, %v649_v16, %v1153_v57  ;;  %v567_v45 = vmax.f32 %v5338_v43, %v566_v47  ;;  %v603_v50 = vmax.f32 %v5359_v54, %v602_v39  ;;  %v639_v51 = vmax.f32 %v5371_v3, %v638_v31 }
  0x85   : > { %1185 = vrot.lane.b32.xlu1 %v1154_v58, %s5063_s21  ;;  %v497_v46 = vmax.f32 %v495_v62, %v496_v38  ;;  %v1135_v53 = vsel %vm1134_vm0, %v427_v30, %v391_v23  ;;  %v462_v56 = vrot.slane %v461_v40, 1  ;;  %v532_v4 = vrot.slane %v531_v42, 2 }
  0x86   : > { %v568_v60 = vrot.slane %v567_v45, 2  ;;  %v675_v15 = vadd.f32 %v386_v11, %v5269_v6  ;;  %v604_v63 = vrot.slane %v603_v50, 2  ;;  %v640_v29 = vrot.slane %v639_v51, 2 }
  0x87   : > { %v498_v19 = vrot.slane %v497_v46, 1  ;;  %v711_v7 = vadd.f32 %v422_v17, %v5273_v8  ;;  %v463_v10 = vmax.f32 %v461_v40, %v462_v56  ;;  %v533_v16 = vmax.f32 %v531_v42, %v532_v4 }
  0x88   : > { %v569_v22 = vmax.f32 %v567_v45, %v568_v60  ;;  %v676_v62 = vrot.slane %v675_v15, 2  ;;  %v605_v23 = vmax.f32 %v603_v50, %v604_v63  ;;  %v641_v30 = vmax.f32 %v639_v51, %v640_v29 }
  0x89   : > { %v499_v61 = vmax.f32 %v497_v46, %v498_v19  ;;  %v712_v34 = vrot.slane %v711_v7, 2  ;;  %v534_v57 = vrot.slane %v533_v16, 1  ;;  %v1137_v58 = vsel %vm1136_vm1, %v463_v10, %v1135_v53 }
  0x8a   : > { %v570_v38 = vrot.slane %v569_v22, 1  ;;  %v677_v6 = vadd.f32 %v676_v62, %v675_v15  ;;  %v606_v11 = vrot.slane %v605_v23, 1  ;;  %v642_v36 = vrot.slane %v641_v30, 1 }
  0x8b   : > { %v1139_v35 = vsel %vm1138_vm2, %v499_v61, %v1137_v58  ;;  %v713_v12 = vadd.f32 %v712_v34, %v711_v7  ;;  %v535_v24 = vmax.f32 %v533_v16, %v534_v57  ;;  %v747_v40 = vadd.f32 %v458_v18, %v5276_v9 }
  0x8c   : > { %v571_v8 = vmax.f32 %v569_v22, %v570_v38  ;;  %v678_v17 = vrot.slane %v677_v6, 1  ;;  %v607_v42 = vmax.f32 %v605_v23, %v606_v11  ;;  %v643_v45 = vmax.f32 %v641_v30, %v642_v36 }
  0x8d   : > { %v714_v46 = vrot.slane %v713_v12, 1  ;;  %v7312_v50 = vrot.slane %v5285_v14, 4  ;;  %v1141_v53 = vsel %vm1140_vm3, %v535_v24, %v1139_v35  ;;  %v748_v4 = vrot.slane %v747_v40, 2 }
  0x8e   : > { %v679_v56 = vadd.f32 %v678_v17, %v677_v6  ;;  %v819_v60 = vadd.f32 %v530_v52, %v5321_v32  ;;  %v1143_v15 = vsel %vm1142_vm4, %v571_v8, %v1141_v53  ;;  %v855_v29 = vadd.f32 %v566_v47, %v5338_v43 }
  0x8f   : > { %v783_v51 = vadd.f32 %v7312_v50, %v5285_v14  ;;  %v715_v19 = vadd.f32 %v714_v46, %v713_v12  ;;  %v1145_v9 = vsel %vm1144_vm5, %v607_v42, %v1143_v15  ;;  %v749_v18 = vadd.f32 %v748_v4, %v747_v40 }
  0x90   : > { %v820_v36 = vrot.slane %v819_v60, 2  ;;  %v891_v7 = vadd.f32 %v602_v39, %v5359_v54  ;;  %v1147_v14 = vsel %vm1146_vm6, %v643_v45, %v1145_v9  ;;  %v856_v24 = vrot.slane %v855_v29, 2 }
  0x91   : > { %v784_v63 = vrot.slane %v783_v51, 2  ;;  %v927_v35 = vadd.f32 %v638_v31, %v5371_v3  ;;  %1183 = vrot.lane.b32.xlu0 %v1147_v14, %s5063_s21  ;;  %v750_v32 = vrot.slane %v749_v18, 1  ;;  %v962_v16 = vmul.f32 0.125, %v679_v56 }
  0x92   : > { %v821_v52 = vadd.f32 %v820_v36, %v819_v60  ;;  %v892_v12 = vrot.slane %v891_v7, 2  ;;  %v857_v43 = vadd.f32 %v856_v24, %v855_v29  ;;  %v968_v62 = vmul.f32 0.125, %v715_v19 }
  0x93   : > { %v785_v10 = vadd.f32 %v784_v63, %v783_v51  ;;  %v928_v47 = vrot.slane %v927_v35, 2  ;;  %v751_v61 = vadd.f32 %v750_v32, %v749_v18  ;;  %v7313_v54 = vrot.slane %v5253_v0, 4 }
  0x94   : > { %v822_v23 = vrot.slane %v821_v52, 1  ;;  %v893_v30 = vadd.f32 %v892_v12, %v891_v7  ;;  %v858_v57 = vrot.slane %v857_v43, 1  ;;  %v1262_v31 = vsel %vm1134_vm0, %v968_v62, %v962_v16 }
  0x95   : > { %v786_v22 = vrot.slane %v785_v10, 1  ;;  %v399_v39 = vmax.f32 %v5253_v0, %v7313_v54  ;;  %v929_v3 = vadd.f32 %v928_v47, %v927_v35  ;;  %v974_v6 = vmul.f32 0.125, %v751_v61 }
  0x96   : > { %v823_v38 = vadd.f32 %v822_v23, %v821_v52  ;;  %v894_v58 = vrot.slane %v893_v30, 1  ;;  %v859_v8 = vadd.f32 %v858_v57, %v857_v43  ;;  %v434_v42 = vrot.slane %v5256_v1, 4 }
  0x97   : > { %v787_v34 = vadd.f32 %v786_v22, %v785_v10  ;;  %v400_v11 = vrot.slane %v399_v39, 2  ;;  %v930_v17 = vrot.slane %v929_v3, 1  ;;  %v1263_v50 = vsel %vm1136_vm1, %v974_v6, %v1262_v31 }
  0x98   : > { %v895_v45 = vadd.f32 %v894_v58, %v893_v30  ;;  %v986_v46 = vmul.f32 0.125, %v823_v38  ;;  %v992_v56 = vmul.f32 0.125, %v859_v8  ;;  %v435_v60 = vmax.f32 %v5256_v1, %v434_v42 }
  0x99   : > { %v980_v40 = vmul.f32 0.125, %v787_v34  ;;  %v401_v51 = vmax.f32 %v399_v39, %v400_v11  ;;  %v931_v53 = vadd.f32 %v930_v17, %v929_v3  ;;  %v470_v29 = vrot.slane %v5259_v2, 4 }
  0x9a   : > { %v998_v15 = vmul.f32 0.125, %v895_v45  ;;  %v436_v36 = vrot.slane %v435_v60, 2  ;;  %v506_v7 = vrot.slane %v5266_v5, 4  ;;  %v542_v35 = vrot.slane %v5282_v13, 4 }
  0x9b   : > { %v1264_v4 = vsel %vm1138_vm2, %v980_v40, %v1263_v50  ;;  %v402_v63 = vrot.slane %v401_v51, 1  ;;  %v1004_v9 = vmul.f32 0.125, %v931_v53  ;;  %v471_v24 = vmax.f32 %v5259_v2, %v470_v29 }
  0x9c   : > { %v1265_v19 = vsel %vm1140_vm3, %v986_v46, %v1264_v4  ;;  %v437_v52 = vmax.f32 %v435_v60, %v436_v36  ;;  %v507_v12 = vmax.f32 %v5266_v5, %v506_v7  ;;  %v578_v16 = vrot.slane %v5308_v25, 4 }
  0x9d   : > { %v1266_v18 = vsel %vm1142_vm4, %v992_v56, %v1265_v19  ;;  %v403_v10 = vmax.f32 %v401_v51, %v402_v63  ;;  %v472_v22 = vrot.slane %v471_v24, 2  ;;  %v543_v43 = vmax.f32 %v5282_v13, %v542_v35 }
  0x9e   : > { %v1267_v14 = vsel %vm1144_vm5, %v998_v15, %v1266_v18  ;;  %v614_v47 = vrot.slane %v5330_v37, 4  ;;  %v650_v62 = vrot.slane %v5351_v48, 4  ;;  %v438_v61 = vrot.slane %v437_v52, 1 }
  0x9f   : > { %v5496_v32 = vsel %vm1146_vm6, %v1004_v9, %v1267_v14  ;;  %v508_v23 = vrot.slane %v507_v12, 2  ;;  %v579_v30 = vmax.f32 %v5308_v25, %v578_v16  ;;  %v687_v39 = vadd.f32 %v7313_v54, %v5253_v0 }
  0xa0   : > { %7314 = vst [vmem:[#allocation15_spill] sm:$0xff] %v5496_v32  ;;  %1304 = vrot.lane.b32.xlu1 %v5496_v32, %s5063_s21  ;;  %v473_v34 = vmax.f32 %v471_v24, %v472_v22  ;;  %v544_v57 = vrot.slane %v543_v43, 2  ;;  %v615_v3 = vmax.f32 %v5330_v37, %v614_v47  ;;  %v651_v31 = vmax.f32 %v5351_v48, %v650_v62 }
  0xa1   : > { %v439_v38 = vmax.f32 %v437_v52, %v438_v61  ;;  %v509_v58 = vmax.f32 %v507_v12, %v508_v23  ;;  %v580_v6 = vrot.slane %v579_v30, 2  ;;  %v688_v11 = vrot.slane %v687_v39, 2 }
  0xa2   : > { %v474_v8 = vrot.slane %v473_v34, 1  ;;  %v545_v17 = vmax.f32 %v543_v43, %v544_v57  ;;  %v616_v40 = vrot.slane %v615_v3, 2  ;;  %v652_v45 = vrot.slane %v651_v31, 2 }
  0xa3   : > { %v510_v46 = vrot.slane %v509_v58, 1  ;;  %v581_v50 = vmax.f32 %v579_v30, %v580_v6  ;;  %v1155_v51 = vsel %vm1134_vm0, %v439_v38, %v403_v10  ;;  %v689_v53 = vadd.f32 %v688_v11, %v687_v39 }
  0xa4   : > { %v475_v0 = vmax.f32 %v473_v34, %v474_v8  ;;  %v546_v56 = vrot.slane %v545_v17, 1  ;;  %v617_v4 = vmax.f32 %v615_v3, %v616_v40  ;;  %v653_v60 = vmax.f32 %v651_v31, %v652_v45 }
  0xa5   : > { %v511_v15 = vmax.f32 %v509_v58, %v510_v46  ;;  %v582_v19 = vrot.slane %v581_v50, 1  ;;  %v690_v63 = vrot.slane %v689_v53, 1  ;;  %v723_v9 = vadd.f32 %v434_v42, %v5256_v1 }
  0xa6   : > { %v547_v18 = vmax.f32 %v545_v17, %v546_v56  ;;  %v618_v36 = vrot.slane %v617_v4, 1  ;;  %v654_v14 = vrot.slane %v653_v60, 1  ;;  %v1156_v24 = vsel %vm1136_vm1, %v475_v0, %v1155_v51 }
  0xa7   : > { %v583_v52 = vmax.f32 %v581_v50, %v582_v19  ;;  %v1157_v12 = vsel %vm1138_vm2, %v511_v15, %v1156_v24  ;;  %v691_v22 = vadd.f32 %v690_v63, %v689_v53  ;;  %v724_v10 = vrot.slane %v723_v9, 2 }
  0xa8   : > { %v619_v43 = vmax.f32 %v617_v4, %v618_v36  ;;  %v655_v61 = vmax.f32 %v653_v60, %v654_v14  ;;  %v1158_v23 = vsel %vm1140_vm3, %v547_v18, %v1157_v12  ;;  %v759_v30 = vadd.f32 %v470_v29, %v5259_v2 }
  0xa9   : > { %v1159_v54 = vsel %vm1142_vm4, %v583_v52, %v1158_v23  ;;  %v725_v39 = vadd.f32 %v724_v10, %v723_v9  ;;  %v795_v1 = vadd.f32 %v506_v7, %v5266_v5  ;;  %v831_v42 = vadd.f32 %v542_v35, %v5282_v13 }
  0xaa   : > { %v1160_v34 = vsel %vm1144_vm5, %v619_v43, %v1159_v54  ;;  %v760_v57 = vrot.slane %v759_v30, 2  ;;  %v867_v3 = vadd.f32 %v578_v16, %v5308_v25  ;;  %v903_v31 = vadd.f32 %v614_v47, %v5330_v37 }
  0xab   : > { %v1161_v38 = vsel %vm1146_vm6, %v655_v61, %v1160_v34  ;;  %v726_v58 = vrot.slane %v725_v39, 1  ;;  %v796_v6 = vrot.slane %v795_v1, 2  ;;  %v832_v11 = vrot.slane %v831_v42, 2 }
  0xac   : > { %1187 = vrot.lane.b32.xlu0 %v1161_v38, %s5063_s21  ;;  %v761_v2 = vadd.f32 %v760_v57, %v759_v30  ;;  %v868_v29 = vrot.slane %v867_v3, 2  ;;  %v904_v8 = vrot.slane %v903_v31, 2  ;;  %v939_v5 = vadd.f32 %v650_v62, %v5351_v48 }
  0xad   : > { %v727_v13 = vadd.f32 %v726_v58, %v725_v39  ;;  %v797_v7 = vadd.f32 %v796_v6, %v795_v1  ;;  %v833_v35 = vadd.f32 %v832_v11, %v831_v42  ;;  %v964_v17 = vmul.f32 0.125, %v691_v22 }
  0xae   : > { %v762_v40 = vrot.slane %v761_v2, 1  ;;  %v869_v25 = vadd.f32 %v868_v29, %v867_v3  ;;  %v905_v16 = vadd.f32 %v904_v8, %v903_v31  ;;  %v940_v37 = vrot.slane %v939_v5, 2 }
  0xaf   : > { %v798_v47 = vrot.slane %v797_v7, 1  ;;  %v834_v45 = vrot.slane %v833_v35, 1  ;;  %v970_v46 = vmul.f32 0.125, %v727_v13  ;;  %v7315_v50 = vrot.slane %v5295_v20, 4 }
  0xb0   : > { %v763_v53 = vadd.f32 %v762_v40, %v761_v2  ;;  %v870_v0 = vrot.slane %v869_v25, 1  ;;  %v906_v56 = vrot.slane %v905_v16, 1  ;;  %v941_v4 = vadd.f32 %v940_v37, %v939_v5  ;;  %v5565_v37 = vld [vmem:[%s5246_s10 + $0x50] sm:$0xff] }
  0xb1   : > { %v681_v51 = vadd.f32 %v7315_v50, %v5295_v20  ;;  %v799_v48 = vadd.f32 %v798_v47, %v797_v7  ;;  %v835_v62 = vadd.f32 %v834_v45, %v833_v35  ;;  %v1276_v60 = vsel %vm1134_vm0, %v970_v46, %v964_v17 }
  0xb2   : > { %v871_v19 = vadd.f32 %v870_v0, %v869_v25  ;;  %v907_v63 = vadd.f32 %v906_v56, %v905_v16  ;;  %v942_v9 = vrot.slane %v941_v4, 1  ;;  %v976_v18 = vmul.f32 0.125, %v763_v53  ;;  %v5562_v16 = vld [vmem:[%s5246_s10 + $0x20] sm:$0xff] }
  0xb3   : > { %v682_v15 = vrot.slane %v681_v51, 2  ;;  %v982_v36 = vmul.f32 0.125, %v799_v48  ;;  %v988_v14 = vmul.f32 0.125, %v835_v62  ;;  %v7316_v52 = vrot.slane %v5298_v21, 4  ;;  %v5568_v56 = vld [vmem:[%s5246_s10 + $0x80] sm:$0xff] }
  0xb4   : > { %v943_v12 = vadd.f32 %v942_v9, %v941_v4  ;;  %v994_v22 = vmul.f32 0.125, %v871_v19  ;;  %v1000_v10 = vmul.f32 0.125, %v907_v63  ;;  %v1277_v43 = vsel %vm1136_vm1, %v976_v18, %v1276_v60  ;;  %v5573_v9 = vld [vmem:[%s5246_s10 + $0xb0] sm:$0xff]  ;;  %v5576_v18 = vld [vmem:[%s5246_s10 + $0x18] sm:$0xff] }
  0xb5   : > { %v683_v24 = vadd.f32 %v682_v15, %v681_v51  ;;  %v717_v20 = vadd.f32 %v7316_v52, %v5298_v21  ;;  %v1278_v61 = vsel %vm1138_vm2, %v982_v36, %v1277_v43  ;;  %v7317_v54 = vrot.slane %v5313_v28, 4  ;;  %v5579_v36 = vld [vmem:[%s5246_s10 + $0x48] sm:$0xff] }
  0xb6   : > { %v1006_v1 = vmul.f32 0.125, %v943_v12  ;;  %v1279_v42 = vsel %vm1140_vm3, %v988_v14, %v1278_v61  ;;  %v7318_v34 = vrot.slane %v5324_v33, 4  ;;  %v7319_v57 = vrot.slane %v5341_v44, 4  ;;  %v5584_v61 = vld [vmem:[%s5246_s10 + $0xe0] sm:$0xff] }
  0xb7   : > { %v684_v23 = vrot.slane %v683_v24, 1  ;;  %v718_v30 = vrot.slane %v717_v20, 2  ;;  %v753_v39 = vadd.f32 %v7317_v54, %v5313_v28  ;;  %v1280_v31 = vsel %vm1142_vm4, %v994_v22, %v1279_v42 }
  0xb8   : > { %v789_v21 = vadd.f32 %v7318_v34, %v5324_v33  ;;  %v825_v3 = vadd.f32 %v7319_v57, %v5341_v44  ;;  %v1281_v28 = vsel %vm1144_vm5, %v1000_v10, %v1280_v31  ;;  %v7320_v29 = vrot.slane %v5362_v55, 4  ;;  %v5595_v57 = vld [vmem:[%s5246_s10 + $0x110] sm:$0xff] }
  0xb9   : > { %v685_v38 = vadd.f32 %v684_v23, %v683_v24  ;;  %v719_v58 = vadd.f32 %v718_v30, %v717_v20  ;;  %v754_v6 = vrot.slane %v753_v39, 2  ;;  %v5551_v33 = vsel %vm1146_vm6, %v1006_v1, %v1281_v28  ;;  %v5587_v23 = vld [vmem:[%s5246_s10 + $0x78] sm:$0xff] }
  0xba   : > { %v790_v11 = vrot.slane %v789_v21, 2  ;;  %v826_v2 = vrot.slane %v825_v3, 2  ;;  %v861_v8 = vadd.f32 %v7320_v29, %v5362_v55  ;;  %7321 = vst [vmem:[#allocation16_spill] sm:$0xff] %v5551_v33  ;;  %v7322_v13 = vrot.slane %v5380_v26, 4  ;;  %1308 = vrot.lane.b32.xlu1 %v5551_v33, %s5063_s21  ;;  %v5607_v29 = vld [vmem:[%s5246_s10 + $0xd8] sm:$0xff] }
  0xbb   : > { %v720_v5 = vrot.slane %v719_v58, 1  ;;  %v755_v44 = vadd.f32 %v754_v6, %v753_v39  ;;  %v7323_v25 = vrot.slane %v5390_v41, 4  ;;  %v323_v62 = vmax.f32 %v5562_v16, %v5565_v37 }
  0xbc   : > { %v897_v7 = vadd.f32 %v7322_v13, %v5380_v26  ;;  %v791_v35 = vadd.f32 %v790_v11, %v789_v21  ;;  %v827_v17 = vadd.f32 %v826_v2, %v825_v3  ;;  %v862_v40 = vrot.slane %v861_v8, 2  ;;  %v5598_v3 = vld [vmem:[%s5246_s10 + $0xa8] sm:$0xff] }
  0xbd   : > { %v933_v55 = vadd.f32 %v7323_v25, %v5390_v41  ;;  %v721_v47 = vadd.f32 %v720_v5, %v719_v58  ;;  %v756_v45 = vrot.slane %v755_v44, 1  ;;  %v963_v26 = vmul.f32 0.125, %v685_v38  ;;  %v5623_v25 = vld [vmem:[%s5246_s10 + $0x108] sm:$0xff] }
  0xbe   : > { %v898_v46 = vrot.slane %v897_v7, 2  ;;  %v792_v50 = vrot.slane %v791_v35, 1  ;;  %v828_v51 = vrot.slane %v827_v17, 1  ;;  %v863_v53 = vadd.f32 %v862_v40, %v861_v8  ;;  %v5620_v40 = vld [vmem:[%s5246_s10 + $0x140] sm:$0xff] }
  0xbf   : > { %v934_v0 = vrot.slane %v933_v55, 2  ;;  %v757_v4 = vadd.f32 %v756_v45, %v755_v44  ;;  %v969_v41 = vmul.f32 0.125, %v721_v47  ;;  %v324_v20 = vmax.f32 %v323_v62, %v5568_v56 }
  0xc0   : > { %v899_v48 = vadd.f32 %v898_v46, %v897_v7  ;;  %v793_v60 = vadd.f32 %v792_v50, %v791_v35  ;;  %v829_v15 = vadd.f32 %v828_v51, %v827_v17  ;;  %v864_v19 = vrot.slane %v863_v53, 1 }
  0xc1   : > { %v935_v63 = vadd.f32 %v934_v0, %v933_v55  ;;  %v975_v24 = vmul.f32 0.125, %v757_v4  ;;  %v1269_v52 = vsel %vm1134_vm0, %v969_v41, %v963_v26  ;;  %v325_v39 = vmax.f32 %v324_v20, %v5573_v9 }
  0xc2   : > { %v900_v14 = vrot.slane %v899_v48, 1  ;;  %v865_v12 = vadd.f32 %v864_v19, %v863_v53  ;;  %v981_v10 = vmul.f32 0.125, %v793_v60  ;;  %v987_v43 = vmul.f32 0.125, %v829_v15  ;;  %v5637_v53 = vld [vmem:[%s5246_s10 + $0x170] sm:$0xff] }
  0xc3   : > { %v936_v22 = vrot.slane %v935_v63, 1  ;;  %v1270_v54 = vsel %vm1136_vm1, %v975_v24, %v1269_v52  ;;  %v316_v1 = vmax.f32 %v5576_v18, %v5579_v36  ;;  %v365_v31 = vadd.f32 %v5565_v37, %v5562_v16 }
  0xc4   : > { %v901_v30 = vadd.f32 %v900_v14, %v899_v48  ;;  %v993_v34 = vmul.f32 0.125, %v865_v12  ;;  %v1271_v21 = vsel %vm1138_vm2, %v981_v10, %v1270_v54  ;;  %v326_v6 = vmax.f32 %v325_v39, %v5584_v61 }
  0xc5   : > { %v937_v42 = vadd.f32 %v936_v22, %v935_v63  ;;  %v1272_v58 = vsel %vm1140_vm3, %v987_v43, %v1271_v21  ;;  %v317_v28 = vmax.f32 %v316_v1, %v5587_v23  ;;  %v366_v8 = vadd.f32 %v365_v31, %v5568_v56  ;;  %v5651_v63 = vld [vmem:[%s5246_s10 + $0x138] sm:$0xff] }
  0xc6   : > { %v999_v38 = vmul.f32 0.125, %v901_v30  ;;  %v1273_v2 = vsel %vm1142_vm4, %v993_v34, %v1272_v58  ;;  %v358_v5 = vadd.f32 %v5579_v36, %v5576_v18  ;;  %v327_v13 = vmax.f32 %v326_v6, %v5595_v57  ;;  %v5662_v30 = vld [vmem:[%s5246_s10 + $0x168] sm:$0xff] }
  0xc7   : > { %v1005_v11 = vmul.f32 0.125, %v937_v42  ;;  %v318_v7 = vmax.f32 %v317_v28, %v5598_v3  ;;  %v410_v35 = vrot.slane %v5562_v16, 4  ;;  %v367_v55 = vadd.f32 %v366_v8, %v5573_v9 }
  0xc8   : > { %v1274_v44 = vsel %vm1144_vm5, %v999_v38, %v1273_v2  ;;  %v359_v47 = vadd.f32 %v358_v5, %v5587_v23  ;;  %v446_v45 = vrot.slane %v5565_v37, 4  ;;  %v328_v46 = vmax.f32 %v327_v13, %v5620_v40 }
  0xc9   : > { %v5617_v17 = vsel %vm1146_vm6, %v1005_v11, %v1274_v44  ;;  %v319_v26 = vmax.f32 %v318_v7, %v5607_v29  ;;  %v411_v50 = vmax.f32 %v5562_v16, %v410_v35  ;;  %v482_v51 = vrot.slane %v5568_v56, 4 }
  0xca   : > { %7324 = vst [vmem:[#allocation17_spill] sm:$0xff] %v5617_v17  ;;  %1306 = vrot.lane.b32.xlu0 %v5617_v17, %s5063_s21  ;;  %v368_v0 = vadd.f32 %v367_v55, %v5584_v61  ;;  %v360_v4 = vadd.f32 %v359_v47, %v5598_v3  ;;  %v447_v48 = vmax.f32 %v5565_v37, %v446_v45  ;;  %v518_v41 = vrot.slane %v5573_v9, 4 }
  0xcb   : > { %v329_v62 = vmax.f32 %v328_v46, %v5637_v53  ;;  %v320_v60 = vmax.f32 %v319_v26, %v5623_v25  ;;  %v412_v15 = vrot.slane %v411_v50, 2  ;;  %v483_v19 = vmax.f32 %v5568_v56, %v482_v51 }
  0xcc   : > { %v369_v14 = vadd.f32 %v368_v0, %v5595_v57  ;;  %v361_v24 = vadd.f32 %v360_v4, %v5607_v29  ;;  %v448_v52 = vrot.slane %v447_v48, 2  ;;  %v519_v20 = vmax.f32 %v5573_v9, %v518_v41 }
  0xcd   : > { %1024 = vrot.lane.b32.xlu1 %v329_v62, %s5063_s21  ;;  %v321_v12 = vmax.f32 %v320_v60, %v5651_v63  ;;  %v413_v22 = vmax.f32 %v411_v50, %v412_v15  ;;  %v484_v10 = vrot.slane %v483_v19, 2  ;;  %v554_v43 = vrot.slane %v5584_v61, 4 }
  0xce   : > { %v370_v54 = vadd.f32 %v369_v14, %v5620_v40  ;;  %v362_v39 = vadd.f32 %v361_v24, %v5623_v25  ;;  %v449_v1 = vmax.f32 %v447_v48, %v448_v52  ;;  %v520_v42 = vrot.slane %v519_v20, 2 }
  0xcf   : > { %v322_v34 = vmax.f32 %v321_v12, %v5662_v30  ;;  %v414_v21 = vrot.slane %v413_v22, 1  ;;  %v485_v31 = vmax.f32 %v483_v19, %v484_v10  ;;  %v555_v38 = vmax.f32 %v5584_v61, %v554_v43 }
  0xd0   : > { %v371_v58 = vadd.f32 %v370_v54, %v5637_v53  ;;  %v363_v6 = vadd.f32 %v362_v39, %v5651_v63  ;;  %v450_v28 = vrot.slane %v449_v1, 1  ;;  %v521_v11 = vmax.f32 %v519_v20, %v520_v42 }
  0xd1   : > { %1022 = vrot.lane.b32.xlu0 %v322_v34, %s5063_s21  ;;  %v415_v2 = vmax.f32 %v413_v22, %v414_v21  ;;  %v486_v8 = vrot.slane %v485_v31, 1  ;;  %v556_v5 = vrot.slane %v555_v38, 2  ;;  %v590_v44 = vrot.slane %v5595_v57, 4 }
  0xd2   : > { %v5674_v13 = vmul.f32 0.125, %v371_v58  ;;  %v364_v7 = vadd.f32 %v363_v6, %v5662_v30  ;;  %v451_v55 = vmax.f32 %v449_v1, %v450_v28  ;;  %v522_v47 = vrot.slane %v521_v11, 1 }
  0xd3   : > { %v487_v46 = vmax.f32 %v485_v31, %v486_v8  ;;  %v557_v26 = vmax.f32 %v555_v38, %v556_v5  ;;  %v591_v50 = vmax.f32 %v5595_v57, %v590_v44  ;;  %v626_v0 = vrot.slane %v5620_v40, 4 }
  0xd4   : > { %7325 = vst [vmem:[#allocation18_spill] sm:$0xff] %v5674_v13  ;;  %1063 = vrot.lane.b32.xlu1 %v5674_v13, %s5063_s21  ;;  %v5683_v4 = vmul.f32 0.125, %v364_v7  ;;  %v523_v48 = vmax.f32 %v521_v11, %v522_v47  ;;  %v662_v62 = vrot.slane %v5637_v53, 4  ;;  %v1169_v60 = vsel %vm1134_vm0, %v451_v55, %v415_v2 }
  0xd5   : > { %v558_v15 = vrot.slane %v557_v26, 1  ;;  %v592_v19 = vrot.slane %v591_v50, 2  ;;  %v627_v14 = vmax.f32 %v5620_v40, %v626_v0  ;;  %v1170_v24 = vsel %vm1136_vm1, %v487_v46, %v1169_v60 }
  0xd6   : > { %7326 = vst [vmem:[#allocation19_spill] sm:$0xff] %v5683_v4  ;;  %1061 = vrot.lane.b32.xlu0 %v5683_v4, %s5063_s21  ;;  %v663_v52 = vmax.f32 %v5637_v53, %v662_v62  ;;  %v1171_v20 = vsel %vm1138_vm2, %v523_v48, %v1170_v24  ;;  %v404_v12 = vrot.slane %v5576_v18, 4  ;;  %v440_v22 = vrot.slane %v5579_v36, 4 }
  0xd7   : > { %v559_v10 = vmax.f32 %v557_v26, %v558_v15  ;;  %v593_v54 = vmax.f32 %v591_v50, %v592_v19  ;;  %v628_v39 = vrot.slane %v627_v14, 2  ;;  %v476_v1 = vrot.slane %v5587_v23, 4 }
  0xd8   : > { %v664_v42 = vrot.slane %v663_v52, 2  ;;  %v405_v34 = vmax.f32 %v5576_v18, %v404_v12  ;;  %v441_v21 = vmax.f32 %v5579_v36, %v440_v22  ;;  %v512_v31 = vrot.slane %v5598_v3, 4 }
  0xd9   : > { %v594_v38 = vrot.slane %v593_v54, 1  ;;  %v629_v58 = vmax.f32 %v627_v14, %v628_v39  ;;  %v1172_v6 = vsel %vm1140_vm3, %v559_v10, %v1171_v20  ;;  %v477_v28 = vmax.f32 %v5587_v23, %v476_v1 }
  0xda   : > { %v665_v11 = vmax.f32 %v663_v52, %v664_v42  ;;  %v406_v2 = vrot.slane %v405_v34, 2  ;;  %v442_v8 = vrot.slane %v441_v21, 2  ;;  %v513_v5 = vmax.f32 %v5598_v3, %v512_v31 }
  0xdb   : > { %v595_v7 = vmax.f32 %v593_v54, %v594_v38  ;;  %v630_v55 = vrot.slane %v629_v58, 1  ;;  %v478_v47 = vrot.slane %v477_v28, 2  ;;  %v548_v46 = vrot.slane %v5607_v29, 4 }
  0xdc   : > { %v666_v26 = vrot.slane %v665_v11, 1  ;;  %v407_v50 = vmax.f32 %v405_v34, %v406_v2  ;;  %v443_v48 = vmax.f32 %v441_v21, %v442_v8  ;;  %v514_v60 = vrot.slane %v513_v5, 2 }
  0xdd   : > { %v631_v15 = vmax.f32 %v629_v58, %v630_v55  ;;  %v1173_v19 = vsel %vm1142_vm4, %v595_v7, %v1172_v6  ;;  %v479_v14 = vmax.f32 %v477_v28, %v478_v47  ;;  %v549_v24 = vmax.f32 %v5607_v29, %v548_v46 }
  0xde   : > { %v667_v52 = vmax.f32 %v665_v11, %v666_v26  ;;  %v408_v20 = vrot.slane %v407_v50, 1  ;;  %v444_v10 = vrot.slane %v443_v48, 1  ;;  %v515_v54 = vmax.f32 %v513_v5, %v514_v60 }
  0xdf   : > { %v1174_v39 = vsel %vm1144_vm5, %v631_v15, %v1173_v19  ;;  %v480_v42 = vrot.slane %v479_v14, 1  ;;  %v550_v38 = vrot.slane %v549_v24, 2  ;;  %v584_v34 = vrot.slane %v5623_v25, 4 }
  0xe0   : > { %v1175_v21 = vsel %vm1146_vm6, %v667_v52, %v1174_v39  ;;  %v409_v58 = vmax.f32 %v407_v50, %v408_v20  ;;  %v445_v2 = vmax.f32 %v443_v48, %v444_v10  ;;  %v516_v6 = vrot.slane %v515_v54, 1 }
  0xe1   : > { %1191 = vrot.lane.b32.xlu1 %v1175_v21, %s5063_s21  ;;  %v481_v28 = vmax.f32 %v479_v14, %v480_v42  ;;  %v551_v8 = vmax.f32 %v549_v24, %v550_v38  ;;  %v585_v11 = vmax.f32 %v5623_v25, %v584_v34  ;;  %v620_v5 = vrot.slane %v5651_v63, 4 }
  0xe2   : > { %v517_v7 = vmax.f32 %v515_v54, %v516_v6  ;;  %v656_v55 = vrot.slane %v5662_v30, 4  ;;  %v1162_v47 = vsel %vm1134_vm0, %v445_v2, %v409_v58  ;;  %v699_v26 = vadd.f32 %v410_v35, %v5562_v16 }
  0xe3   : > { %v552_v50 = vrot.slane %v551_v8, 1  ;;  %v586_v48 = vrot.slane %v585_v11, 2  ;;  %v621_v60 = vmax.f32 %v5651_v63, %v620_v5  ;;  %v1163_v15 = vsel %vm1136_vm1, %v481_v28, %v1162_v47 }
  0xe4   : > { %v657_v19 = vmax.f32 %v5662_v30, %v656_v55  ;;  %v1164_v14 = vsel %vm1138_vm2, %v517_v7, %v1163_v15  ;;  %v700_v24 = vrot.slane %v699_v26, 2  ;;  %v735_v52 = vadd.f32 %v446_v45, %v5565_v37 }
  0xe5   : > { %v553_v16 = vmax.f32 %v551_v8, %v552_v50  ;;  %v587_v35 = vmax.f32 %v585_v11, %v586_v48  ;;  %v622_v20 = vrot.slane %v621_v60, 2  ;;  %v771_v10 = vadd.f32 %v482_v51, %v5568_v56 }
  0xe6   : > { %v658_v54 = vrot.slane %v657_v19, 2  ;;  %v701_v39 = vadd.f32 %v700_v24, %v699_v26  ;;  %v736_v42 = vrot.slane %v735_v52, 2  ;;  %v807_v38 = vadd.f32 %v518_v41, %v5573_v9 }
  0xe7   : > { %v588_v21 = vrot.slane %v587_v35, 1  ;;  %v623_v58 = vmax.f32 %v621_v60, %v622_v20  ;;  %v1165_v2 = vsel %vm1140_vm3, %v553_v16, %v1164_v14  ;;  %v772_v6 = vrot.slane %v771_v10, 2 }
  0xe8   : > { %v659_v37 = vmax.f32 %v657_v19, %v658_v54  ;;  %v702_v45 = vrot.slane %v701_v39, 1  ;;  %v737_v28 = vadd.f32 %v736_v42, %v735_v52  ;;  %v808_v8 = vrot.slane %v807_v38, 2 }
  0xe9   : > { %v589_v11 = vmax.f32 %v587_v35, %v588_v21  ;;  %v624_v7 = vrot.slane %v623_v58, 1  ;;  %v773_v47 = vadd.f32 %v772_v6, %v771_v10  ;;  %v843_v56 = vadd.f32 %v554_v43, %v5584_v61 }
  0xea   : > { %v660_v51 = vrot.slane %v659_v37, 1  ;;  %v703_v26 = vadd.f32 %v702_v45, %v701_v39  ;;  %v738_v50 = vrot.slane %v737_v28, 1  ;;  %v809_v9 = vadd.f32 %v808_v8, %v807_v38 }
  0xeb   : > { %v625_v41 = vmax.f32 %v623_v58, %v624_v7  ;;  %v1166_v48 = vsel %vm1142_vm4, %v589_v11, %v1165_v2  ;;  %v774_v60 = vrot.slane %v773_v47, 1  ;;  %v844_v15 = vrot.slane %v843_v56, 2 }
  0xec   : > { %v661_v19 = vmax.f32 %v659_v37, %v660_v51  ;;  %v739_v14 = vadd.f32 %v738_v50, %v737_v28  ;;  %v810_v24 = vrot.slane %v809_v9, 1  ;;  %v879_v52 = vadd.f32 %v590_v44, %v5595_v57 }
  0xed   : > { %v1167_v16 = vsel %vm1144_vm5, %v625_v41, %v1166_v48  ;;  %v775_v35 = vadd.f32 %v774_v60, %v773_v47  ;;  %v845_v61 = vadd.f32 %v844_v15, %v843_v56  ;;  %v915_v43 = vadd.f32 %v626_v0, %v5620_v40 }
  0xee   : > { %v1168_v20 = vsel %vm1146_vm6, %v661_v19, %v1167_v16  ;;  %v811_v10 = vadd.f32 %v810_v24, %v809_v9  ;;  %v880_v54 = vrot.slane %v879_v52, 2  ;;  %v951_v39 = vadd.f32 %v662_v62, %v5637_v53 }
  0xef   : > { %1189 = vrot.lane.b32.xlu0 %v1168_v20, %s5063_s21  ;;  %v846_v42 = vrot.slane %v845_v61, 1  ;;  %v916_v57 = vrot.slane %v915_v43, 2  ;;  %v966_v44 = vmul.f32 0.125, %v703_v26  ;;  %v972_v38 = vmul.f32 0.125, %v739_v14 }
  0xf0   : > { %v881_v21 = vadd.f32 %v880_v54, %v879_v52  ;;  %v952_v58 = vrot.slane %v951_v39, 2  ;;  %v978_v2 = vmul.f32 0.125, %v775_v35  ;;  %v984_v6 = vmul.f32 0.125, %v811_v10 }
  0xf1   : > { %v847_v37 = vadd.f32 %v846_v42, %v845_v61  ;;  %v917_v40 = vadd.f32 %v916_v57, %v915_v43  ;;  %v1290_v0 = vsel %vm1134_vm0, %v972_v38, %v966_v44  ;;  %v693_v45 = vadd.f32 %v404_v12, %v5576_v18  ;;  %v5802_v44 = vld [vmem:[%s5246_s10 + $0x28] sm:$0xff]  ;;  %v5805_v38 = vld [vmem:[%s5246_s10 + $0x58] sm:$0xff] }
  0xf2   : > { %v882_v28 = vrot.slane %v881_v21, 1  ;;  %v953_v53 = vadd.f32 %v952_v58, %v951_v39  ;;  %v1291_v62 = vsel %vm1136_vm1, %v978_v2, %v1290_v0  ;;  %v729_v8 = vadd.f32 %v440_v22, %v5579_v36 }
  0xf3   : > { %v918_v11 = vrot.slane %v917_v40, 1  ;;  %v990_v7 = vmul.f32 0.125, %v847_v37  ;;  %v1292_v47 = vsel %vm1138_vm2, %v984_v6, %v1291_v62  ;;  %v694_v56 = vrot.slane %v693_v45, 2  ;;  %v5811_v62 = vld [vmem:[%s5246_s10 + $0x88] sm:$0xff] }
  0xf4   : > { %v883_v51 = vadd.f32 %v882_v28, %v881_v21  ;;  %v954_v26 = vrot.slane %v953_v53, 1  ;;  %v730_v50 = vrot.slane %v729_v8, 2  ;;  %v765_v18 = vadd.f32 %v476_v1, %v5587_v23 }
  0xf5   : > { %v919_v12 = vadd.f32 %v918_v11, %v917_v40  ;;  %v1293_v9 = vsel %vm1140_vm3, %v990_v7, %v1292_v47  ;;  %v695_v41 = vadd.f32 %v694_v56, %v693_v45  ;;  %v801_v36 = vadd.f32 %v512_v31, %v5598_v3 }
  0xf6   : > { %v955_v22 = vadd.f32 %v954_v26, %v953_v53  ;;  %v996_v48 = vmul.f32 0.125, %v883_v51  ;;  %v731_v60 = vadd.f32 %v730_v50, %v729_v8  ;;  %v766_v15 = vrot.slane %v765_v18, 2 }
  0xf7   : > { %v1002_v19 = vmul.f32 0.125, %v919_v12  ;;  %v696_v14 = vrot.slane %v695_v41, 1  ;;  %v802_v24 = vrot.slane %v801_v36, 2  ;;  %v837_v52 = vadd.f32 %v548_v46, %v5607_v29 }
  0xf8   : > { %v1008_v23 = vmul.f32 0.125, %v955_v22  ;;  %v1294_v1 = vsel %vm1142_vm4, %v996_v48, %v1293_v9  ;;  %v732_v16 = vrot.slane %v731_v60, 1  ;;  %v767_v35 = vadd.f32 %v766_v15, %v765_v18  ;;  %v5819_v18 = vld [vmem:[%s5246_s10 + $0xb8] sm:$0xff]  ;;  %v5822_v9 = vld [vmem:[%s5246_s10 + $0xe8] sm:$0xff] }
  0xf9   : > { %v1295_v3 = vsel %vm1144_vm5, %v1002_v19, %v1294_v1  ;;  %v697_v31 = vadd.f32 %v696_v14, %v695_v41  ;;  %v803_v61 = vadd.f32 %v802_v24, %v801_v36  ;;  %v838_v43 = vrot.slane %v837_v52, 2  ;;  %v5829_v19 = vld [vmem:[%s5246_s10 + $0x118] sm:$0xff] }
  0xfa   : > { %v5788_v20 = vsel %vm1146_vm6, %v1008_v23, %v1295_v3  ;;  %v733_v10 = vadd.f32 %v732_v16, %v731_v60  ;;  %v768_v54 = vrot.slane %v767_v35, 1  ;;  %v873_v29 = vadd.f32 %v584_v34, %v5623_v25  ;;  %v5836_v23 = vld [vmem:[%s5246_s10 + $0x178] sm:$0xff] }
  0xfb   : > { %7327 = vst [vmem:[#allocation20_spill] sm:$0xff] %v5788_v20  ;;  %1312 = vrot.lane.b32.xlu1 %v5788_v20, %s5063_s21  ;;  %v804_v46 = vrot.slane %v803_v61, 1  ;;  %v839_v39 = vadd.f32 %v838_v43, %v837_v52  ;;  %v909_v42 = vadd.f32 %v620_v5, %v5651_v63  ;;  %v945_v57 = vadd.f32 %v656_v55, %v5662_v30  ;;  %v5833_v52 = vld [vmem:[%s5246_s10 + $0x148] sm:$0xff] }
  0xfc   : > { %v769_v21 = vadd.f32 %v768_v54, %v767_v35  ;;  %v874_v25 = vrot.slane %v873_v29, 2  ;;  %v965_v34 = vmul.f32 0.125, %v697_v31  ;;  %v971_v58 = vmul.f32 0.125, %v733_v10 }
  0xfd   : > { %v805_v2 = vadd.f32 %v804_v46, %v803_v61  ;;  %v840_v6 = vrot.slane %v839_v39, 1  ;;  %v910_v37 = vrot.slane %v909_v42, 2  ;;  %v946_v40 = vrot.slane %v945_v57, 2 }
  0xfe   : > { %v875_v0 = vadd.f32 %v874_v25, %v873_v29  ;;  %v977_v45 = vmul.f32 0.125, %v769_v21  ;;  %v1283_v63 = vsel %vm1134_vm0, %v971_v58, %v965_v34  ;;  %v372_v30 = vadd.f32 %v5805_v38, %v5802_v44 }
  0xff   : > { %v841_v5 = vadd.f32 %v840_v6, %v839_v39  ;;  %v911_v55 = vadd.f32 %v910_v37, %v909_v42  ;;  %v947_v28 = vadd.f32 %v946_v40, %v945_v57  ;;  %v983_v53 = vmul.f32 0.125, %v805_v2  ;;  %v5847_v39 = vpop.permute.xlu1 %1020  ;;  %v5863_v37 = vpop.permute.xlu0 %1016 }
 0x100   : > { %v876_v8 = vrot.slane %v875_v0, 1  ;;  %v1284_v11 = vsel %vm1136_vm1, %v977_v45, %v1283_v63  ;;  %v373_v7 = vadd.f32 %v372_v30, %v5811_v62  ;;  %v330_v47 = vmax.f32 %v5802_v44, %v5805_v38 }
 0x101   : > { %v912_v56 = vrot.slane %v911_v55, 1  ;;  %v948_v51 = vrot.slane %v947_v28, 1  ;;  %v989_v26 = vmul.f32 0.125, %v841_v5  ;;  %v1285_v50 = vsel %vm1138_vm2, %v983_v53, %v1284_v11 }
 0x102   : > { %v877_v12 = vadd.f32 %v876_v8, %v875_v0  ;;  %v374_v41 = vadd.f32 %v373_v7, %v5819_v18  ;;  %v331_v36 = vmax.f32 %v330_v47, %v5811_v62  ;;  %v416_v22 = vrot.slane %v5802_v44, 4 }
 0x103   : > { %v913_v48 = vadd.f32 %v912_v56, %v911_v55  ;;  %v949_v60 = vadd.f32 %v948_v51, %v947_v28  ;;  %v1286_v15 = vsel %vm1140_vm3, %v989_v26, %v1285_v50  ;;  %v452_v14 = vrot.slane %v5805_v38, 4  ;;  %v5884_v50 = vpop.permute.xlu1 %1055 }
 0x104   : > { %v995_v24 = vmul.f32 0.125, %v877_v12  ;;  %v375_v1 = vadd.f32 %v374_v41, %v5822_v9  ;;  %v332_v16 = vmax.f32 %v331_v36, %v5819_v18  ;;  %v488_v35 = vrot.slane %v5811_v62, 4 }
 0x105   : > { %v1001_v3 = vmul.f32 0.125, %v913_v48  ;;  %v1007_v31 = vmul.f32 0.125, %v949_v60  ;;  %v524_v61 = vrot.slane %v5819_v18, 4  ;;  %v560_v43 = vrot.slane %v5822_v9, 4 }
 0x106   : > { %v1287_v10 = vsel %vm1142_vm4, %v995_v24, %v1286_v15  ;;  %v376_v54 = vadd.f32 %v375_v1, %v5829_v19  ;;  %v333_v29 = vmax.f32 %v332_v16, %v5822_v9  ;;  %v596_v46 = vrot.slane %v5829_v19, 4  ;;  %v5895_v16 = vpop.permute.xlu0 %1018 }
 0x107   : > { %v1288_v42 = vsel %vm1144_vm5, %v1001_v3, %v1287_v10  ;;  %v632_v57 = vrot.slane %v5833_v52, 4  ;;  %v668_v21 = vrot.slane %v5836_v23, 4  ;;  %v705_v25 = vadd.f32 %v416_v22, %v5802_v44 }
 0x108   : > { %v5856_v34 = vsel %vm1146_vm6, %v1007_v31, %v1288_v42  ;;  %v377_v58 = vadd.f32 %v376_v54, %v5833_v52  ;;  %v334_v2 = vmax.f32 %v333_v29, %v5829_v19  ;;  %v741_v6 = vadd.f32 %v452_v14, %v5805_v38 }
 0x109   : > { %7328 = vst [vmem:[#allocation21_spill] sm:$0xff] %v5856_v34  ;;  %1310 = vrot.lane.b32.xlu0 %v5856_v34, %s5063_s21  ;;  %v706_v40 = vrot.slane %v705_v25, 2  ;;  %v777_v0 = vadd.f32 %v488_v35, %v5811_v62  ;;  %v813_v45 = vadd.f32 %v524_v61, %v5819_v18  ;;  %v849_v63 = vadd.f32 %v560_v43, %v5822_v9 }
 0x10a   : > { %v378_v30 = vadd.f32 %v377_v58, %v5836_v23  ;;  %v335_v5 = vmax.f32 %v334_v2, %v5833_v52  ;;  %v742_v55 = vrot.slane %v741_v6, 2  ;;  %v885_v28 = vadd.f32 %v596_v46, %v5829_v19 }
 0x10b   : > { %v707_v53 = vadd.f32 %v706_v40, %v705_v25  ;;  %v778_v8 = vrot.slane %v777_v0, 2  ;;  %v814_v11 = vrot.slane %v813_v45, 2  ;;  %v850_v7 = vrot.slane %v849_v63, 2 }
 0x10c   : > { %v5881_v47 = vmul.f32 0.125, %v378_v30  ;;  %v336_v56 = vmax.f32 %v335_v5, %v5836_v23  ;;  %v743_v51 = vadd.f32 %v742_v55, %v741_v6  ;;  %v886_v26 = vrot.slane %v885_v28, 2  ;;  %v5897_v55 = vpop.permute.xlu1 %1059 }
 0x10d   : > { %v708_v12 = vrot.slane %v707_v53, 1  ;;  %v779_v41 = vadd.f32 %v778_v8, %v777_v0  ;;  %v815_v36 = vadd.f32 %v814_v11, %v813_v45  ;;  %v851_v48 = vadd.f32 %v850_v7, %v849_v63 }
 0x10e   : > { %7329 = vst [vmem:[#allocation22_spill] sm:$0xff] %v5881_v47  ;;  %1065 = vrot.lane.b32.xlu1 %v5881_v47, %s5063_s21  ;;  %1026 = vrot.lane.b32.xlu0 %v336_v56, %s5063_s21  ;;  %v744_v60 = vrot.slane %v743_v51, 1  ;;  %v887_v15 = vadd.f32 %v886_v26, %v885_v28  ;;  %v921_v24 = vadd.f32 %v632_v57, %v5833_v52  ;;  %vm1041_vm7 = vcmask 1047576  }
 0x10f   : > { %v957_v1 = vadd.f32 %v668_v21, %v5836_v23  ;;  %v709_v3 = vadd.f32 %v708_v12, %v707_v53  ;;  %v780_v31 = vrot.slane %v779_v41, 1  ;;  %v816_v10 = vrot.slane %v815_v36, 1  ;;  %v5903_v12 = vpop.permute.xlu0 %1057 }
 0x110   : > { %v852_v54 = vrot.slane %v851_v48, 1  ;;  %v745_v29 = vadd.f32 %v744_v60, %v743_v51  ;;  %v888_v42 = vrot.slane %v887_v15, 1  ;;  %v922_v25 = vrot.slane %v921_v24, 2 }
 0x111   : > { %v958_v58 = vrot.slane %v957_v1, 2  ;;  %v781_v2 = vadd.f32 %v780_v31, %v779_v41  ;;  %v817_v6 = vadd.f32 %v816_v10, %v815_v36  ;;  %v967_v0 = vmul.f32 0.125, %v709_v3 }
 0x112   : > { %v853_v40 = vadd.f32 %v852_v54, %v851_v48  ;;  %v889_v45 = vadd.f32 %v888_v42, %v887_v15  ;;  %v923_v63 = vadd.f32 %v922_v25, %v921_v24  ;;  %v973_v5 = vmul.f32 0.125, %v745_v29  ;;  %v1186_v42 = vpop.permute.xlu1 %1185 }
 0x113   : > { %v959_v30 = vadd.f32 %v958_v58, %v957_v1  ;;  %v979_v28 = vmul.f32 0.125, %v781_v2  ;;  %v985_v8 = vmul.f32 0.125, %v817_v6  ;;  %v417_v11 = vmax.f32 %v5802_v44, %v416_v22 }
 0x114   : > { %v991_v53 = vmul.f32 0.125, %v853_v40  ;;  %v924_v7 = vrot.slane %v923_v63, 1  ;;  %v997_v51 = vmul.f32 0.125, %v889_v45  ;;  %v1297_v26 = vsel %vm1134_vm0, %v973_v5, %v967_v0  ;;  %v1184_v40 = vpop.permute.xlu0 %1183 }
 0x115   : > { %v960_v56 = vrot.slane %v959_v30, 1  ;;  %v1298_v41 = vsel %vm1136_vm1, %v979_v28, %v1297_v26  ;;  %v418_v36 = vrot.slane %v417_v11, 2  ;;  %v453_v48 = vmax.f32 %v5805_v38, %v452_v14 }
 0x116   : > { %v489_v60 = vmax.f32 %v5811_v62, %v488_v35  ;;  %v925_v15 = vadd.f32 %v924_v7, %v923_v63  ;;  %v1299_v22 = vsel %vm1138_vm2, %v985_v8, %v1298_v41  ;;  %v525_v24 = vmax.f32 %v5819_v18, %v524_v61  ;;  %v5936_v7 = vpop.permute.xlu1 %1304 }
 0x117   : > { %v961_v44 = vadd.f32 %v960_v56, %v959_v30  ;;  %v1300_v1 = vsel %vm1140_vm3, %v991_v53, %v1299_v22  ;;  %v419_v3 = vmax.f32 %v417_v11, %v418_v36  ;;  %v454_v31 = vrot.slane %v453_v48, 2 }
 0x118   : > { %v490_v10 = vrot.slane %v489_v60, 2  ;;  %v1003_v54 = vmul.f32 0.125, %v925_v15  ;;  %v1301_v38 = vsel %vm1142_vm4, %v997_v51, %v1300_v1  ;;  %v526_v14 = vrot.slane %v525_v24, 2 }
 0x119   : > { %v1009_v29 = vmul.f32 0.125, %v961_v44  ;;  %v420_v62 = vrot.slane %v419_v3, 1  ;;  %v455_v35 = vmax.f32 %v453_v48, %v454_v31  ;;  %v561_v58 = vmax.f32 %v5822_v9, %v560_v43 }
 0x11a   : > { %v491_v25 = vmax.f32 %v489_v60, %v490_v10  ;;  %v1302_v18 = vsel %vm1144_vm5, %v1003_v54, %v1301_v38  ;;  %v527_v61 = vmax.f32 %v525_v24, %v526_v14  ;;  %v597_v2 = vmax.f32 %v5829_v19, %v596_v46 }
 0x11b   : > { %v633_v6 = vmax.f32 %v5833_v52, %v632_v57  ;;  %v5929_v0 = vsel %vm1146_vm6, %v1009_v29, %v1302_v18  ;;  %v421_v45 = vmax.f32 %v419_v3, %v420_v62  ;;  %v456_v63 = vrot.slane %v455_v35, 1 }
 0x11c   : > { %7330 = vst [vmem:[#allocation23_spill] sm:$0xff] %v5929_v0  ;;  %v492_v30 = vrot.slane %v491_v25, 1  ;;  %1314 = vrot.lane.b32.xlu1 %v5929_v0, %s5063_s21  ;;  %v528_v9 = vrot.slane %v527_v61, 1  ;;  %v562_v43 = vrot.slane %v561_v58, 2  ;;  %v598_v5 = vrot.slane %v597_v2, 2 }
 0x11d   : > { %v634_v28 = vrot.slane %v633_v6, 2  ;;  %v457_v8 = vmax.f32 %v455_v35, %v456_v63  ;;  %v669_v52 = vmax.f32 %v5836_v23, %v668_v21  ;;  %vm1028_vm8 = vcmask 23552  }
 0x11e   : > { %v493_v19 = vmax.f32 %v491_v25, %v492_v30  ;;  %v529_v46 = vmax.f32 %v527_v61, %v528_v9  ;;  %v563_v57 = vmax.f32 %v561_v58, %v562_v43  ;;  %v599_v53 = vmax.f32 %v597_v2, %v598_v5  ;;  %v5944_v23 = vpop.permute.xlu0 %1187 }
 0x11f   : > { %v635_v11 = vmax.f32 %v633_v6, %v634_v28  ;;  %v670_v56 = vrot.slane %v669_v52, 2  ;;  %v1176_v51 = vsel %vm1134_vm0, %v457_v8, %v421_v45  ;;  %v7238_v60 = vmov 0.0  }
 0x120   : > { %v564_v26 = vrot.slane %v563_v57, 1  ;;  %v600_v41 = vrot.slane %v599_v53, 1  ;;  %v1177_v48 = vsel %vm1136_vm1, %v493_v19, %v1176_v51  ;;  %218 = vst [vmem:[#allocation2] sm:$0xff] %v7238_v60  ;;  %226 = vst [vmem:[#allocation2 + $0x38] sm:$0xff] %v7238_v60  ;;  %1963 = vmatprep.mubr.f32.mxu0 %v7238_v60  ;;  %1572 = vmatprep.mubr.f32.mxu1 %v7238_v60  ;;  %vm224_vm9 = vcmask 48128  }
 0x121   : > { %v636_v36 = vrot.slane %v635_v11, 1  ;;  %233 = vst [vmem:[#allocation2 + $0x70] sm:$0xff] %v7238_v60  ;;  %240 = vst [vmem:[#allocation2 + $0xa8] sm:$0xff] %v7238_v60  ;;  %v671_v21 = vmax.f32 %v669_v52, %v670_v56  ;;  %v1178_v15 = vsel %vm1138_vm2, %v529_v46, %v1177_v48  ;;  %v5956_v44 = vsel %vm1028_vm8, %v5863_v37, %v5895_v16 }
 0x122   : > { %1042 = vst.msk [vmem:[#allocation2] sm:$0xff] %vm1041_vm7, %v5863_v37  ;;  %1079 = vst.msk [vmem:[#allocation2 + $0x38] sm:$0xff] %vm1041_vm7, %v5884_v50  ;;  %v5961_v22 = vsel %vm1028_vm8, %v5895_v16, %v5847_v39  ;;  %v565_v24 = vmax.f32 %v563_v57, %v564_v26  ;;  %v601_v1 = vmax.f32 %v599_v53, %v600_v41  ;;  %vm1501_vm10 = vcmask 261120  }
 0x123   : > { %7331 = vst [vmem:[#allocation24_spill] sm:$0xff] %v5961_v22  ;;  %1207 = vst.msk [vmem:[#allocation2 + $0x70] sm:$0xff] %vm1041_vm7, %v1184_v40  ;;  %v637_v3 = vmax.f32 %v635_v11, %v636_v36  ;;  %v5969_v31 = vsel %vm1028_vm8, %v5884_v50, %v5903_v12  ;;  %v672_v37 = vrot.slane %v671_v21, 1  ;;  %v5974_v10 = vsel %vm1028_vm8, %v5903_v12, %v5897_v55 }
 0x124   : > { %1328 = vst.msk [vmem:[#allocation2 + $0xa8] sm:$0xff] %vm1041_vm7, %v5936_v7  ;;  %7332 = vst [vmem:[#allocation25_spill] sm:$0xff] %v5974_v10  ;;  %v5977_v16 = vsel %vm1028_vm8, %v1184_v40, %v1186_v42  ;;  %v5981_v54 = vsel %vm1028_vm8, %v1186_v42, %v5944_v23  ;;  %v1179_v29 = vsel %vm1140_vm3, %v565_v24, %v1178_v15  ;;  %vm1452_vm11 = vcmask 1039360  }
 0x125   : > { %7333 = vst [vmem:[#allocation26_spill] sm:$0xff] %v5981_v54  ;;  %v5986_v38 = vpack.i.bf16 %v5961_v22, %v5956_v44  ;;  %v5990_v50 = vpack.i.bf16 %v5974_v10, %v5969_v31  ;;  %v673_v12 = vmax.f32 %v671_v21, %v672_v37  ;;  %v1180_v14 = vsel %vm1142_vm4, %v601_v1, %v1179_v29 }
 0x126   : > { %232 = vst.msk [vmem:[#allocation2 + $0x68] sm:$0xff] %vm224_vm9, %v7238_v60  ;;  %225 = vst.msk [vmem:[#allocation2 + $0x30] sm:$0xff] %vm224_vm9, %v7238_v60  ;;  %v5999_v42 = vpack.i.bf16 %v5981_v54, %v5977_v16  ;;  %v1181_v35 = vsel %vm1144_vm5, %v637_v3, %v1180_v14  ;;  %vm2035_vm12 = vcmask 1031168   ;;  %vm2392_vm13 = vcmask 1022976  }
 0x127   : > { %239 = vst.msk [vmem:[#allocation2 + $0xa0] sm:$0xff] %vm224_vm9, %v7238_v60  ;;  %246 = vst.msk [vmem:[#allocation2 + $0xd8] sm:$0xff] %vm224_vm9, %v7238_v60  ;;  %4509 = vrot.lane.b32.xlu1 %v5986_v38, %s5065_s22  ;;  %v1182_v58 = vsel %vm1146_vm6, %v673_v12, %v1181_v35  ;;  %vm2749_vm14 = vcmask 1014784   ;;  %vm3106_vm15 = vcmask 1006592   ;;  %vm3463_vm0 = vcmask 998400  }
 0x128   : > { %1193 = vrot.lane.b32.xlu0 %v1182_v58, %s5063_s21  ;;  %vm3951_vm1 = vcmask 1040384  }
 0x129   : > { %v6010_v18 = vld [vmem:[#allocation2 + $0x38] sm:$0xff]  ;;  %v6014_v2 = vld [vmem:[#allocation2] sm:$0xff] }
 0x12a   : > { %v6016_v6 = vld [vmem:[#allocation2 + $0x70] sm:$0xff]  ;;  %v6020_v40 = vpack.i.bf16 %v6010_v18, %v6014_v2 }
 0x12b   : > { %v6012_v61 = vld [vmem:[#allocation2 + $0xa8] sm:$0xff] }
 0x12c   : > { %v6024_v45 = vpack.i.bf16 %v6012_v61, %v6016_v6  ;;  %4474 = vrot.lane.b32.xlu0 %v5986_v38, %s5066_s11  ;;  %v1309_v9 = vpop.permute.xlu1 %1308 }
 0x13c   : > { %v1307_v43 = vpop.permute.xlu0 %1306 }
 0x13d   : > { %v6034_v5 = vsel %vm1028_vm8, %v5936_v7, %v1307_v43  ;;  %v6037_v28 = vsel %vm1028_vm8, %v1307_v43, %v1309_v9 }
 0x13e   : > { %7334 = vst [vmem:[#allocation27_spill] sm:$0xff] %v6037_v28  ;;  %v6041_v8 = vpack.i.bf16 %v6037_v28, %v6034_v5 }
 0x13f   : > { %v1025_v46 = vpop.permute.xlu1 %1024 }
 0x143   : > { %v1023_v57 = vpop.permute.xlu0 %1022 }
 0x144   : > { %v6049_v53 = vsel %vm1028_vm8, %v5847_v39, %v1023_v57  ;;  %v1032_v11 = vsel %vm1028_vm8, %v1023_v57, %v1025_v46 }
 0x145   : > { %v6053_v7 = vpack.i.bf16 %v1032_v11, %v6049_v53 }
 0x146   : > { %v1064_v56 = vpop.permute.xlu1 %1063 }
 0x147   : > { %4479 = vrot.lane.b32.xlu0 %v6053_v7, %s5066_s11 }
 0x148   : > { %v1062_v51 = vpop.permute.xlu0 %1061 }
 0x149   : > { %v6059_v26 = vsel %vm1028_vm8, %v5897_v55, %v1062_v51  ;;  %v1070_v41 = vsel %vm1028_vm8, %v1062_v51, %v1064_v56 }
 0x14a   : > { %v6063_v36 = vpack.i.bf16 %v1070_v41, %v6059_v26  ;;  %v6065_v39 = vpack.i.bf16 %v1070_v41, %v1032_v11  ;;  %v6069_v48 = vpack.i.bf16 %v6059_v26, %v6049_v53  ;;  %v4194_v52 = vpack.c.bf16 %v1070_v41, %v1032_v11 }
 0x14b   : > { %4484 = vrot.lane.b32.xlu0 %v5986_v38, %s5067_s12 }
 0x153   : > { %v1192_v55 = vpop.permute.xlu1 %1191 }
 0x161   : > { %v1190_v15 = vpop.permute.xlu0 %1189 }
 0x162   : > { %v6077_v24 = vsel %vm1028_vm8, %v5944_v23, %v1190_v15  ;;  %v1198_v1 = vsel %vm1028_vm8, %v1190_v15, %v1192_v55 }
 0x163   : > { %7335 = vst [vmem:[#allocation28_spill] sm:$0xff] %v6077_v24  ;;  %v6081_v3 = vpack.i.bf16 %v1198_v1, %v6077_v24 }
 0x16d   : > { %v1313_v37 = vpop.permute.xlu1 %1312 }
 0x17b   : > { %v1311_v29 = vpop.permute.xlu0 %1310 }
 0x17c   : > { %v6084_v12 = vsel %vm1028_vm8, %v1309_v9, %v1311_v29  ;;  %v1319_v14 = vsel %vm1028_vm8, %v1311_v29, %v1313_v37 }
 0x17d   : > { %7336 = vst [vmem:[#allocation29_spill] sm:$0xff] %v6084_v12  ;;  %v6088_v35 = vpack.i.bf16 %v1319_v14, %v6084_v12  ;;  %v6092_v58 = vpack.i.bf16 %v6084_v12, %v6077_v24  ;;  %v6094_v23 = vpack.i.bf16 %v1319_v14, %v1198_v1  ;;  %v4198_v41 = vpack.c.bf16 %v1319_v14, %v1198_v1 }
 0x180   : > { %v1066_v57 = vpop.permute.xlu1 %1065  ;;  %v1027_v51 = vpop.permute.xlu0 %1026 }
 0x181   : > { %v1071_v15 = vsel %vm1028_vm8, %v1064_v56, %v1066_v57  ;;  %1085 = vst.msk [vmem:[#allocation2 + $0x68] sm:$0xff] %vm1028_vm8, %v1066_v57  ;;  %v1033_v9 = vsel %vm1028_vm8, %v1025_v46, %v1027_v51  ;;  %1048 = vst.msk [vmem:[#allocation2 + $0x30] sm:$0xff] %vm1028_vm8, %v1027_v51  ;;  %v6132_v51 = vld [vmem:[#allocation6] sm:$0xff] }
 0x182   : > { %v4192_v29 = vpack.c.bf16 %v1071_v15, %v1033_v9  ;;  %7337 = vst [vmem:[#allocation30_spill] sm:$0xff] %v6132_v51 }
 0x184   : > { %4193 = vmatprep.subr.bf16.mxu0 %v4192_v29 }
 0x185   : > { %4195 = vmatpush1.bf16.msra.mxu0 %v4194_v52 }
 0x188   : > { %v1364_v25 = vld [vmem:[#allocation2 + $0x30] sm:$0xff]  ;;  %v1365_v52 = vld [vmem:[#allocation2 + $0x68] sm:$0xff] }
 0x189   : > { %v6102_v21 = vpack.i.bf16 %v1364_v25, %v1033_v9 }
 0x18b   : > { %4514 = vrot.lane.b32.xlu1 %v6102_v21, %s5065_s22  ;;  %4489 = vrot.lane.b32.xlu0 %v6102_v21, %s5066_s11 }
 0x18e   : > { %v1315_v56 = vpop.permute.xlu1 %1314 }
 0x18f   : > { %v1320_v57 = vsel %vm1028_vm8, %v1313_v37, %v1315_v56  ;;  %1334 = vst.msk [vmem:[#allocation2 + $0xd8] sm:$0xff] %vm1028_vm8, %v1315_v56  ;;  %4494 = vrot.lane.b32.xlu0 %v6102_v21, %s5067_s12  ;;  %4534 = vrot.lane.b32.xlu1 %v6020_v40, %s5065_s22  ;;  %v6128_v37 = vpack.i.bf16 %v1365_v52, %v1071_v15  ;;  %v6204_v52 = vld [vmem:[#allocation6 + $0x8] sm:$0xff] }
 0x190   : > { %7338 = vst [vmem:[#allocation31_spill] sm:$0xff] %v6204_v52 }
 0x193   : > { %4499 = vrot.lane.b32.xlu0 %v5986_v38, %s5068_s18  ;;  %4539 = vrot.lane.b32.xlu1 %v5990_v50, %s5066_s11 }
 0x196   : > { %v1367_v56 = vld [vmem:[#allocation2 + $0xd8] sm:$0xff] }
 0x197   : > { %4504 = vrot.lane.b32.xlu0 %v6102_v21, %s5068_s18  ;;  %4544 = vrot.lane.b32.xlu1 %v6063_v36, %s5066_s11 }
 0x19a   : > { %v1194_v25 = vpop.permute.xlu0 %1193 }
 0x19b   : > { %v1199_v46 = vsel %vm1028_vm8, %v1192_v55, %v1194_v25  ;;  %1213 = vst.msk [vmem:[#allocation2 + $0xa0] sm:$0xff] %vm1028_vm8, %v1194_v25  ;;  %4549 = vrot.lane.b32.xlu1 %v5990_v50, %s5067_s12  ;;  %4519 = vrot.lane.b32.xlu0 %v6020_v40, %s5066_s11  ;;  %v6194_v25 = vpack.i.bf16 %v1367_v56, %v1320_v57 }
 0x19c   : > { %v4196_v11 = vpack.c.bf16 %v1320_v57, %v1199_v46 }
 0x19e   : > { %4197 = vmatprep.subr.bf16.mxu0 %v4196_v11  ;;  %v6159_v55 = vpop.permute.xlu0 %4474 }
 0x19f   : > { %4199 = vmatpush1.bf16.msra.mxu0 %v4198_v41  ;;  %4554 = vrot.lane.b32.xlu1 %v6128_v37, %s5066_s11  ;;  %v4477_v14 = vunpack.i.h.bf16 %v6159_v55  ;;  %v4476_v43 = vunpack.i.l.bf16 %v6159_v55 }
 0x1a0   : > { %4524 = vrot.lane.b32.xlu0 %v6020_v40, %s5067_s12 }
 0x1a2   : > { %4104 = vmatmul.mubr.msk.f32.vlgmr.msra.gmra.mrb[0].mxu0 %vm1501_vm10, %v6132_v51 }
 0x1a3   : > { %4559 = vrot.lane.b32.xlu1 %v6128_v37, %s5067_s12  ;;  %1969 = vmatprep.mubr.f32.mxu0 %v7238_v60 }
 0x1a4   : > { %4529 = vrot.lane.b32.xlu0 %v6020_v40, %s5068_s18 }
 0x1a6   : > { %4105 = vmatmul.mubr.msk.f32.gmra.mrb[2].mxu0 %vm1501_vm10, %v6204_v52 }
 0x1a7   : > { %4569 = vrot.lane.b32.xlu1 %v5990_v50, %s5068_s18  ;;  %2154 = vmatprep.mubr.f32.mxu0 %v7238_v60  ;;  %v1454_v60 = vsel %vm1452_vm11, %v4476_v43, %v4477_v14 }
 0x1a8   : > { %4564 = vrot.lane.b32.xlu0 %v6065_v39, %s5067_s12 }
 0x1ab   : > { %4574 = vrot.lane.b32.xlu1 %v6128_v37, %s5068_s18 }
 0x1ac   : > { %4579 = vrot.lane.b32.xlu0 %v6065_v39, %s5068_s18 }
 0x1af   : > { %4604 = vrot.lane.b32.xlu1 %v6065_v39, %s5065_s22  ;;  %v1366_v39 = vld [vmem:[#allocation2 + $0xa0] sm:$0xff] }
 0x1b0   : > { %4584 = vrot.lane.b32.xlu0 %v6069_v48, %s5067_s12  ;;  %v6180_v29 = vpack.i.bf16 %v1366_v39, %v1199_v46 }
 0x1b3   : > { %4609 = vrot.lane.b32.xlu1 %v5999_v42, %s5066_s11 }
 0x1b4   : > { %4589 = vrot.lane.b32.xlu0 %v5990_v50, %s5065_s22 }
 0x1b7   : > { %4614 = vrot.lane.b32.xlu1 %v6081_v3, %s5066_s11 }
 0x1b8   : > { %4594 = vrot.lane.b32.xlu0 %v6069_v48, %s5068_s18 }
 0x1b9   : > { %v6165_v1 = vpop.permute.xlu0 %4479 }
 0x1ba   : > { %v7241_v15 = vunpack.i.l.bf16 %v6165_v1  ;;  %v7361_v28 = vunpack.i.h.bf16 %v6165_v1 }
 0x1bb   : > { %4619 = vrot.lane.b32.xlu1 %v5999_v42, %s5067_s12 }
 0x1bc   : > { %4599 = vrot.lane.b32.xlu0 %v6128_v37, %s5065_s22  ;;  %v6178_v9 = vsel %vm1452_vm11, %v4477_v14, %v7241_v15 }
 0x1bd   : > { %v6251_v57 = vpop.permute.xlu0 %4484 }
 0x1be   : > { %v4486_v20 = vunpack.i.l.bf16 %v6251_v57 }
 0x1bf   : > { %4624 = vrot.lane.b32.xlu1 %v6180_v29, %s5066_s11 }
 0x1c0   : > { %4669 = vrot.lane.b32.xlu0 %v6041_v8, %s5066_s11 }
 0x1c3   : > { %4629 = vrot.lane.b32.xlu1 %v6180_v29, %s5067_s12 }
 0x1c4   : > { %4674 = vrot.lane.b32.xlu0 %v6088_v35, %s5066_s11 }
 0x1c7   : > { %4634 = vrot.lane.b32.xlu1 %v5999_v42, %s5068_s18 }
 0x1c8   : > { %4679 = vrot.lane.b32.xlu0 %v6041_v8, %s5067_s12 }
 0x1cb   : > { %4639 = vrot.lane.b32.xlu1 %v6180_v29, %s5068_s18 }
 0x1cc   : > { %4684 = vrot.lane.b32.xlu0 %v6194_v25, %s5066_s11 }
 0x1cf   : > { %4644 = vrot.lane.b32.xlu1 %v5999_v42, %s5065_s22 }
 0x1d0   : > { %4689 = vrot.lane.b32.xlu0 %v6194_v25, %s5067_s12 }
 0x1d3   : > { %4649 = vrot.lane.b32.xlu1 %v6024_v45, %s5066_s11 }
 0x1d4   : > { %4699 = vrot.lane.b32.xlu0 %v6041_v8, %s5068_s18 }
 0x1d7   : > { %4654 = vrot.lane.b32.xlu1 %v6024_v45, %s5067_s12 }
 0x1d8   : > { %4704 = vrot.lane.b32.xlu0 %v6194_v25, %s5068_s18 }
 0x1db   : > { %4659 = vrot.lane.b32.xlu1 %v6024_v45, %s5068_s18 }
 0x1dc   : > { %4714 = vrot.lane.b32.xlu0 %v6092_v58, %s5067_s12 }
 0x1df   : > { %4664 = vrot.lane.b32.xlu1 %v6024_v45, %s5065_s22 }
 0x1e0   : > { %4719 = vrot.lane.b32.xlu0 %v6041_v8, %s5065_s22 }
 0x1e3   : > { %4694 = vrot.lane.b32.xlu1 %v6094_v23, %s5067_s12 }
 0x1e4   : > { %4724 = vrot.lane.b32.xlu0 %v6092_v58, %s5068_s18 }
 0x1e7   : > { %4709 = vrot.lane.b32.xlu1 %v6094_v23, %s5068_s18 }
 0x1e8   : > { %4734 = vrot.lane.b32.xlu0 %v6194_v25, %s5065_s22 }
 0x1eb   : > { %4729 = vrot.lane.b32.xlu1 %v6180_v29, %s5065_s22 }
 0x1ec   : > { %4744 = vrot.lane.b32.xlu0 %v6069_v48, %s5065_s22  ;;  %v6249_v48 = vpop.permute.xlu1 %4509 }
 0x1ef   : > { %4739 = vrot.lane.b32.xlu1 %v6094_v23, %s5065_s22 }
 0x1f0   : > { %4754 = vrot.lane.b32.xlu0 %v5990_v50, %s5069_s26 }
 0x1f3   : > { %4749 = vrot.lane.b32.xlu1 %v5986_v38, %s5069_s26 }
 0x1f4   : > { %4764 = vrot.lane.b32.xlu0 %v6092_v58, %s5065_s22  ;;  %v7242_v58 = vunpack.i.h.bf16 %v6165_v1 }
 0x1f7   : > { %4759 = vrot.lane.b32.xlu1 %v6020_v40, %s5069_s26 }
 0x1f8   : > { %4774 = vrot.lane.b32.xlu0 %v6041_v8, %s5069_s26 }
 0x1fb   : > { %4769 = vrot.lane.b32.xlu1 %v5999_v42, %s5069_s26 }
 0x1fc   : > { %4784 = vrot.lane.b32.xlu0 %v6053_v7, %s5069_s26 }
 0x1fd   : > { %v6257_v23 = vpop.permute.xlu1 %4514  ;;  %v6259_v46 = vpop.permute.xlu0 %4489 }
 0x1fe   : > { %v7240_v11 = vunpack.i.l.bf16 %v6259_v46 }
 0x1ff   : > { %4779 = vrot.lane.b32.xlu1 %v6024_v45, %s5069_s26 }
 0x200   : > { %v6270_v41 = vsel %vm1452_vm11, %v7242_v58, %v7240_v11  ;;  %4794 = vrot.lane.b32.xlu0 %v6063_v36, %s5069_s26 }
 0x201   : > { %v6274_v39 = vpop.permute.xlu0 %4494  ;;  %v6276_v56 = vpop.permute.xlu1 %4534 }
 0x203   : > { %4789 = vrot.lane.b32.xlu1 %v6102_v21, %s5069_s26 }
 0x204   : > { %4804 = vrot.lane.b32.xlu0 %v6081_v3, %s5069_s26 }
 0x205   : > { %v6283_v30 = vpop.permute.xlu0 %4499  ;;  %v4540_v19 = vpop.permute.xlu1 %4539 }
 0x206   : > { %v4542_v63 = vunpack.i.h.bf16 %v4540_v19  ;;  %v4541_v62 = vunpack.i.l.bf16 %v4540_v19 }
 0x207   : > { %4799 = vrot.lane.b32.xlu1 %v6128_v37, %s5069_s26 }
 0x208   : > { %4814 = vrot.lane.b32.xlu0 %v6088_v35, %s5069_s26  ;;  %v1460_v11 = vsel %vm1452_vm11, %v4541_v62, %v4542_v63 }
 0x209   : > { %v6293_v15 = vpop.permute.xlu0 %4504  ;;  %v6295_v58 = vpop.permute.xlu1 %4544  ;;  %v4152_v0 = vpack.c.bf16 %v1460_v11, %v1454_v60 }
 0x20a   : > { %v7248_v47 = vunpack.i.l.bf16 %v6295_v58 }
 0x20b   : > { %4809 = vrot.lane.b32.xlu1 %v6180_v29, %s5069_s26  ;;  %4153 = vmatprep.subr.bf16.mxu1 %v4152_v0 }
 0x20c   : > { %v6305_v55 = vsel %vm1452_vm11, %v4542_v63, %v7248_v47  ;;  %4824 = vrot.lane.b32.xlu0 %v5986_v38, %s5070_s19  ;;  %v7339_v38 = vunpack.i.h.bf16 %v6251_v57 }
 0x20d   : > { %v6311_v14 = vpop.permute.xlu1 %4549  ;;  %v4520_v11 = vpop.permute.xlu0 %4519 }
 0x20e   : > { %v4552_v0 = vunpack.i.h.bf16 %v6311_v14  ;;  %v4551_v19 = vunpack.i.l.bf16 %v6311_v14  ;;  %v4522_v13 = vunpack.i.h.bf16 %v4520_v11  ;;  %v4521_v17 = vunpack.i.l.bf16 %v4520_v11 }
 0x20f   : > { %4819 = vrot.lane.b32.xlu1 %v6194_v25, %s5069_s26  ;;  %v2037_v63 = vsel %vm2035_vm12, %v4486_v20, %v7339_v38  ;;  %v4537_v14 = vunpack.i.h.bf16 %v6276_v56 }
 0x210   : > { %4834 = vrot.lane.b32.xlu0 %v5990_v50, %s5070_s19  ;;  %v2043_v60 = vsel %vm2035_vm12, %v4551_v19, %v4552_v0  ;;  %v1453_v47 = vsel %vm1452_vm11, %v4521_v17, %v4476_v43  ;;  %v1459_v32 = vsel %vm1452_vm11, %v4522_v13, %v4541_v62 }
 0x211   : > { %v6327_v59 = vpop.permute.xlu1 %4554  ;;  %v4200_v11 = vpack.c.bf16 %v2043_v60, %v2037_v63  ;;  %v4154_v49 = vpack.c.bf16 %v1459_v32, %v1453_v47  ;;  %v7262_v32 = vunpack.i.l.bf16 %v6283_v30 }
 0x212   : > { %v4525_v34 = vpop.permute.xlu0 %4524 }
 0x213   : > { %v4527_v33 = vunpack.i.h.bf16 %v4525_v34  ;;  %v4526_v4 = vunpack.i.l.bf16 %v4525_v34  ;;  %4829 = vrot.lane.b32.xlu1 %v6053_v7, %s5070_s19  ;;  %4201 = vmatprep.subr.bf16.mxu0 %v4200_v11  ;;  %v4506_v7 = vunpack.i.l.bf16 %v6293_v15 }
 0x214   : > { %4844 = vrot.lane.b32.xlu0 %v6020_v40, %s5070_s19  ;;  %4155 = vmatpush1.bf16.msra.mxu1 %v4154_v49  ;;  %v4507_v40 = vunpack.i.h.bf16 %v6293_v15 }
 0x215   : > { %v2042_v50 = vsel %vm2035_vm12, %v4527_v33, %v4551_v19  ;;  %v2036_v17 = vsel %vm2035_vm12, %v4526_v4, %v4486_v20  ;;  %v6335_v13 = vpop.permute.xlu1 %4559 }
 0x216   : > { %v4202_v62 = vpack.c.bf16 %v2042_v50, %v2036_v17  ;;  %v4530_v43 = vpop.permute.xlu0 %4529  ;;  %v6370_v15 = vsel %vm2392_vm13, %v4506_v7, %v4507_v40 }
 0x217   : > { %v4531_v47 = vunpack.i.l.bf16 %v4530_v43  ;;  %4839 = vrot.lane.b32.xlu1 %v6063_v36, %s5070_s19  ;;  %v4532_v4 = vunpack.i.h.bf16 %v4530_v43  ;;  %7340 = vst [vmem:[#allocation32_spill] sm:$0xff] %v6370_v15  ;;  %v4516_v43 = vunpack.i.l.bf16 %v6257_v23 }
 0x218   : > { %4854 = vrot.lane.b32.xlu0 %v6081_v3, %s5070_s19  ;;  %4203 = vmatpush1.bf16.msra.mxu0 %v4202_v62 }
 0x219   : > { %v6345_v49 = vsel %vm2392_vm13, %v4531_v47, %v7262_v32  ;;  %v6347_v33 = vpop.permute.xlu1 %4569 }
 0x21a   : > { %v7258_v20 = vunpack.i.l.bf16 %v6347_v33  ;;  %v6350_v34 = vpop.permute.xlu0 %4564 }
 0x21b   : > { %4849 = vrot.lane.b32.xlu1 %v5999_v42, %s5070_s19 }
 0x21c   : > { %v6359_v36 = vsel %vm2392_vm13, %v4532_v4, %v7258_v20  ;;  %4864 = vrot.lane.b32.xlu0 %v6088_v35, %s5070_s19 }
 0x21d   : > { %v4575_v19 = vpop.permute.xlu1 %4574 }
 0x21e   : > { %v4577_v60 = vunpack.i.h.bf16 %v4575_v19  ;;  %v4576_v38 = vunpack.i.l.bf16 %v4575_v19  ;;  %v4580_v63 = vpop.permute.xlu0 %4579 }
 0x21f   : > { %v4582_v42 = vunpack.i.h.bf16 %v4580_v63  ;;  %v4581_v11 = vunpack.i.l.bf16 %v4580_v63  ;;  %4859 = vrot.lane.b32.xlu1 %v6041_v8, %s5070_s19  ;;  %v7259_v8 = vunpack.i.l.bf16 %v6249_v48 }
 0x220   : > { %4874 = vrot.lane.b32.xlu0 %v6102_v21, %s5070_s19  ;;  %v6373_v35 = vsel %vm2392_vm13, %v4576_v38, %v4577_v60  ;;  %v4536_v60 = vunpack.i.l.bf16 %v6276_v56 }
 0x221   : > { %v6376_v50 = vsel %vm2392_vm13, %v4582_v42, %v4576_v38  ;;  %v6379_v17 = vsel %vm2392_vm13, %v4581_v11, %v4506_v7  ;;  %v6381_v62 = vpop.permute.xlu1 %4604 }
 0x222   : > { %7341 = vst [vmem:[#allocation33_spill] sm:$0xff] %v6376_v50  ;;  %7342 = vst [vmem:[#allocation34_spill] sm:$0xff] %v6379_v17  ;;  %v7255_v47 = vunpack.i.l.bf16 %v6381_v62  ;;  %v6389_v4 = vpop.permute.xlu0 %4584  ;;  %v7267_v32 = vunpack.i.h.bf16 %v6381_v62  ;;  %v4562_v17 = vunpack.i.h.bf16 %v6335_v13  ;;  %v4561_v50 = vunpack.i.l.bf16 %v6335_v13 }
 0x223   : > { %7343 = vst [vmem:[#allocation35_spill] sm:$0xff] %v6381_v62  ;;  %v7256_v40 = vunpack.i.h.bf16 %v6389_v4  ;;  %v7257_v7 = vunpack.i.l.bf16 %v6389_v4  ;;  %4869 = vrot.lane.b32.xlu1 %v6024_v45, %s5070_s19  ;;  %v7346_v45 = vunpack.i.h.bf16 %v6251_v57  ;;  %v6431_v57 = vsel %vm2749_vm14, %v4536_v60, %v7259_v8 }
 0x224   : > { %v6398_v19 = vsel %vm2749_vm14, %v7255_v47, %v4516_v43  ;;  %4884 = vrot.lane.b32.xlu0 %v6180_v29, %s5070_s19  ;;  %7348 = vst [vmem:[#allocation39_spill] sm:$0xff] %v6431_v57  ;;  %v4517_v60 = vunpack.i.h.bf16 %v6257_v23  ;;  %v4497_v62 = vunpack.i.h.bf16 %v6274_v39  ;;  %v4557_v13 = vunpack.i.h.bf16 %v6327_v59 }
 0x225   : > { %7344 = vst [vmem:[#allocation36_spill] sm:$0xff] %v6398_v19  ;;  %v6408_v38 = vsel %vm2035_vm12, %v4552_v0, %v7256_v40  ;;  %v6415_v63 = vsel %vm2035_vm12, %v7346_v45, %v7257_v7  ;;  %v6417_v47 = vpop.permute.xlu1 %4609  ;;  %v7264_v7 = vunpack.i.h.bf16 %v6283_v30 }
 0x226   : > { %7345 = vst [vmem:[#allocation37_spill] sm:$0xff] %v6408_v38  ;;  %7347 = vst [vmem:[#allocation38_spill] sm:$0xff] %v6415_v63  ;;  %v6421_v21 = vpop.permute.xlu0 %4589  ;;  %v6471_v57 = vsel %vm2749_vm14, %v4516_v43, %v4517_v60  ;;  %v7293_v63 = vunpack.i.h.bf16 %v6295_v58 }
 0x227   : > { %v7260_v0 = vunpack.i.l.bf16 %v6421_v21  ;;  %4879 = vrot.lane.b32.xlu1 %v6128_v37, %s5070_s19  ;;  %v7261_v37 = vunpack.i.h.bf16 %v6347_v33  ;;  %7355 = vst [vmem:[#allocation46_spill] sm:$0xff] %v6471_v57 }
 0x229   : > { %v6436_v45 = vsel %vm2749_vm14, %v4537_v14, %v7260_v0  ;;  %v6438_v29 = vpop.permute.xlu1 %4614 }
 0x22a   : > { %7349 = vst [vmem:[#allocation40_spill] sm:$0xff] %v6436_v45  ;;  %v4595_v40 = vpop.permute.xlu0 %4594  ;;  %v4496_v45 = vunpack.i.l.bf16 %v6274_v39  ;;  %v7363_v39 = vunpack.i.l.bf16 %v6295_v58 }
 0x22b   : > { %v4597_v3 = vunpack.i.h.bf16 %v4595_v40  ;;  %v4596_v20 = vunpack.i.l.bf16 %v4595_v40  ;;  %4889 = vrot.lane.b32.xlu1 %v6194_v25, %s5070_s19 }
 0x22c   : > { %v1462_v24 = vsel %vm1452_vm11, %v7363_v39, %v7293_v63  ;;  %v2041_v12 = vsel %vm2035_vm12, %v4496_v45, %v4497_v62  ;;  %v4616_v62 = vunpack.i.l.bf16 %v6438_v29 }
 0x22d   : > { %v6450_v14 = vsel %vm2392_vm13, %v7261_v37, %v4597_v3  ;;  %v6455_v56 = vsel %vm2392_vm13, %v7264_v7, %v4596_v20  ;;  %v6457_v8 = vpop.permute.xlu1 %4619  ;;  %v6460_v0 = vsel %vm2392_vm13, %v4596_v20, %v4581_v11  ;;  %v6463_v40 = vsel %vm2392_vm13, %v4597_v3, %v4582_v42 }
 0x22e   : > { %7350 = vst [vmem:[#allocation41_spill] sm:$0xff] %v6450_v14  ;;  %7351 = vst [vmem:[#allocation42_spill] sm:$0xff] %v6455_v56  ;;  %v4600_v23 = vpop.permute.xlu0 %4599  ;;  %v4611_v11 = vunpack.i.l.bf16 %v6417_v47  ;;  %v7281_v43 = vunpack.i.h.bf16 %v6457_v8  ;;  %v4621_v19 = vunpack.i.l.bf16 %v6457_v8 }
 0x22f   : > { %7352 = vst [vmem:[#allocation43_spill] sm:$0xff] %v6457_v8  ;;  %7353 = vst [vmem:[#allocation44_spill] sm:$0xff] %v6460_v0  ;;  %v4602_v27 = vunpack.i.h.bf16 %v4600_v23  ;;  %v4601_v7 = vunpack.i.l.bf16 %v4600_v23 }
 0x230   : > { %7354 = vst [vmem:[#allocation45_spill] sm:$0xff] %v6463_v40 }
 0x231   : > { %v6478_v3 = vsel %vm2749_vm14, %v7267_v32, %v4601_v7  ;;  %v6480_v42 = vpop.permute.xlu1 %4624  ;;  %v6483_v25 = vsel %vm2749_vm14, %v4601_v7, %v4602_v27  ;;  %v7358_v32 = vunpack.i.h.bf16 %v6417_v47 }
 0x232   : > { %7356 = vst [vmem:[#allocation47_spill] sm:$0xff] %v6478_v3  ;;  %7357 = vst [vmem:[#allocation48_spill] sm:$0xff] %v6483_v25  ;;  %v6487_v37 = vpop.permute.xlu0 %4669 }
 0x233   : > { %v7274_v60 = vunpack.i.h.bf16 %v6487_v37  ;;  %v4671_v20 = vunpack.i.l.bf16 %v6487_v37  ;;  %v1466_v14 = vsel %vm1452_vm11, %v4611_v11, %v7358_v32 }
 0x235   : > { %v6493_v56 = vpop.permute.xlu1 %4629  ;;  %v1472_v27 = vsel %vm1452_vm11, %v4671_v20, %v7274_v60  ;;  %v2049_v60 = vsel %vm2035_vm12, %v4621_v19, %v7281_v43  ;;  %v4492_v43 = vunpack.i.h.bf16 %v6259_v46 }
 0x236   : > { %v6501_v7 = vpop.permute.xlu0 %4674  ;;  %v4156_v23 = vpack.c.bf16 %v1472_v27, %v1466_v14  ;;  %v4631_v39 = vunpack.i.l.bf16 %v6493_v56 }
 0x238   : > { %4157 = vmatprep.subr.bf16.mxu1 %v4156_v23 }
 0x239   : > { %v6505_v3 = vpop.permute.xlu1 %4634 }
 0x23a   : > { %v6507_v57 = vpop.permute.xlu0 %4679 }
 0x23b   : > { %7359 = vst [vmem:[#allocation49_spill] sm:$0xff] %v6507_v57  ;;  %v7284_v25 = vunpack.i.h.bf16 %v6507_v57  ;;  %v4681_v32 = vunpack.i.l.bf16 %v6507_v57 }
 0x23d   : > { %v6511_v0 = vpop.permute.xlu1 %4639  ;;  %v2055_v14 = vsel %vm2035_vm12, %v4681_v32, %v7284_v25  ;;  %v7362_v25 = vunpack.i.l.bf16 %v6165_v1  ;;  %v4556_v1 = vunpack.i.l.bf16 %v6327_v59 }
 0x23e   : > { %v6519_v23 = vpop.permute.xlu0 %4684  ;;  %v4204_v27 = vpack.c.bf16 %v2055_v14, %v2049_v60 }
 0x23f   : > { %v1456_v60 = vsel %vm1452_vm11, %v7362_v25, %v7361_v28  ;;  %v4676_v28 = vunpack.i.l.bf16 %v6501_v7 }
 0x240   : > { %4205 = vmatprep.subr.bf16.mxu0 %v4204_v27  ;;  %v4160_v8 = vpack.c.bf16 %v1462_v24, %v1456_v60  ;;  %v7365_v24 = vunpack.i.h.bf16 %v6350_v34 }
 0x241   : > { %v6521_v40 = vpop.permute.xlu1 %4644 }
 0x242   : > { %7360 = vst [vmem:[#allocation50_spill] sm:$0xff] %v6521_v40  ;;  %v6526_v38 = vpop.permute.xlu0 %4689  ;;  %v2046_v59 = vsel %vm2035_vm12, %v7365_v24, %v4561_v50  ;;  %v7368_v24 = vunpack.i.h.bf16 %v6487_v37  ;;  %v6593_v37 = vld [vmem:[#allocation6 + $0x20] sm:$0xff] }
 0x243   : > { %v4692_v25 = vunpack.i.h.bf16 %v6526_v38 }
 0x245   : > { %v4650_v54 = vpop.permute.xlu1 %4649 }
 0x246   : > { %v4652_v14 = vunpack.i.h.bf16 %v4650_v54  ;;  %v4651_v27 = vunpack.i.l.bf16 %v4650_v54  ;;  %v6534_v52 = vpop.permute.xlu0 %4699 }
 0x248   : > { %v1465_v22 = vsel %vm1452_vm11, %v4651_v27, %v4611_v11  ;;  %v1471_v10 = vsel %vm1452_vm11, %v4652_v14, %v4671_v20  ;;  %v6558_v20 = vld [vmem:[#allocation6 + $0x10] sm:$0xff]  ;;  %v7364_v14 = vunpack.i.h.bf16 %v6501_v7  ;;  %v4632_v11 = vunpack.i.h.bf16 %v6493_v56 }
 0x249   : > { %v4655_v63 = vpop.permute.xlu1 %4654  ;;  %v4158_v57 = vpack.c.bf16 %v1471_v10, %v1465_v22  ;;  %v2047_v10 = vsel %vm2035_vm12, %v4561_v50, %v4562_v17  ;;  %v7367_v17 = vunpack.i.h.bf16 %v6438_v29  ;;  %v4686_v56 = vunpack.i.l.bf16 %v6519_v23 }
 0x24a   : > { %v4657_v51 = vunpack.i.h.bf16 %v4655_v63  ;;  %v4656_v40 = vunpack.i.l.bf16 %v4655_v63  ;;  %v6554_v54 = vpop.permute.xlu0 %4704  ;;  %v1474_v22 = vsel %vm1452_vm11, %v4676_v28, %v7364_v14  ;;  %v7366_v63 = vunpack.i.l.bf16 %v6350_v34 }
 0x24b   : > { %4159 = vmatpush1.bf16.msra.mxu1 %v4158_v57  ;;  %v1468_v50 = vsel %vm1452_vm11, %v4616_v62, %v7367_v17 }
 0x24c   : > { %v2040_v60 = vsel %vm2035_vm12, %v7366_v63, %v4496_v45  ;;  %v2048_v27 = vsel %vm2035_vm12, %v4656_v40, %v4621_v19  ;;  %v2054_v57 = vsel %vm2035_vm12, %v4657_v51, %v4681_v32  ;;  %4161 = vmatprep.subr.bf16.mxu1 %v4160_v8  ;;  %v1473_v45 = vsel %vm1452_vm11, %v7368_v24, %v4676_v28  ;;  %v6591_v32 = vld [vmem:[#allocation6 + $0x18] sm:$0xff] }
 0x24d   : > { %v4206_v14 = vpack.c.bf16 %v2054_v57, %v2048_v27  ;;  %v6574_v15 = vpop.permute.xlu1 %4659  ;;  %v4164_v51 = vpack.c.bf16 %v1474_v22, %v1468_v50  ;;  %v4216_v8 = vpack.c.bf16 %v2047_v10, %v2041_v12  ;;  %v4687_v19 = vunpack.i.h.bf16 %v6519_v23 }
 0x24e   : > { %v6582_v63 = vpop.permute.xlu0 %4714  ;;  %4094 = vmatmul.mubr.msk.f32.vlgmr.msra.gmra.mrb[0].mxu1 %vm1501_vm10, %v6558_v20  ;;  %v7369_v40 = vpack.c.bf16 %v6305_v55, %v6178_v9  ;;  %v1464_v28 = vsel %vm1452_vm11, %v4556_v1, %v4557_v13  ;;  %v7370_v27 = vunpack.i.l.bf16 %v6526_v38  ;;  %v4218_v12 = vpack.c.bf16 %v2046_v59, %v2040_v60  ;;  %v6621_v60 = vld [vmem:[#allocation6 + $0x28] sm:$0xff] }
 0x24f   : > { %4207 = vmatpush1.bf16.msra.mxu0 %v4206_v14  ;;  %v7371_v10 = vunpack.i.h.bf16 %v6417_v47  ;;  %v7372_v9 = vunpack.i.l.bf16 %v6259_v46  ;;  %v4627_v57 = vunpack.i.h.bf16 %v6480_v42  ;;  %v4626_v14 = vunpack.i.l.bf16 %v6480_v42 }
 0x250   : > { %4163 = vmatpush1.bf16.msra.mxu1 %v7369_v40  ;;  %v2059_v22 = vsel %vm2035_vm12, %v7370_v27, %v4692_v25  ;;  %4217 = vmatprep.subr.bf16.mxu0 %v4216_v8  ;;  %v7373_v50 = vmov 0.0   ;;  %v2053_v25 = vsel %vm2035_vm12, %v4631_v39, %v4632_v11  ;;  %v7374_v47 = vunpack.i.h.bf16 %v6295_v58 }
 0x251   : > { %v1467_v23 = vsel %vm1452_vm11, %v7371_v10, %v4616_v62  ;;  %4165 = vmatprep.subr.bf16.mxu1 %v4164_v51  ;;  %v1458_v55 = vsel %vm1452_vm11, %v7372_v9, %v4492_v43  ;;  %v6607_v17 = vpop.permute.xlu1 %4664  ;;  %1578 = vmatprep.mubr.f32.mxu1 %v7373_v50  ;;  %v4220_v42 = vpack.c.bf16 %v2059_v22, %v2053_v25  ;;  %v7375_v24 = vunpack.i.h.bf16 %v6501_v7 }
 0x252   : > { %v4166_v13 = vpack.c.bf16 %v1473_v45, %v1467_v23  ;;  %v1463_v62 = vsel %vm1452_vm11, %v7374_v47, %v4556_v1  ;;  %v6614_v59 = vpop.permute.xlu0 %4719  ;;  %4095 = vmatmul.mubr.msk.f32.gmra.mrb[2].mxu1 %vm1501_vm10, %v6591_v32  ;;  %4106 = vmatmul.mubr.msk.f32.vlgmr.msra.gmra.mrb[4].mxu0 %vm1501_vm10, %v6593_v37  ;;  %v4168_v46 = vpack.c.bf16 %v1464_v28, %v1458_v55  ;;  %v4702_v40 = vunpack.i.h.bf16 %v6534_v52 }
 0x253   : > { %4219 = vmatpush1.bf16.msra.mxu0 %v4218_v12  ;;  %v1476_v43 = vsel %vm1452_vm11, %v4686_v56, %v4687_v19  ;;  %v4170_v58 = vpack.c.bf16 %v1463_v62, %v6270_v41  ;;  %1649 = vmatprep.mubr.f32.mxu1 %v7373_v50  ;;  %v1470_v11 = vsel %vm1452_vm11, %v4626_v14, %v4627_v57  ;;  %v4701_v28 = vunpack.i.l.bf16 %v6534_v52 }
 0x254   : > { %4167 = vmatpush1.bf16.msra.mxu1 %v4166_v13  ;;  %4221 = vmatprep.subr.bf16.mxu0 %v4220_v42  ;;  %v1475_v45 = vsel %vm1452_vm11, %v7375_v24, %v4686_v56  ;;  %v4172_v41 = vpack.c.bf16 %v1476_v43, %v1470_v11  ;;  %v7376_v7 = vunpack.i.h.bf16 %v6283_v30  ;;  %v7377_v56 = vunpack.i.l.bf16 %v6283_v30 }
 0x255   : > { %4169 = vmatprep.subr.bf16.mxu1 %v4168_v46  ;;  %v6624_v1 = vpop.permute.xlu1 %4694  ;;  %2160 = vmatprep.mubr.f32.mxu0 %v7373_v50  ;;  %v7378_v22 = vunpack.i.h.bf16 %v6347_v33  ;;  %v7379_v12 = vunpack.i.l.bf16 %v6347_v33  ;;  %v7380_v23 = vunpack.i.h.bf16 %v6438_v29  ;;  %v7381_v57 = vunpack.i.l.bf16 %v6526_v38 }
 0x256   : > { %v4697_v51 = vunpack.i.h.bf16 %v6624_v1  ;;  %v4696_v8 = vunpack.i.l.bf16 %v6624_v1  ;;  %v6634_v19 = vpop.permute.xlu0 %4724  ;;  %4107 = vmatmul.mubr.msk.f32.gmra.mrb[6].mxu0 %vm1501_vm10, %v6621_v60  ;;  %v2394_v27 = vsel %vm2392_vm13, %v7377_v56, %v7376_v7  ;;  %v4637_v33 = vunpack.i.h.bf16 %v6505_v3 }
 0x257   : > { %4096 = vmatmul.mubr.msk.f32.vlgmr.msra.gmra.mrb[4].mxu1 %vm1501_vm10, %v6558_v20  ;;  %v2400_v10 = vsel %vm2392_vm13, %v7379_v12, %v7378_v22  ;;  %v1469_v9 = vsel %vm1452_vm11, %v7380_v23, %v4626_v14  ;;  %2308 = vmatprep.mubr.f32.mxu0 %v7373_v50  ;;  %v4636_v13 = vunpack.i.l.bf16 %v6505_v3  ;;  %v4662_v47 = vunpack.i.h.bf16 %v6574_v15 }
 0x258   : > { %4171 = vmatpush1.bf16.msra.mxu1 %v4170_v58  ;;  %1655 = vmatprep.mubr.f32.mxu1 %v7373_v50  ;;  %v2052_v55 = vsel %vm2035_vm12, %v4696_v8, %v4631_v39  ;;  %v2058_v30 = vsel %vm2035_vm12, %v4697_v51, %v7381_v57  ;;  %v4174_v29 = vpack.c.bf16 %v1475_v45, %v1469_v9  ;;  %v4661_v39 = vunpack.i.l.bf16 %v6574_v15  ;;  %v6741_v57 = vld [vmem:[#allocation6 + $0x30] sm:$0xff] }
 0x259   : > { %4173 = vmatprep.subr.bf16.mxu1 %v4172_v41  ;;  %v4222_v25 = vpack.c.bf16 %v2058_v30, %v2052_v55  ;;  %v6667_v14 = vpop.permute.xlu1 %4709  ;;  %v4224_v62 = vpack.c.bf16 %v2400_v10, %v2394_v27  ;;  %v2412_v46 = vsel %vm2392_vm13, %v4701_v28, %v4702_v40  ;;  %v7382_v42 = vpack.c.bf16 %v5969_v31, %v5956_v44 }
 0x25a   : > { %v6671_v38 = vpop.permute.xlu0 %4734  ;;  %v2406_v15 = vsel %vm2392_vm13, %v4636_v13, %v4637_v33  ;;  %v2405_v58 = vsel %vm2392_vm13, %v4661_v39, %v4636_v13  ;;  %v2411_v11 = vsel %vm2392_vm13, %v4662_v47, %v4701_v28  ;;  %v4592_v31 = vunpack.i.h.bf16 %v6421_v21 }
 0x25b   : > { %4097 = vmatmul.mubr.msk.f32.gmra.mrb[6].mxu1 %vm1501_vm10, %v6591_v32  ;;  %4223 = vmatpush1.bf16.msra.mxu0 %v4222_v25  ;;  %v4228_v44 = vpack.c.bf16 %v2412_v46, %v2406_v15  ;;  %v4707_v45 = vunpack.i.h.bf16 %v6554_v54  ;;  %v4706_v41 = vunpack.i.l.bf16 %v6554_v54  ;;  %v7383_v7 = vpack.c.bf16 %v6010_v18, %v6014_v2  ;;  %v7393_v25 = vld [vmem:[#allocation32_spill] sm:$0xff]  ;;  %v7396_v46 = vld [vmem:[#allocation50_spill] sm:$0xff] }
 0x25c   : > { %4175 = vmatpush1.bf16.msra.mxu1 %v4174_v29  ;;  %4225 = vmatprep.subr.bf16.mxu0 %v4224_v62  ;;  %v7384_v28 = vpack.c.bf16 %v6359_v36, %v6345_v49  ;;  %v4512_v56 = vunpack.i.h.bf16 %v6249_v48  ;;  %v4642_v27 = vunpack.i.h.bf16 %v6511_v0  ;;  %v4641_v22 = vunpack.i.l.bf16 %v6511_v0 }
 0x25d   : > { %4177 = vmatprep.subr.bf16.mxu1 %v7382_v42  ;;  %v6681_v43 = vpop.permute.xlu1 %4729  ;;  %1726 = vmatprep.mubr.f32.mxu1 %v7373_v50  ;;  %v4230_v54 = vpack.c.bf16 %v2411_v11, %v2405_v58  ;;  %v4712_v18 = vunpack.i.h.bf16 %v6667_v14  ;;  %v4711_v2 = vunpack.i.l.bf16 %v6667_v14  ;;  %v7387_v49 = vunpack.i.l.bf16 %v6389_v4  ;;  %v7397_v11 = vld [vmem:[#allocation30_spill] sm:$0xff] }
 0x25e   : > { %v6689_v24 = vpop.permute.xlu0 %4744  ;;  %4110 = vmatmul.mubr.msk.f32.vlgmr.msra.gmra.mrb[0].mxu0 %vm1501_vm10, %v6593_v37  ;;  %v7388_v0 = vunpack.i.h.bf16 %v6350_v34  ;;  %v7389_v10 = vunpack.i.h.bf16 %v6389_v4  ;;  %v4717_v9 = vunpack.i.h.bf16 %v6582_v63  ;;  %v7390_v55 = vpack.c.bf16 %v6012_v61, %v6016_v6 }
 0x25f   : > { %4098 = vmatmul.mubr.msk.f32.vlgmr.msra.gmra.mrb[8].mxu1 %vm1501_vm10, %v6558_v20  ;;  %4227 = vmatpush1.bf16.msra.mxu0 %v7384_v28  ;;  %v7385_v20 = vpack.c.bf16 %v6034_v5, %v5977_v16  ;;  %v7386_v5 = vunpack.i.l.bf16 %v6350_v34  ;;  %v2416_v30 = vsel %vm2392_vm13, %v4706_v41, %v4707_v45  ;;  %v7391_v34 = vunpack.i.l.bf16 %v6421_v21  ;;  %v7421_v21 = vld [vmem:[#allocation35_spill] sm:$0xff] }
 0x260   : > { %4179 = vmatpush1.bf16.msra.mxu1 %v7383_v7  ;;  %4229 = vmatprep.subr.bf16.mxu0 %v4228_v44  ;;  %v6734_v23 = vsel %vm2035_vm12, %v7389_v10, %v7388_v0  ;;  %v4667_v13 = vunpack.i.h.bf16 %v6607_v17  ;;  %v4666_v29 = vunpack.i.l.bf16 %v6607_v17  ;;  %v4721_v61 = vunpack.i.l.bf16 %v6614_v59  ;;  %v7398_v7 = vld [vmem:[#allocation43_spill] sm:$0xff]  ;;  %v7406_v0 = vld [vmem:[#allocation34_spill] sm:$0xff] }
 0x261   : > { %4181 = vmatprep.subr.bf16.mxu1 %v7385_v20  ;;  %v6710_v12 = vpop.permute.xlu1 %4739  ;;  %1732 = vmatprep.mubr.f32.mxu1 %v7373_v50  ;;  %v6727_v36 = vsel %vm2035_vm12, %v7387_v49, %v7386_v5  ;;  %v2757_v4 = vsel %vm2749_vm14, %v7391_v34, %v4592_v31  ;;  %v7392_v6 = vpack.c.bf16 %v6059_v26, %v6049_v53  ;;  %v7395_v53 = vunpack.i.l.bf16 %v6249_v48  ;;  %v7403_v5 = vld [vmem:[#allocation24_spill] sm:$0xff] }
 0x262   : > { %2314 = vmatprep.mubr.f32.mxu0 %v7373_v50  ;;  %v6716_v16 = vpop.permute.xlu0 %4754  ;;  %v7394_v47 = vpack.c.bf16 %v6373_v35, %v7393_v25  ;;  %v2410_v17 = vsel %vm2392_vm13, %v4641_v22, %v4642_v27  ;;  %v4208_v62 = vpack.c.bf16 %v6734_v23, %v6727_v36  ;;  %v4646_v35 = vunpack.i.l.bf16 %v7396_v46  ;;  %v7400_v27 = vld [vmem:[#allocation49_spill] sm:$0xff] }
 0x263   : > { %4099 = vmatmul.mubr.msk.f32.gmra.mrb[10].mxu1 %vm1501_vm10, %v6591_v32  ;;  %4111 = vmatmul.mubr.msk.f32.gmra.mrb[2].mxu0 %vm1501_vm10, %v6621_v60  ;;  %v4716_v32 = vunpack.i.l.bf16 %v6582_v63  ;;  %v4722_v63 = vunpack.i.h.bf16 %v6614_v59  ;;  %v2751_v26 = vsel %vm2749_vm14, %v7395_v53, %v4512_v56  ;;  %v2409_v42 = vsel %vm2392_vm13, %v4711_v2, %v4641_v22  ;;  %v7405_v36 = vld [vmem:[#allocation33_spill] sm:$0xff] }
 0x264   : > { %4183 = vmatpush1.bf16.msra.mxu1 %v7390_v55  ;;  %4231 = vmatpush1.bf16.msra.mxu0 %v4230_v54  ;;  %v2415_v15 = vsel %vm2392_vm13, %v4712_v18, %v4706_v41  ;;  %v4244_v44 = vpack.c.bf16 %v2416_v30, %v2410_v17  ;;  %v4647_v45 = vunpack.i.h.bf16 %v7396_v46  ;;  %v7399_v28 = vunpack.i.h.bf16 %v7398_v7  ;;  %v7402_v54 = vld [vmem:[#allocation25_spill] sm:$0xff] }
 0x265   : > { %4185 = vmatprep.subr.bf16.mxu1 %v7392_v6  ;;  %4241 = vmatprep.subr.bf16.mxu0 %v7394_v47  ;;  %v6759_v39 = vpop.permute.xlu1 %4749  ;;  %v7401_v22 = vunpack.i.h.bf16 %v7400_v27  ;;  %v7404_v49 = vpack.c.bf16 %v7402_v54, %v7403_v5  ;;  %v7407_v10 = vpack.c.bf16 %v7405_v36, %v7406_v0  ;;  %v6801_v23 = vld [vmem:[#allocation6 + $0x38] sm:$0xff]  ;;  %v4248_v55 = vpack.c.bf16 %v2757_v4, %v2751_v26  ;;  %v7409_v47 = vld [vmem:[#allocation28_spill] sm:$0xff] }
 0x266   : > { %1809 = vmatprep.mubr.f32.mxu1 %v7373_v50  ;;  %2511 = vmatprep.mubr.f32.mxu0 %v7373_v50  ;;  %v6778_v58 = vpop.permute.xlu0 %4764  ;;  %v6788_v20 = vsel %vm2035_vm12, %v7399_v28, %v4716_v32  ;;  %v6804_v30 = vsel %vm2749_vm14, %v4666_v29, %v4646_v35  ;;  %v6807_v34 = vsel %vm2749_vm14, %v4667_v13, %v4721_v61  ;;  %v4726_v6 = vunpack.i.l.bf16 %v6634_v19  ;;  %v7408_v25 = vld [vmem:[#allocation29_spill] sm:$0xff]  ;;  %v7411_v28 = vld [vmem:[#allocation31_spill] sm:$0xff]  ;;  %v7418_v0 = vld [vmem:[#allocation40_spill] sm:$0xff] }
 0x267   : > { %4100 = vmatmul.mubr.msk.f32.vlgmr.msra.gmra.mrb[0].mxu1 %vm1501_vm10, %v7397_v11  ;;  %4112 = vmatmul.mubr.msk.f32.vlgmr.msra.gmra.mrb[4].mxu0 %vm1501_vm10, %v6741_v57  ;;  %v6793_v41 = vsel %vm2035_vm12, %v7401_v22, %v4717_v9  ;;  %v7410_v17 = vpack.c.bf16 %v7408_v25, %v7409_v47  ;;  %v2769_v53 = vsel %vm2749_vm14, %v4721_v61, %v4722_v63  ;;  %v4727_v7 = vunpack.i.h.bf16 %v6634_v19  ;;  %v7415_v5 = vld [vmem:[#allocation37_spill] sm:$0xff] }
 0x268   : > { %4187 = vmatpush1.bf16.msra.mxu1 %v7404_v49  ;;  %4243 = vmatpush1.bf16.msra.mxu0 %v7407_v10  ;;  %v4246_v4 = vpack.c.bf16 %v2415_v15, %v2409_v42  ;;  %v2051_v13 = vsel %vm2035_vm12, %v4716_v32, %v4696_v8  ;;  %v2057_v29 = vsel %vm2035_vm12, %v4717_v9, %v4697_v51  ;;  %v4736_v61 = vunpack.i.l.bf16 %v6671_v38  ;;  %v7412_v9 = vld [vmem:[#allocation27_spill] sm:$0xff]  ;;  %v7413_v32 = vld [vmem:[#allocation26_spill] sm:$0xff] }
 0x269   : > { %4189 = vmatprep.subr.bf16.mxu1 %v7410_v17  ;;  %4245 = vmatprep.subr.bf16.mxu0 %v4244_v44  ;;  %v6817_v26 = vpop.permute.xlu1 %4759  ;;  %v4737_v44 = vunpack.i.h.bf16 %v6671_v38  ;;  %v4732_v19 = vunpack.i.h.bf16 %v6681_v43  ;;  %v4731_v42 = vunpack.i.l.bf16 %v6681_v43  ;;  %v4214_v1 = vpack.c.bf16 %v6793_v41, %v6788_v20  ;;  %v7416_v49 = vld [vmem:[#allocation38_spill] sm:$0xff]  ;;  %v7419_v10 = vld [vmem:[#allocation39_spill] sm:$0xff] }
 0x26a   : > { %1815 = vmatprep.mubr.f32.mxu1 %v7373_v50  ;;  %2517 = vmatprep.mubr.f32.mxu0 %v7373_v50  ;;  %v6831_v15 = vpop.permute.xlu0 %4774  ;;  %v4747_v51 = vunpack.i.h.bf16 %v6689_v24  ;;  %v4746_v8 = vunpack.i.l.bf16 %v6689_v24  ;;  %v7414_v27 = vpack.c.bf16 %v7412_v9, %v7413_v32  ;;  %v2763_v43 = vsel %vm2749_vm14, %v4646_v35, %v4647_v45  ;;  %v7424_v9 = vld [vmem:[#allocation45_spill] sm:$0xff]  ;;  %v7425_v32 = vld [vmem:[#allocation44_spill] sm:$0xff] }
 0x26b   : > { %4101 = vmatmul.mubr.msk.f32.gmra.mrb[2].mxu1 %vm1501_vm10, %v7411_v28  ;;  %4113 = vmatmul.mubr.msk.f32.gmra.mrb[6].mxu0 %vm1501_vm10, %v6801_v23  ;;  %v4254_v22 = vpack.c.bf16 %v6807_v34, %v6804_v30  ;;  %v6852_v20 = vsel %vm2392_vm13, %v4637_v33, %v4726_v6  ;;  %v4252_v24 = vpack.c.bf16 %v2769_v53, %v2763_v43  ;;  %v4757_v48 = vunpack.i.h.bf16 %v6716_v16  ;;  %v7427_v43 = vld [vmem:[#allocation48_spill] sm:$0xff] }
 0x26c   : > { %4191 = vmatpush1.bf16.msra.mxu1 %v7414_v27  ;;  %4247 = vmatpush1.bf16.msra.mxu0 %v4246_v4  ;;  %v6857_v41 = vsel %vm2392_vm13, %v4702_v40, %v4727_v7  ;;  %v4212_v35 = vpack.c.bf16 %v2057_v29, %v2051_v13  ;;  %v6866_v3 = vsel %vm2392_vm13, %v4726_v6, %v4711_v2  ;;  %v4752_v6 = vunpack.i.h.bf16 %v6759_v39 }
 0x26d   : > { %4209 = vmatprep.subr.bf16.mxu1 %v4208_v62  ;;  %4249 = vmatprep.subr.bf16.mxu0 %v4248_v55  ;;  %v6859_v54 = vpop.permute.xlu1 %4769  ;;  %v6877_v52 = vsel %vm2392_vm13, %v4727_v7, %v4712_v18  ;;  %v6880_v40 = vsel %vm2749_vm14, %v4731_v42, %v4732_v19  ;;  %v6885_v2 = vsel %vm2749_vm14, %v4736_v61, %v4737_v44  ;;  %v4742_v18 = vunpack.i.h.bf16 %v6710_v12 }
 0x26e   : > { %2665 = vmatprep.mubr.f32.mxu0 %v7373_v50  ;;  %1886 = vmatprep.mubr.f32.mxu1 %v7373_v50  ;;  %v6868_v33 = vpop.permute.xlu0 %4784  ;;  %v6890_v62 = vsel %vm2749_vm14, %v4512_v56, %v4746_v8  ;;  %v6895_v14 = vsel %vm2749_vm14, %v4592_v31, %v4747_v51  ;;  %v7417_v36 = vpack.c.bf16 %v7415_v5, %v7416_v49  ;;  %v4756_v56 = vunpack.i.l.bf16 %v6716_v16  ;;  %v7431_v5 = vld [vmem:[#allocation42_spill] sm:$0xff] }
 0x26f   : > { %4116 = vmatmul.mubr.msk.f32.vlgmr.msra.gmra.mrb[0].mxu0 %vm1501_vm10, %v6741_v57  ;;  %4102 = vmatmul.mubr.msk.f32.vlgmr.msra.gmra.mrb[4].mxu1 %vm1501_vm10, %v7397_v11  ;;  %v4741_v11 = vunpack.i.l.bf16 %v6710_v12  ;;  %v7420_v55 = vpack.c.bf16 %v7418_v0, %v7419_v10  ;;  %v7422_v31 = vunpack.i.l.bf16 %v7421_v21  ;;  %v7423_v12 = vunpack.i.h.bf16 %v7421_v21  ;;  %v7434_v0 = vld [vmem:[#allocation36_spill] sm:$0xff] }
 0x270   : > { %4211 = vmatpush1.bf16.msra.mxu1 %v7417_v36  ;;  %v4751_v25 = vunpack.i.l.bf16 %v6759_v39  ;;  %v4767_v47 = vunpack.i.h.bf16 %v6778_v58  ;;  %v4766_v17 = vunpack.i.l.bf16 %v6778_v58  ;;  %2671 = vmatprep.mubr.f32.mxu0 %v7373_v50  ;;  %v4238_v7 = vpack.c.bf16 %v6857_v41, %v6852_v20  ;;  %v7428_v20 = vld [vmem:[#allocation46_spill] sm:$0xff]  ;;  %v7433_v36 = vld [vmem:[#allocation47_spill] sm:$0xff] }
 0x271   : > { %4251 = vmatpush1.bf16.msra.mxu0 %v7420_v55  ;;  %4213 = vmatprep.subr.bf16.mxu1 %v4212_v35  ;;  %v6910_v30 = vsel %vm2749_vm14, %v4746_v8, %v7422_v31  ;;  %v6915_v34 = vsel %vm2749_vm14, %v4747_v51, %v7423_v12  ;;  %v6921_v53 = vpop.permute.xlu1 %4779  ;;  %v4236_v58 = vpack.c.bf16 %v6877_v52, %v6866_v3  ;;  %v4762_v19 = vunpack.i.h.bf16 %v6817_v26  ;;  %v6942_v8 = vld [vmem:[#allocation6 + $0x40] sm:$0xff] }
 0x272   : > { %4253 = vmatprep.subr.bf16.mxu0 %v4252_v24  ;;  %1892 = vmatprep.mubr.f32.mxu1 %v7373_v50  ;;  %v6927_v4 = vpop.permute.xlu0 %4794  ;;  %v4268_v13 = vpack.c.bf16 %v6885_v2, %v6880_v40  ;;  %v4258_v29 = vpack.c.bf16 %v6895_v14, %v6890_v62  ;;  %v2766_v44 = vsel %vm2749_vm14, %v4741_v11, %v4731_v42  ;;  %v4761_v51 = vunpack.i.l.bf16 %v6817_v26  ;;  %v7430_v2 = vld [vmem:[#allocation41_spill] sm:$0xff] }
 0x273   : > { %4117 = vmatmul.mubr.msk.f32.gmra.mrb[2].mxu0 %vm1501_vm10, %v6801_v23  ;;  %4103 = vmatmul.mubr.msk.f32.gmra.mrb[6].mxu1 %vm1501_vm10, %v7411_v28  ;;  %v2772_v28 = vsel %vm2749_vm14, %v4742_v18, %v4736_v61  ;;  %v7426_v27 = vpack.c.bf16 %v7424_v9, %v7425_v32  ;;  %v7429_v24 = vpack.c.bf16 %v7427_v43, %v7428_v20  ;;  %v4772_v46 = vunpack.i.h.bf16 %v6859_v54 }
 0x274   : > { %4215 = vmatpush1.bf16.msra.mxu1 %v4214_v1  ;;  %v4256_v42 = vpack.c.bf16 %v6915_v34, %v6910_v30  ;;  %v3114_v26 = vsel %vm3106_vm15, %v4756_v56, %v4757_v48  ;;  %v6961_v38 = vsel %vm2749_vm14, %v4647_v45, %v4766_v17  ;;  %v6966_v61 = vsel %vm2749_vm14, %v4722_v63, %v4767_v47 }
 0x275   : > { %4255 = vmatpush1.bf16.msra.mxu0 %v4254_v22  ;;  %4233 = vmatprep.subr.bf16.mxu1 %v7426_v27  ;;  %v6968_v1 = vpop.permute.xlu1 %4789  ;;  %v3108_v22 = vsel %vm3106_vm15, %v4751_v25, %v4752_v6  ;;  %v4771_v45 = vunpack.i.l.bf16 %v6859_v54  ;;  %v2765_v59 = vsel %vm2749_vm14, %v4766_v17, %v4741_v11  ;;  %v2771_v63 = vsel %vm2749_vm14, %v4767_v47, %v4742_v18 }
 0x276   : > { %4265 = vmatprep.subr.bf16.mxu0 %v7429_v24  ;;  %2868 = vmatprep.mubr.f32.mxu0 %v7373_v50  ;;  %v6977_v41 = vpop.permute.xlu0 %4804  ;;  %v3107_v35 = vsel %vm3106_vm15, %v4761_v51, %v4751_v25  ;;  %v3113_v3 = vsel %vm3106_vm15, %v4762_v19, %v4756_v56  ;;  %v4782_v52 = vunpack.i.h.bf16 %v6921_v53  ;;  %v4781_v40 = vunpack.i.l.bf16 %v6921_v53 }
 0x277   : > { %2231 = vmatprep.mubr.f32.mxu1 %v7373_v50  ;;  %v7432_v49 = vpack.c.bf16 %v7430_v2, %v7431_v5  ;;  %v7435_v10 = vpack.c.bf16 %v7433_v36, %v7434_v0  ;;  %v4777_v18 = vunpack.i.h.bf16 %v6831_v15  ;;  %v4776_v11 = vunpack.i.l.bf16 %v6831_v15 }
 0x278   : > { %4118 = vmatmul.mubr.msk.f32.vlgmr.msra.gmra.mrb[4].mxu0 %vm1501_vm10, %v6942_v8  ;;  %4108 = vmatmul.mubr.msk.f32.vlgmr.msra.gmra.mrb[4].mxu1 %vm1501_vm10, %v6593_v37  ;;  %v6995_v37 = vld [vmem:[#allocation6 + $0x48] sm:$0xff]  ;;  %v4786_v55 = vunpack.i.l.bf16 %v6868_v33  ;;  %v4796_v56 = vunpack.i.l.bf16 %v6927_v4  ;;  %v4270_v21 = vpack.c.bf16 %v2772_v28, %v2766_v44  ;;  %v4262_v31 = vpack.c.bf16 %v6966_v61, %v6961_v38 }
 0x279   : > { %4235 = vmatpush1.bf16.msra.mxu1 %v7432_v49  ;;  %4267 = vmatpush1.bf16.msra.mxu0 %v7435_v10  ;;  %v4797_v30 = vunpack.i.h.bf16 %v6927_v4  ;;  %v4800_v12 = vpop.permute.xlu1 %4799  ;;  %v4272_v34 = vpack.c.bf16 %v3114_v26, %v3108_v22  ;;  %v4274_v25 = vpack.c.bf16 %v3113_v3, %v3107_v35  ;;  %v4787_v47 = vunpack.i.h.bf16 %v6868_v33 }
 0x27a   : > { %4237 = vmatprep.subr.bf16.mxu1 %v4236_v58  ;;  %4269 = vmatprep.subr.bf16.mxu0 %v4268_v13  ;;  %v7007_v17 = vpop.permute.xlu0 %4814  ;;  %v4260_v53 = vpack.c.bf16 %v2771_v63, %v2765_v59  ;;  %v3120_v4 = vsel %vm3106_vm15, %v4771_v45, %v4772_v46  ;;  %v3119_v58 = vsel %vm3106_vm15, %v4781_v40, %v4771_v45  ;;  %v4802_v44 = vunpack.i.h.bf16 %v4800_v12 }
 0x27b   : > { %2874 = vmatprep.mubr.f32.mxu0 %v7373_v50  ;;  %2237 = vmatprep.mubr.f32.mxu1 %v7373_v50  ;;  %v3125_v13 = vsel %vm3106_vm15, %v4782_v52, %v4776_v11  ;;  %v4801_v19 = vunpack.i.l.bf16 %v4800_v12  ;;  %v7021_v33 = vsel %vm3106_vm15, %v4752_v6, %v4786_v55  ;;  %v3126_v51 = vsel %vm3106_vm15, %v4776_v11, %v4777_v18  ;;  %v7074_v52 = vld [vmem:[#allocation6 + $0x50] sm:$0xff]  ;;  %v3049_v12 = vld [vmem:[#allocation6 + $0x58] sm:$0xff] }
 0x27c   : > { %4119 = vmatmul.mubr.msk.f32.gmra.mrb[6].mxu0 %vm1501_vm10, %v6995_v37  ;;  %4109 = vmatmul.mubr.msk.f32.gmra.mrb[6].mxu1 %vm1501_vm10, %v6621_v60  ;;  %v7026_v60 = vsel %vm3106_vm15, %v4757_v48, %v4796_v56  ;;  %v4792_v28 = vunpack.i.h.bf16 %v6968_v1  ;;  %v4806_v39 = vunpack.i.l.bf16 %v6977_v41  ;;  %v3116_v16 = vsel %vm3106_vm15, %v4796_v56, %v4797_v30 }
 0x27d   : > { %4239 = vmatpush1.bf16.msra.mxu1 %v4238_v7  ;;  %4271 = vmatpush1.bf16.msra.mxu0 %v4270_v21  ;;  %v4791_v7 = vunpack.i.l.bf16 %v6968_v1  ;;  %v7034_v9 = vpop.permute.xlu1 %4809  ;;  %v4278_v48 = vpack.c.bf16 %v3125_v13, %v3119_v58  ;;  %v4276_v32 = vpack.c.bf16 %v3126_v51, %v3120_v4  ;;  %v3110_v27 = vsel %vm3106_vm15, %v4786_v55, %v4787_v47 }
 0x27e   : > { %4257 = vmatprep.subr.bf16.mxu1 %v4256_v42  ;;  %4273 = vmatprep.subr.bf16.mxu0 %v4272_v34  ;;  %v7039_v6 = vpop.permute.xlu0 %4824  ;;  %v4807_v43 = vunpack.i.h.bf16 %v6977_v41  ;;  %v4817_v20 = vunpack.i.h.bf16 %v7007_v17  ;;  %v4816_v24 = vunpack.i.l.bf16 %v7007_v17  ;;  %v3118_v42 = vsel %vm3106_vm15, %v4801_v19, %v4802_v44 }
 0x27f   : > { %3022 = vmatprep.mubr.f32.mxu0 %v7373_v50  ;;  %2588 = vmatprep.mubr.f32.mxu1 %v7373_v50  ;;  %v4282_v26 = vpack.c.bf16 %v7026_v60, %v7021_v33  ;;  %v4811_v1 = vunpack.i.l.bf16 %v7034_v9  ;;  %v4280_v22 = vpack.c.bf16 %v3116_v16, %v3110_v27  ;;  %v3111_v45 = vsel %vm3106_vm15, %v4787_v47, %v4791_v7 }
 0x280   : > { %4122 = vmatmul.mubr.msk.f32.vlgmr.msra.gmra.mrb[0].mxu0 %vm1501_vm10, %v6942_v8  ;;  %4114 = vmatmul.mubr.msk.f32.vlgmr.msra.gmra.mrb[4].mxu1 %vm1501_vm10, %v6741_v57  ;;  %v4812_v57 = vunpack.i.h.bf16 %v7034_v9  ;;  %v7061_v62 = vsel %vm3106_vm15, %v4772_v46, %v4806_v39  ;;  %v3117_v41 = vsel %vm3106_vm15, %v4797_v30, %v4801_v19  ;;  %v3122_v40 = vsel %vm3106_vm15, %v4806_v39, %v4807_v43 }
 0x281   : > { %4259 = vmatpush1.bf16.msra.mxu1 %v4258_v29  ;;  %4275 = vmatpush1.bf16.msra.mxu0 %v4274_v25  ;;  %v4820_v14 = vpop.permute.xlu1 %4819  ;;  %v3112_v29 = vsel %vm3106_vm15, %v4791_v7, %v4792_v28  ;;  %v3128_v2 = vsel %vm3106_vm15, %v4816_v24, %v4817_v20  ;;  %v4827_v5 = vunpack.i.h.bf16 %v7039_v6  ;;  %v4826_v49 = vunpack.i.l.bf16 %v7039_v6 }
 0x282   : > { %4261 = vmatprep.subr.bf16.mxu1 %v4260_v53  ;;  %4277 = vmatprep.subr.bf16.mxu0 %v4276_v32  ;;  %v4822_v59 = vunpack.i.h.bf16 %v4820_v14  ;;  %v4821_v63 = vunpack.i.l.bf16 %v4820_v14  ;;  %v4835_v35 = vpop.permute.xlu0 %4834  ;;  %v4288_v54 = vpack.c.bf16 %v3118_v42, %v3112_v29  ;;  %v4290_v0 = vpack.c.bf16 %v3117_v41, %v3111_v45 }
 0x283   : > { %3028 = vmatprep.mubr.f32.mxu0 %v7373_v50  ;;  %2594 = vmatprep.mubr.f32.mxu1 %v7373_v50  ;;  %v4837_v46 = vunpack.i.h.bf16 %v4835_v35  ;;  %v4836_v3 = vunpack.i.l.bf16 %v4835_v35  ;;  %v3127_v38 = vsel %vm3106_vm15, %v4777_v18, %v4816_v24  ;;  %v4284_v15 = vpack.c.bf16 %v3128_v2, %v3122_v40 }
 0x284   : > { %4123 = vmatmul.mubr.msk.f32.gmra.mrb[2].mxu0 %vm1501_vm10, %v6995_v37  ;;  %4115 = vmatmul.mubr.msk.f32.gmra.mrb[6].mxu1 %vm1501_vm10, %v6801_v23  ;;  %v3124_v23 = vsel %vm3106_vm15, %v4811_v1, %v4812_v57  ;;  %v3130_v36 = vsel %vm3106_vm15, %v4821_v63, %v4822_v59  ;;  %v3129_v11 = vsel %vm3106_vm15, %v4817_v20, %v4821_v63 }
 0x285   : > { %4263 = vmatpush1.bf16.msra.mxu1 %v4262_v31  ;;  %4279 = vmatpush1.bf16.msra.mxu0 %v4278_v48  ;;  %v7085_v61 = vpop.permute.xlu1 %4829  ;;  %v4292_v10 = vpack.c.bf16 %v3130_v36, %v3124_v23  ;;  %v3471_v18 = vsel %vm3463_vm0, %v4836_v3, %v4837_v46  ;;  %v4286_v34 = vpack.c.bf16 %v3127_v38, %v7061_v62 }
 0x286   : > { %4281 = vmatprep.subr.bf16.mxu1 %v4280_v22  ;;  %4289 = vmatprep.subr.bf16.mxu0 %v4288_v54  ;;  %v4845_v55 = vpop.permute.xlu0 %4844  ;;  %v4832_v56 = vunpack.i.h.bf16 %v7085_v61  ;;  %v4831_v21 = vunpack.i.l.bf16 %v7085_v61  ;;  %v3123_v25 = vsel %vm3106_vm15, %v4807_v43, %v4811_v1 }
 0x287   : > { %3225 = vmatprep.mubr.f32.mxu0 %v7373_v50  ;;  %2945 = vmatprep.mubr.f32.mxu1 %v7373_v50  ;;  %v4847_v31 = vunpack.i.h.bf16 %v4845_v55  ;;  %v4846_v30 = vunpack.i.l.bf16 %v4845_v55  ;;  %v4294_v47 = vpack.c.bf16 %v3129_v11, %v3123_v25  ;;  %v3406_v55 = vld [vmem:[#allocation6 + $0x68] sm:$0xff] }
 0x288   : > { %4124 = vmatmul.mubr.msk.f32.vlgmr.msra.gmra.mrb[4].mxu0 %vm1501_vm10, %v7074_v52  ;;  %4120 = vmatmul.mubr.msk.f32.vlgmr.msra.gmra.mrb[4].mxu1 %vm1501_vm10, %v6942_v8  ;;  %v3465_v8 = vsel %vm3463_vm0, %v4826_v49, %v4827_v5  ;;  %v3466_v33 = vsel %vm3463_vm0, %v4827_v5, %v4831_v21  ;;  %v3467_v60 = vsel %vm3463_vm0, %v4831_v21, %v4832_v56 }
 0x289   : > { %4283 = vmatpush1.bf16.msra.mxu1 %v4282_v26  ;;  %4291 = vmatpush1.bf16.msra.mxu0 %v4290_v0  ;;  %v3464_v17 = vsel %vm3463_vm0, %v4846_v30, %v4826_v49  ;;  %v3470_v53 = vsel %vm3463_vm0, %v4847_v31, %v4836_v3  ;;  %v7102_v4 = vpop.permute.xlu1 %4839  ;;  %v4296_v19 = vpack.c.bf16 %v3471_v18, %v3465_v8 }
 0x28a   : > { %4285 = vmatprep.subr.bf16.mxu1 %v4284_v15  ;;  %4293 = vmatprep.subr.bf16.mxu0 %v4292_v10  ;;  %v4842_v58 = vunpack.i.h.bf16 %v7102_v4  ;;  %v4841_v13 = vunpack.i.l.bf16 %v7102_v4  ;;  %v7108_v44 = vpop.permute.xlu0 %4854  ;;  %v4298_v51 = vpack.c.bf16 %v3470_v53, %v3464_v17 }
 0x28b   : > { %3231 = vmatprep.mubr.f32.mxu0 %v7373_v50  ;;  %2951 = vmatprep.mubr.f32.mxu1 %v7373_v50  ;;  %v4857_v39 = vunpack.i.h.bf16 %v7108_v44  ;;  %v4856_v9 = vunpack.i.l.bf16 %v7108_v44 }
 0x28c   : > { %4125 = vmatmul.mubr.msk.f32.gmra.mrb[6].mxu0 %vm1501_vm10, %v3049_v12  ;;  %4121 = vmatmul.mubr.msk.f32.gmra.mrb[6].mxu1 %vm1501_vm10, %v6995_v37  ;;  %v3472_v28 = vsel %vm3463_vm0, %v4837_v46, %v4841_v13  ;;  %v3473_v7 = vsel %vm3463_vm0, %v4841_v13, %v4842_v58 }
 0x28d   : > { %4287 = vmatpush1.bf16.msra.mxu1 %v4286_v34  ;;  %4295 = vmatpush1.bf16.msra.mxu0 %v4294_v47  ;;  %v4306_v37 = vpack.c.bf16 %v3472_v28, %v3466_v33  ;;  %v4850_v16 = vpop.permute.xlu1 %4849  ;;  %v4304_v48 = vpack.c.bf16 %v3473_v7, %v3467_v60  ;;  %v3479_v42 = vsel %vm3463_vm0, %v4856_v9, %v4857_v39 }
 0x28e   : > { %4297 = vmatprep.subr.bf16.mxu0 %v4296_v19  ;;  %3379 = vmatprep.mubr.f32.mxu0 %v7373_v50  ;;  %v7125_v6 = vpop.permute.xlu0 %4864  ;;  %v4852_v43 = vunpack.i.h.bf16 %v4850_v16  ;;  %v4851_v20 = vunpack.i.l.bf16 %v4850_v16  ;;  %v3762_v16 = vstv %s3761_s15 }
 0x28f   : > { %3302 = vmatprep.mubr.f32.mxu1 %v7373_v50  ;;  %v4867_v32 = vunpack.i.h.bf16 %v7125_v6  ;;  %v4866_v27 = vunpack.i.l.bf16 %v7125_v6  ;;  %4305 = vmatprep.subr.bf16.mxu1 %v4304_v48 }
 0x290   : > { %4128 = vmatmul.mubr.msk.f32.vlgmr.msra.gmra.mrb[0].mxu0 %vm1501_vm10, %v7074_v52  ;;  %4126 = vmatmul.mubr.msk.f32.vlgmr.msra.gmra.mrb[4].mxu1 %vm1501_vm10, %v7074_v52  ;;  %v3478_v62 = vsel %vm3463_vm0, %v4852_v43, %v4856_v9  ;;  %v3477_v29 = vsel %vm3463_vm0, %v4851_v20, %v4852_v43  ;;  %v3405_v52 = vld [vmem:[#allocation6 + $0x60] sm:$0xff] }
 0x291   : > { %4299 = vmatpush1.bf16.msra.mxu0 %v4298_v51  ;;  %4307 = vmatpush1.bf16.msra.mxu1 %v4306_v37  ;;  %v4860_v24 = vpop.permute.xlu1 %4859  ;;  %v3485_v26 = vsel %vm3463_vm0, %v4866_v27, %v4867_v32 }
 0x292   : > { %3385 = vmatprep.mubr.f32.mxu0 %v7373_v50  ;;  %3308 = vmatprep.mubr.f32.mxu1 %v7373_v50  ;;  %v4862_v57 = vunpack.i.h.bf16 %v4860_v24  ;;  %v4861_v1 = vunpack.i.l.bf16 %v4860_v24  ;;  %v4875_v22 = vpop.permute.xlu0 %4874  ;;  %v4308_v45 = vpack.c.bf16 %v3485_v26, %v3479_v42 }
 0x293   : > { %v4876_v3 = vunpack.i.l.bf16 %v4875_v22  ;;  %v4877_v40 = vunpack.i.h.bf16 %v4875_v22 }
 0x294   : > { %4129 = vmatmul.mubr.msk.f32.gmra.mrb[2].mxu0 %vm1501_vm10, %v3049_v12  ;;  %4127 = vmatmul.mubr.msk.f32.gmra.mrb[6].mxu1 %vm1501_vm10, %v3049_v12  ;;  %v3484_v14 = vsel %vm3463_vm0, %v4862_v57, %v4866_v27  ;;  %v3483_v41 = vsel %vm3463_vm0, %v4861_v1, %v4862_v57  ;;  %v3806_v27 = vstv %s4142_s25 }
 0x295   : > { %3659 = vmatprep.mubr.f32.mxu1 %v7373_v50  ;;  %3582 = vmatprep.mubr.f32.mxu0 %v7373_v50  ;;  %v4310_v59 = vpack.c.bf16 %v3484_v14, %v3478_v62  ;;  %v4870_v63 = vpop.permute.xlu1 %4869  ;;  %v4300_v35 = vpack.c.bf16 %v3483_v41, %v3477_v29  ;;  %v3468_v10 = vsel %vm3463_vm0, %v4832_v56, %v4876_v3 }
 0x296   : > { %4309 = vmatprep.subr.bf16.mxu1 %v4308_v45  ;;  %v4872_v54 = vunpack.i.h.bf16 %v4870_v63  ;;  %v4871_v46 = vunpack.i.l.bf16 %v4870_v63  ;;  %v4885_v49 = vpop.permute.xlu0 %4884  ;;  %v3469_v21 = vsel %vm3463_vm0, %v4876_v3, %v4877_v40 }
 0x297   : > { %4301 = vmatprep.subr.bf16.mxu0 %v4300_v35  ;;  %4311 = vmatpush1.bf16.msra.mxu1 %v4310_v59  ;;  %v4886_v11 = vunpack.i.l.bf16 %v4885_v49  ;;  %v4887_v15 = vunpack.i.h.bf16 %v4885_v49 }
 0x298   : > { %v3476_v2 = vsel %vm3463_vm0, %v4871_v46, %v4851_v20  ;;  %v3482_v5 = vsel %vm3463_vm0, %v4872_v54, %v4861_v1 }
 0x299   : > { %v4302_v23 = vpack.c.bf16 %v3482_v5, %v3476_v2  ;;  %v4880_v36 = vpop.permute.xlu1 %4879  ;;  %v3480_v56 = vsel %vm3463_vm0, %v4857_v39, %v4886_v11  ;;  %v3481_v47 = vsel %vm3463_vm0, %v4886_v11, %v4887_v15 }
 0x29a   : > { %v4882_v0 = vunpack.i.h.bf16 %v4880_v36  ;;  %v4881_v38 = vunpack.i.l.bf16 %v4880_v36  ;;  %4132 = vmatmul.mubr.msk.f32.vlgmr.msra.gmra.mrb[4].mxu1 %vm1501_vm10, %v3405_v52 }
 0x29b   : > { %4303 = vmatpush1.bf16.msra.mxu0 %v4302_v23  ;;  %3665 = vmatprep.mubr.f32.mxu1 %v7373_v50 }
 0x29c   : > { %v3474_v18 = vsel %vm3463_vm0, %v4842_v58, %v4881_v38  ;;  %v3475_v31 = vsel %vm3463_vm0, %v4881_v38, %v4882_v0 }
 0x29d   : > { %v4314_v30 = vpack.c.bf16 %v3474_v18, %v3468_v10  ;;  %v4890_v12 = vpop.permute.xlu1 %4889  ;;  %v4312_v34 = vpack.c.bf16 %v3475_v31, %v3469_v21 }
 0x29e   : > { %v4892_v61 = vunpack.i.h.bf16 %v4890_v12  ;;  %v4891_v25 = vunpack.i.l.bf16 %v4890_v12  ;;  %4130 = vmatmul.mubr.msk.f32.vlgmr.msra.gmra.mrb[4].mxu0 %vm1501_vm10, %v3405_v52  ;;  %4133 = vmatmul.mubr.msk.f32.gmra.mrb[6].mxu1 %vm1501_vm10, %v3406_v55 }
 0x29f   : > { %4313 = vmatprep.subr.bf16.mxu0 %v4312_v34  ;;  %4320 = vmatprep.subr.bf16.mxu1 %v4312_v34 }
 0x2a0   : > { %v3486_v8 = vsel %vm3463_vm0, %v4867_v32, %v4891_v25  ;;  %4315 = vmatpush1.bf16.msra.mxu0 %v4314_v30  ;;  %4322 = vmatpush1.bf16.msra.mxu1 %v4314_v30  ;;  %v3487_v17 = vsel %vm3463_vm0, %v4891_v25, %v4892_v61 }
 0x2a1   : > { %v4318_v53 = vpack.c.bf16 %v3486_v8, %v3480_v56  ;;  %3588 = vmatprep.mubr.f32.mxu0 %v7373_v50  ;;  %v4316_v4 = vpack.c.bf16 %v3487_v17, %v3481_v47  ;;  %3742 = vmatprep.mubr.f32.mxu1 %v7373_v50 }
 0x2a2   : > { %4131 = vmatmul.mubr.msk.f32.gmra.mrb[6].mxu0 %vm1501_vm10, %v3406_v55 }
 0x2a3   : > { %4317 = vmatprep.subr.bf16.mxu0 %v4316_v4  ;;  %4321 = vmatprep.subr.bf16.mxu1 %v4316_v4 }
 0x2a4   : > { %4319 = vmatpush1.bf16.msra.mxu0 %v4318_v53  ;;  %4323 = vmatpush1.bf16.msra.mxu1 %v4318_v53 }
 0x2a5   : > { %3736 = vmatprep.mubr.f32.mxu0 %v7373_v50 }
 0x2a7   : > { %4134 = vmatmul.mubr.msk.f32.vlgmr.msra.gmra.mrb[0].mxu0 %vm1501_vm10, %v3405_v52  ;;  %4135 = vmatmul.mubr.msk.f32.vlgmr.msra.gmra.mrb[12].mxu1 %vm1501_vm10, %v3406_v55 }
 0x332   : > { %v1728_v58 = vpop.f32.mrb[8].mxu1 }
 0x333   : > { %v1730_v13 = vpop.f32.mrb[9].mxu1 }
 0x336   : > { %v1734_v44 = vpop.f32.mrb[10].mxu1 }
 0x337   : > { %v1736_v19 = vpop.f32.mrb[11].mxu1 }
 0x33a   : > { %v1811_v33 = vpop.f32.mrb[0].mxu1 }
 0x33b   : > { %v1813_v60 = vpop.f32.mrb[1].mxu1 }
 0x33e   : > { %v1817_v51 = vpop.f32.mrb[2].mxu1 }
 0x33f   : > { %v1819_v28 = vpop.f32.mrb[3].mxu1 }
 0x367   : > { %v3387_v7 = vpop.f32.mrb[2].mxu0 }
 0x368   : > { %v4330_v37 = vadd.f32 %v3387_v7, %v1734_v44  ;;  %v3389_v39 = vpop.f32.mrb[3].mxu0 }
 0x369   : > { %v4332_v9 = vadd.f32 %v3389_v39, %v1736_v19 }
 0x36d   : > { %v3661_v50 = vpop.f32.mrb[4].mxu1 }
 0x36e   : > { %v3765_v48 = vadd.f32 %v3762_v16, %v3661_v50  ;;  %v3663_v6 = vpop.f32.mrb[5].mxu1 }
 0x36f   : > { %v3766_v32 = vadd.f32 %v3762_v16, %v3663_v6  ;;  %v7437_v6 = vld [vmem:[#allocation19_spill] sm:$0xff] }
 0x370   : > { %v4138_v43 = vmul.f32 -1.442695, %v3765_v48 }
 0x371   : > { %v4139_v20 = vmul.f32 -1.442695, %v3766_v32  ;;  %v3584_v24 = vpop.f32.mrb[4].mxu0  ;;  %v3667_v42 = vpop.f32.mrb[6].mxu1 }
 0x372   : > { %4893 = vpow2.f32 %v4138_v43  ;;  %v4324_v26 = vadd.f32 %v3584_v24, %v1811_v33  ;;  %v3809_v57 = vadd.f32 %v3806_v27, %v3667_v42  ;;  %v3586_v1 = vpop.f32.mrb[5].mxu0  ;;  %v3669_v22 = vpop.f32.mrb[7].mxu1 }
 0x373   : > { %4895 = vpow2.f32 %v4139_v20  ;;  %v4325_v45 = vadd.f32 %v3586_v1, %v1813_v60  ;;  %v3810_v62 = vadd.f32 %v3806_v27, %v3669_v22  ;;  %v7438_v22 = vld [vmem:[#allocation16_spill] sm:$0xff] }
 0x374   : > { %v3763_v14 = vadd.f32 %v4324_v26, %v3762_v16  ;;  %v4145_v29 = vmul.f32 -1.442695, %v3809_v57 }
 0x375   : > { %v3764_v41 = vadd.f32 %v4325_v45, %v3762_v16  ;;  %v4146_v59 = vmul.f32 -1.442695, %v3810_v62  ;;  %v3590_v63 = vpop.f32.mrb[6].mxu0  ;;  %v3969_v62 = vlaneseq }
 0x376   : > { %v4136_v35 = vmul.f32 -1.442695, %v3763_v14  ;;  %4897 = vpow2.f32 %v4145_v29  ;;  %v4326_v54 = vadd.f32 %v3590_v63, %v1817_v51  ;;  %v3592_v46 = vpop.f32.mrb[7].mxu0  ;;  %v5071_v63 = vmov 1983009808  }
 0x377   : > { %v4137_v3 = vmul.f32 -1.442695, %v3764_v41  ;;  %4899 = vpow2.f32 %v4146_v59  ;;  %v4327_v52 = vadd.f32 %v3592_v46, %v1819_v28  ;;  %v7439_v41 = vld [vmem:[#allocation21_spill] sm:$0xff] }
 0x378   : > { %4901 = vpow2.f32 %v4136_v35  ;;  %v3807_v40 = vadd.f32 %v4326_v54, %v3806_v27  ;;  %v7181_v35 = vunpack.c.l.s4 %v5071_v63 }
 0x379   : > { %4903 = vpow2.f32 %v4137_v3  ;;  %v3808_v2 = vadd.f32 %v4327_v52, %v3806_v27  ;;  %v7440_v3 = vld [vmem:[#allocation13_spill] sm:$0xff] }
 0x37a   : > { %v4143_v5 = vmul.f32 -1.442695, %v3807_v40  ;;  %v3738_v49 = vpop.f32.mrb[0].mxu0  ;;  %v3744_v23 = vpop.f32.mrb[12].mxu1 }
 0x37b   : > { %v4144_v36 = vmul.f32 -1.442695, %v3808_v2  ;;  %v4328_v0 = vadd.f32 %v3738_v49, %v1728_v58  ;;  %v4331_v38 = vadd.f32 %v4330_v37, %v3744_v23  ;;  %v3740_v10 = vpop.f32.mrb[1].mxu0  ;;  %v3746_v11 = vpop.f32.mrb[13].mxu1  ;;  %v7441_v49 = vld [vmem:[#allocation14_spill] sm:$0xff] }
 0x37c   : > { %v4894_v55 = vpop.eup %4893  ;;  %4905 = vpow2.f32 %v4143_v5  ;;  %v4329_v15 = vadd.f32 %v3740_v10, %v1730_v13  ;;  %v4333_v18 = vadd.f32 %v4332_v9, %v3746_v11 }
 0x37d   : > { %v4896_v21 = vpop.eup %4895  ;;  %v3789_v31 = vadd.f32 1.0, %v4894_v55  ;;  %4907 = vpow2.f32 %v4144_v36  ;;  %v3767_v30 = vadd.f32 %v4328_v0, %v3762_v16  ;;  %v3811_v12 = vadd.f32 %v4331_v38, %v3806_v27 }
 0x37e   : > { %v3790_v34 = vadd.f32 1.0, %v4896_v21  ;;  %v3768_v56 = vadd.f32 %v4329_v15, %v3762_v16  ;;  %v3812_v47 = vadd.f32 %v4333_v18, %v3806_v27  ;;  %v7436_v16 = vld [vmem:[#allocation12_spill] sm:$0xff]  ;;  %v7185_v55 = vshrl.u32 %v3969_v62, 7 }
 0x37f   : > { %4909 = vrcp.f32 %v3789_v31  ;;  %v4140_v61 = vmul.f32 -1.442695, %v3767_v30  ;;  %v4147_v25 = vmul.f32 -1.442695, %v3811_v12  ;;  %v3968_v30 = vunpack.c.0.s8 %v7181_v35  ;;  %v7445_v62 = vld [vmem:[#allocation20_spill] sm:$0xff] }
 0x380   : > { %v4898_v8 = vpop.eup %4897  ;;  %4911 = vrcp.f32 %v3790_v34  ;;  %v4141_v19 = vmul.f32 -1.442695, %v3768_v56  ;;  %v4148_v60 = vmul.f32 -1.442695, %v3812_v47  ;;  %v7442_v56 = vld [vmem:[#allocation15_spill] sm:$0xff] }
 0x381   : > { %v4900_v17 = vpop.eup %4899  ;;  %v3833_v53 = vadd.f32 1.0, %v4898_v8  ;;  %4913 = vpow2.f32 %v4140_v61 }
 0x382   : > { %v4902_v4 = vpop.eup %4901  ;;  %v3834_v58 = vadd.f32 1.0, %v4900_v17  ;;  %4915 = vpow2.f32 %v4147_v25 }
 0x383   : > { %v4904_v13 = vpop.eup %4903  ;;  %v3787_v44 = vadd.f32 1.0, %v4902_v4  ;;  %4917 = vrcp.f32 %v3833_v53  ;;  %v7443_v4 = vld [vmem:[#allocation17_spill] sm:$0xff] }
 0x384   : > { %v3788_v33 = vadd.f32 1.0, %v4904_v13  ;;  %4919 = vrcp.f32 %v3834_v58 }
 0x385   : > { %4921 = vrcp.f32 %v3787_v44 }
 0x386   : > { %v4906_v51 = vpop.eup %4905  ;;  %4923 = vrcp.f32 %v3788_v33 }
 0x387   : > { %v4908_v28 = vpop.eup %4907  ;;  %v3831_v7 = vadd.f32 1.0, %v4906_v51  ;;  %4925 = vpow2.f32 %v4141_v19 }
 0x388   : > { %v3832_v37 = vadd.f32 1.0, %v4908_v28  ;;  %4927 = vpow2.f32 %v4148_v60 }
 0x389   : > { %v4910_v39 = vpop.eup %4909  ;;  %4929 = vrcp.f32 %v3831_v7 }
 0x38a   : > { %v4912_v9 = vpop.eup %4911  ;;  %v3851_v50 = vmul.f32 %v4910_v39, %v7436_v16  ;;  %4931 = vrcp.f32 %v3832_v37 }
 0x38b   : > { %v4914_v48 = vpop.eup %4913  ;;  %v3852_v32 = vmul.f32 %v4912_v9, %v7437_v6 }
 0x38c   : > { %v4916_v27 = vpop.eup %4915  ;;  %v3867_v43 = vrot.slane %v3851_v50, 4  ;;  %v3791_v20 = vadd.f32 1.0, %v4914_v48 }
 0x38d   : > { %v4918_v24 = vpop.eup %4917  ;;  %v3873_v42 = vrot.slane %v3852_v32, 4  ;;  %v3835_v26 = vadd.f32 1.0, %v4916_v27 }
 0x38e   : > { %v4920_v57 = vpop.eup %4919  ;;  %v3868_v1 = vadd.f32 %v3867_v43, %v3851_v50  ;;  %v3905_v45 = vmul.f32 %v4918_v24, %v7438_v22  ;;  %4933 = vrcp.f32 %v3791_v20 }
 0x38f   : > { %v4922_v14 = vpop.eup %4921  ;;  %v3874_v29 = vadd.f32 %v3873_v42, %v3852_v32  ;;  %v3906_v59 = vmul.f32 %v4920_v57, %v7439_v41  ;;  %4935 = vrcp.f32 %v3835_v26  ;;  %v7444_v26 = vld [vmem:[#allocation18_spill] sm:$0xff] }
 0x390   : > { %v4924_v54 = vpop.eup %4923  ;;  %v3869_v46 = vrot.slane %v3868_v1, 2  ;;  %v3849_v52 = vmul.f32 %v4922_v14, %v7440_v3  ;;  %v3921_v40 = vrot.slane %v3905_v45, 4 }
 0x391   : > { %v4926_v2 = vpop.eup %4925  ;;  %v3875_v5 = vrot.slane %v3874_v29, 2  ;;  %v3850_v23 = vmul.f32 %v4924_v54, %v7441_v49  ;;  %v3927_v36 = vrot.slane %v3906_v59, 4 }
 0x392   : > { %v4928_v0 = vpop.eup %4927  ;;  %v3870_v38 = vadd.f32 %v3869_v46, %v3868_v1  ;;  %v3855_v10 = vrot.slane %v3849_v52, 4  ;;  %v3922_v11 = vadd.f32 %v3921_v40, %v3905_v45  ;;  %v3792_v33 = vadd.f32 1.0, %v4926_v2 }
 0x393   : > { %v4930_v15 = vpop.eup %4929  ;;  %v3876_v18 = vadd.f32 %v3875_v5, %v3874_v29  ;;  %v3861_v21 = vrot.slane %v3850_v23, 4  ;;  %v3928_v31 = vadd.f32 %v3927_v36, %v3906_v59  ;;  %v3836_v7 = vadd.f32 1.0, %v4928_v0 }
 0x394   : > { %v4932_v12 = vpop.eup %4931  ;;  %v3871_v34 = vrot.slane %v3870_v38, 1  ;;  %v3856_v61 = vadd.f32 %v3855_v10, %v3849_v52  ;;  %v3923_v25 = vrot.slane %v3922_v11, 2  ;;  %v3903_v8 = vmul.f32 %v4930_v15, %v7442_v56 }
 0x395   : > { %v3877_v47 = vrot.slane %v3876_v18, 1  ;;  %v3862_v17 = vadd.f32 %v3861_v21, %v3850_v23  ;;  %v3929_v53 = vrot.slane %v3928_v31, 2  ;;  %v3904_v58 = vmul.f32 %v4932_v12, %v7443_v4 }
 0x396   : > { %v3857_v13 = vrot.slane %v3856_v61, 2  ;;  %v3924_v44 = vadd.f32 %v3923_v25, %v3922_v11  ;;  %v3909_v19 = vrot.slane %v3903_v8, 4  ;;  %v3872_v39 = vadd.f32 %v3871_v34, %v3870_v38 }
 0x397   : > { %v3863_v60 = vrot.slane %v3862_v17, 2  ;;  %v3930_v51 = vadd.f32 %v3929_v53, %v3928_v31  ;;  %v3915_v28 = vrot.slane %v3904_v58, 4  ;;  %v3878_v6 = vadd.f32 %v3877_v47, %v3876_v18 }
 0x398   : > { %v4934_v37 = vpop.eup %4933  ;;  %v3858_v9 = vadd.f32 %v3857_v13, %v3856_v61  ;;  %v3925_v16 = vrot.slane %v3924_v44, 1  ;;  %v3910_v50 = vadd.f32 %v3909_v19, %v3903_v8  ;;  %v3893_v29 = vmul.f32 0.125, %v3872_v39  ;;  %v7447_v39 = vld [vmem:[#allocation23_spill] sm:$0xff] }
 0x399   : > { %v4936_v48 = vpop.eup %4935  ;;  %v3864_v32 = vadd.f32 %v3863_v60, %v3862_v17  ;;  %v3931_v27 = vrot.slane %v3930_v51, 1  ;;  %v3916_v43 = vadd.f32 %v3915_v28, %v3904_v58  ;;  %v3853_v57 = vmul.f32 %v4934_v37, %v7444_v26 }
 0x39a   : > { %v3859_v20 = vrot.slane %v3858_v9, 1  ;;  %v3926_v24 = vadd.f32 %v3925_v16, %v3924_v44  ;;  %v3911_v42 = vrot.slane %v3910_v50, 2  ;;  %v3907_v14 = vmul.f32 %v4936_v48, %v7445_v62 }
 0x39b   : > { %v3865_v1 = vrot.slane %v3864_v32, 1  ;;  %v3932_v22 = vadd.f32 %v3931_v27, %v3930_v51  ;;  %v3917_v45 = vrot.slane %v3916_v43, 2  ;;  %v3879_v63 = vrot.slane %v3853_v57, 4 }
 0x39c   : > { %v3947_v41 = vmul.f32 0.125, %v3926_v24  ;;  %v3912_v59 = vadd.f32 %v3911_v42, %v3910_v50  ;;  %v3894_v54 = vmul.f32 0.125, %v3878_v6  ;;  %v3933_v52 = vrot.slane %v3907_v14, 4 }
 0x39d   : > { %v3948_v46 = vmul.f32 0.125, %v3932_v22  ;;  %v3918_v3 = vadd.f32 %v3917_v45, %v3916_v43  ;;  %v3860_v40 = vadd.f32 %v3859_v20, %v3858_v9  ;;  %v3880_v49 = vadd.f32 %v3879_v63, %v3853_v57 }
 0x39e   : > { %v3954_v2 = vsel %vm3951_vm1, %v3893_v29, %v3947_v41  ;;  %v3913_v5 = vrot.slane %v3912_v59, 1  ;;  %v3866_v23 = vadd.f32 %v3865_v1, %v3864_v32  ;;  %v3934_v38 = vadd.f32 %v3933_v52, %v3907_v14 }
 0x39f   : > { %v3955_v36 = vsel %vm3951_vm1, %v3894_v54, %v3948_v46  ;;  %v3919_v0 = vrot.slane %v3918_v3, 1  ;;  %v3881_v15 = vrot.slane %v3880_v49, 2  ;;  %4937 = vrcp.f32 %v3792_v33 }
 0x3a0   : > { %v3965_v10 = vcombine.low %v3954_v2, %v3955_v36  ;;  %v3914_v11 = vadd.f32 %v3913_v5, %v3912_v59  ;;  %v3935_v21 = vrot.slane %v3934_v38, 2  ;;  %4939 = vrcp.f32 %v3836_v7  ;;  %v7446_v7 = vld [vmem:[#allocation22_spill] sm:$0xff] }
 0x3a1   : > { %v3920_v18 = vadd.f32 %v3919_v0, %v3918_v3  ;;  %v3891_v31 = vmul.f32 0.125, %v3860_v40  ;;  %v3882_v34 = vadd.f32 %v3881_v15, %v3880_v49  ;;  %v3892_v61 = vmul.f32 0.125, %v3866_v23 }
 0x3a2   : > { %v3945_v12 = vmul.f32 0.125, %v3914_v11  ;;  %v3936_v56 = vadd.f32 %v3935_v21, %v3934_v38  ;;  %v3971_v8 = vsub.s32 %v3968_v30, %v7185_v55 }
 0x3a3   : > { %v3946_v25 = vmul.f32 0.125, %v3920_v18  ;;  %v3883_v17 = vrot.slane %v3882_v34, 1 }
 0x3a4   : > { %v3952_v47 = vsel %vm3951_vm1, %v3891_v31, %v3945_v12  ;;  %v3937_v4 = vrot.slane %v3936_v56, 1  ;;  %v3979_v19 = vrot.slane %v3965_v10, %v3971_v8 }
 0x3a5   : > { %v3953_v53 = vsel %vm3951_vm1, %v3892_v61, %v3946_v25  ;;  %v3884_v13 = vadd.f32 %v3883_v17, %v3882_v34 }
 0x3a6   : > { %v3964_v58 = vcombine.low %v3952_v47, %v3953_v53  ;;  %v3938_v44 = vadd.f32 %v3937_v4, %v3936_v56 }
 0x3a7   : > { %v3895_v60 = vmul.f32 0.125, %v3884_v13 }
 0x3a8   : > { %v3972_v33 = vrot.slane %v3964_v58, %v3971_v8  ;;  %v3949_v51 = vmul.f32 0.125, %v3938_v44 }
 0x3a9   : > { %v4938_v35 = vpop.eup %4937 }
 0x3aa   : > { %v3980_v55 = vcombine.low %v3972_v33, %v3979_v19  ;;  %v4940_v30 = vpop.eup %4939  ;;  %v3956_v28 = vsel %vm3951_vm1, %v3895_v60, %v3949_v51  ;;  %v3854_v37 = vmul.f32 %v4938_v35, %v7446_v7 }
 0x3ab   : > { %v3908_v9 = vmul.f32 %v4940_v30, %v7447_v39 }
 0x3ac   : > { %3991 = vst [vmem:[%s217_s29] sm:$0xff] %v3980_v55  ;;  %v3885_v16 = vrot.slane %v3854_v37, 4 }
 0x3ad   : > { %v3939_v50 = vrot.slane %v3908_v9, 4 }
 0x3ae   : > { %v3886_v48 = vadd.f32 %v3885_v16, %v3854_v37 }
 0x3af   : > { %v3940_v6 = vadd.f32 %v3939_v50, %v3908_v9 }
 0x3b0   : > { %v3887_v32 = vrot.slane %v3886_v48, 2 }
 0x3b1   : > { %v3941_v27 = vrot.slane %v3940_v6, 2 }
 0x3b2   : > { %v3888_v43 = vadd.f32 %v3887_v32, %v3886_v48 }
 0x3b3   : > { %v3942_v20 = vadd.f32 %v3941_v27, %v3940_v6 }
 0x3b4   : > { %v3889_v24 = vrot.slane %v3888_v43, 1 }
 0x3b5   : > { %v3943_v42 = vrot.slane %v3942_v20, 1 }
 0x3b6   : > { %v3890_v26 = vadd.f32 %v3889_v24, %v3888_v43 }
 0x3b7   : > { %v3944_v57 = vadd.f32 %v3943_v42, %v3942_v20 }
 0x3b8   : > { %v3896_v1 = vmul.f32 0.125, %v3890_v26 }
 0x3b9   : > { %v3950_v22 = vmul.f32 0.125, %v3944_v57 }
 0x3bb   : > { %v3957_v45 = vsel %vm3951_vm1, %v3896_v1, %v3950_v22 }
 0x3bc   : > { %v3981_v62 = vcombine.low %v3956_v28, %v3957_v45 }
 0x3be   : > { %4149 = vst.sshfl [vmem:[%s217_s29 + $0x8] sm:$0x33 pattern:$0x76325410] %v3981_v62 }
 0x3bf PF: > { %p15_p6 = scmp.ge.s32.totalorder %s5114_s17, 4   ;;  %s7448_s12 = smov %s5046_s13 }
 0x3c0   : > { %s7449_s13 = smov %s5050_s14  ;;  %s7450_s14 = smov %s5124_s20 }
 0x3c1   : > { %s7451_s15 = smov %s5114_s17  ;;  %17 = sbr.rel (!%p15_p6) target bundleno = 5 (0x5), region = 88 }
 0x3c8   :  { %4014 = vsyncpa [#allocation4], 1 }
 0x3c9   :  { %4016 = vsyncpa [#allocation4 + $0x1], 1 }
 0x3ca   :  { %4017 = vsyncpa [#allocation8], 1 }
 0x3cb   :  { %4019 = vsyncpa [#allocation8 + $0x1], 1 }
 0x3cc   :  { %4020 = vsyncpa [#allocation5], 1 }
 0x3cd   :  { %4022 = vsyncpa [#allocation5 + $0x1], 1 }

</bundles_post_ra>
